<compile_context>
chip_gen: v5e
topology: v5e:2x2
jax: 0.10.0
libtpu: 0.0.40
codegen_flags: <defaults>
</compile_context>

<pallas_src>
import math

import jax
import jax.numpy as jnp
from jax.experimental import pallas as pl
from jax.experimental.pallas import tpu as pltpu

# ---------------- config (scaled-down, consistent with the module's structure) ----
HIDDEN = 64          # stands in for 768
HEADS = 4
HEAD_DIM = HIDDEN // HEADS
INTER = 4 * HIDDEN   # FFN intermediate size
LAYERS = 2           # small synthetic encoder depth
VOCAB = 128
SEQ = 16
BATCH = 2
N_ENT = 5            # num_entity_types
N_REL = 7            # num_relation_types
NOUT_PAD = 128       # classifier logits padded to one full 128-lane block
LN_EPS = 1e-5        # nn.LayerNorm default / roberta-base layer_norm_eps


# ---------------- in-kernel helpers -----------------------------------------------
def _layernorm(x, gamma, beta, eps=LN_EPS):
    mu = jnp.mean(x, axis=-1, keepdims=True)
    var = jnp.mean((x - mu) ** 2, axis=-1, keepdims=True)
    return (x - mu) * jax.lax.rsqrt(var + eps) * gamma + beta


# ---------------- fully fused model kernel (grid = (LAYERS,)) ----------------------
def kg_encoder_kernel(
    e1_ref, e2_ref,                                           # scalar prefetch (SMEM)
    emb_ref, mask_ref, embg_ref, embb_ref,
    wqkv_ref, bqkv_ref, wo_ref, bo_ref, ln1g_ref, ln1b_ref,
    w1_ref, b1_ref, w2_ref, b2_ref, ln2g_ref, ln2b_ref,
    ew1_ref, eb1_ref, eg_ref, ebt_ref, ew2_ref, eb2_ref,
    rw1_ref, rb1_ref, rg_ref, rbt_ref, rw2_ref, rb2_ref,
    seq_ref, ent_ref, rel_ref,
):
    layer = pl.program_id(0)
    B, S, H = seq_ref.shape

    # Fold the embedding LayerNorm into the first layer step; the activation then
    # lives in the resident output block for the rest of the layer loop.
    @pl.when(layer == 0)
    def _():
        seq_ref[...] = _layernorm(emb_ref[...], embg_ref[...], embb_ref[...])

    x = seq_ref[...].reshape(B * S, H)        # (B*S, H) fp32, resident across layers
    x_bf = x.astype(jnp.bfloat16)

    # ---- attention -----------------------------------------------------------------
    # one packed QKV matmul: (B*S, H) @ (H, 3H) -> (B*S, 3H), fp32 accumulation
    qkv = jnp.dot(x_bf, wqkv_ref[0], preferred_element_type=jnp.float32) + bqkv_ref[0]

    def gather_heads(base):
        # (B*S, 3H) -> (B*HEADS, S, HEAD_DIM); static lane slices + leading-dim split
        return jnp.concatenate(
            [qkv[:, base + h * HEAD_DIM: base + (h + 1) * HEAD_DIM]
             .reshape(B, S, HEAD_DIM) for h in range(HEADS)],
            axis=0).astype(jnp.bfloat16)

    q = gather_heads(0)                        # g index = h*B + b
    k = gather_heads(H)
    v = gather_heads(2 * H)

    scale = 1.0 / math.sqrt(HEAD_DIM)
    s = jnp.einsum("gqd,gkd->gqk", q, k, preferred_element_type=jnp.float32) * scale
    mask3 = mask_ref[...][:, None, :]                             # (B, 1, S) additive
    s = s + jnp.concatenate([mask3] * HEADS, axis=0)              # (B*HEADS, 1, S)

    m = jnp.max(s, axis=-1, keepdims=True)
    e = jnp.exp(s - m)
    p = e * pl.reciprocal(jnp.sum(e, axis=-1, keepdims=True), approx=True)
    ctx = jnp.einsum("gqk,gkd->gqd", p.astype(jnp.bfloat16), v,
                     preferred_element_type=jnp.float32)          # (B*HEADS, S, D)

    # merge heads back to (B*S, H): leading-dim slices + lane concat
    ctx2 = jnp.concatenate(
        [ctx[h * B:(h + 1) * B].reshape(B * S, HEAD_DIM) for h in range(HEADS)],
        axis=-1)

    # single output projection: (B*S, H) @ (H, H)
    attn = jnp.dot(ctx2.astype(jnp.bfloat16), wo_ref[0],
                   preferred_element_type=jnp.float32) + bo_ref[0]
    x = _layernorm(x + attn, ln1g_ref[0], ln1b_ref[0])            # post-LN (BERT/RoBERTa)

    # ---- FFN -------------------------------------------------------------------------
    h1 = jnp.dot(x.astype(jnp.bfloat16), w1_ref[0],
                 preferred_element_type=jnp.float32) + b1_ref[0]
    # TODO(synk): PyTorch nn.GELU defaults to exact erf GELU; tanh approximation here.
    h1 = jax.nn.gelu(h1, approximate=True)
    ffn = jnp.dot(h1.astype(jnp.bfloat16), w2_ref[0],
                  preferred_element_type=jnp.float32) + b2_ref[0]
    out = _layernorm(x + ffn, ln2g_ref[0], ln2b_ref[0])
    seq_ref[...] = out.reshape(B, S, H)

    # ---- classifier heads fused into the last layer step ------------------------------
    @pl.when(layer == pl.num_programs(0) - 1)
    def _():
        def head(xh, w1, b1, g, bt, w2, b2):
            # Sequential(Linear, LayerNorm, ReLU, Dropout(eval=id), Linear); bf16 matmuls
            z = jnp.dot(xh.astype(jnp.bfloat16), w1,
                        preferred_element_type=jnp.float32) + b1
            z = _layernorm(z, g, bt)
            z = jnp.maximum(z, 0.0)
            return jnp.dot(z.astype(jnp.bfloat16), w2,
                           preferred_element_type=jnp.float32) + b2

        # gather entity rows from the resident final activation (dynamic sublane slice)
        e1r = jnp.concatenate(
            [seq_ref[b, pl.ds(e1_ref[b], 1), :] for b in range(B)], axis=0)   # (B, H)
        e2r = jnp.concatenate(
            [seq_ref[b, pl.ds(e2_ref[b], 1), :] for b in range(B)], axis=0)   # (B, H)

        ent_x = jnp.concatenate([e1r, e2r], axis=0)       # (2B, H)  shared-weight stack
        rel_x = jnp.concatenate([e1r, e2r], axis=-1)      # (B, 2H)

        ent_ref[...] = head(ent_x, ew1_ref[...], eb1_ref[...], eg_ref[...],
                            ebt_ref[...], ew2_ref[...], eb2_ref[...])
        rel_ref[...] = head(rel_x, rw1_ref[...], rb1_ref[...], rg_ref[...],
                            rbt_ref[...], rw2_ref[...], rb2_ref[...])


def pallas_kg_bert(emb, mask_bias, e1_pos, e2_pos, params):
    B, S, H = emb.shape
    enc = params["enc"]
    layer_names = ["wqkv", "bqkv", "wo", "bo", "ln1_g", "ln1_b",
                   "w1", "b1", "w2", "b2", "ln2_g", "ln2_b"]
    layer_w = [enc[n] for n in layer_names]

    ec, rc = params["entity_classifier"], params["relation_classifier"]
    head_w = [ec["w1"], ec["b1"], ec["ln_g"], ec["ln_b"], ec["w2"], ec["b2"],
              rc["w1"], rc["b1"], rc["ln_g"], rc["ln_b"], rc["w2"], rc["b2"]]

    def layer_spec(shape):   # stacked (LAYERS, ...) weight, indexed by the layer axis
        nd = len(shape)
        return pl.BlockSpec((1,) + tuple(shape[1:]),
                            lambda l, e1, e2, _n=nd: (l,) + (0,) * (_n - 1))

    def const_spec(shape):   # full-array block, constant over the layer axis
        nd = len(shape)
        return pl.BlockSpec(tuple(shape), lambda l, e1, e2, _n=nd: (0,) * _n)

    in_specs = ([const_spec(emb.shape),                 # embeddings (read at layer 0)
                 const_spec(mask_bias.shape),           # additive attention mask
                 const_spec(params["emb_ln_g"].shape),
                 const_spec(params["emb_ln_b"].shape)]
                + [layer_spec(w.shape) for w in layer_w]
                + [const_spec(w.shape) for w in head_w])

    # constant out index maps -> activation / logits stay resident in VMEM across layers
    out_specs = (
        pl.BlockSpec((B, S, H), lambda l, e1, e2: (0, 0, 0)),
        pl.BlockSpec((2 * B, NOUT_PAD), lambda l, e1, e2: (0, 0)),
        pl.BlockSpec((B, NOUT_PAD), lambda l, e1, e2: (0, 0)),
    )

    grid_spec = pltpu.PrefetchScalarGridSpec(
        num_scalar_prefetch=2,
        grid=(LAYERS,),
        in_specs=in_specs,
        out_specs=out_specs,
    )

    return pl.pallas_call(
        kg_encoder_kernel,
        grid_spec=grid_spec,
        out_shape=(jax.ShapeDtypeStruct((B, S, H), jnp.float32),
                   jax.ShapeDtypeStruct((2 * B, NOUT_PAD), jnp.float32),
                   jax.ShapeDtypeStruct((B, NOUT_PAD), jnp.float32)),
        compiler_params=pltpu.CompilerParams(
            dimension_semantics=("arbitrary",)),
    )(e1_pos, e2_pos, emb, mask_bias,
      params["emb_ln_g"], params["emb_ln_b"], *layer_w, *head_w)


# ---------------- parameter init (deterministic, synthetic) ------------------------
def init_params(key):
    def nrm(k, shape, scale=0.02):
        return (scale * jax.random.normal(k, shape)).astype(jnp.float32)

    keys = iter(jax.random.split(key, 16))
    wq = nrm(next(keys), (LAYERS, HIDDEN, HIDDEN))
    wk = nrm(next(keys), (LAYERS, HIDDEN, HIDDEN))
    wv = nrm(next(keys), (LAYERS, HIDDEN, HIDDEN))
    wo = nrm(next(keys), (LAYERS, HIDDEN, HIDDEN))
    w1 = nrm(next(keys), (LAYERS, HIDDEN, INTER))
    w2 = nrm(next(keys), (LAYERS, INTER, HIDDEN))

    enc = {
        # packed QKV weights (L, H, 3H) bf16; columns = [q heads | k heads | v heads]
        "wqkv": jnp.concatenate([wq, wk, wv], axis=-1).astype(jnp.bfloat16),
        "bqkv": jnp.zeros((LAYERS, 1, 3 * HIDDEN), jnp.float32),
        "wo": wo.astype(jnp.bfloat16),
        "bo": jnp.zeros((LAYERS, 1, HIDDEN), jnp.float32),
        "ln1_g": jnp.ones((LAYERS, 1, HIDDEN), jnp.float32),
        "ln1_b": jnp.zeros((LAYERS, 1, HIDDEN), jnp.float32),
        "w1": w1.astype(jnp.bfloat16),
        "b1": jnp.zeros((LAYERS, 1, INTER), jnp.float32),
        "w2": w2.astype(jnp.bfloat16),
        "b2": jnp.zeros((LAYERS, 1, HIDDEN), jnp.float32),
        "ln2_g": jnp.ones((LAYERS, 1, HIDDEN), jnp.float32),
        "ln2_b": jnp.zeros((LAYERS, 1, HIDDEN), jnp.float32),
    }

    def classifier(k, d_in, n_out):
        k1, k2 = jax.random.split(k)
        # final Linear padded to a full 128-lane output block; extra columns are zero
        w2p = jnp.zeros((HIDDEN, NOUT_PAD), jnp.float32).at[:, :n_out].set(
            nrm(k2, (HIDDEN, n_out)))
        return {
            "w1": nrm(k1, (d_in, HIDDEN)).astype(jnp.bfloat16),
            "b1": jnp.zeros((1, HIDDEN), jnp.float32),
            "ln_g": jnp.ones((1, HIDDEN), jnp.float32),
            "ln_b": jnp.zeros((1, HIDDEN), jnp.float32),
            "w2": w2p.astype(jnp.bfloat16),
            "b2": jnp.zeros((1, NOUT_PAD), jnp.float32),
        }

    return {
        "word_emb": nrm(next(keys), (VOCAB, HIDDEN)),
        "pos_emb": nrm(next(keys), (SEQ, HIDDEN)),
        "emb_ln_g": jnp.ones((1, HIDDEN), jnp.float32),
        "emb_ln_b": jnp.zeros((1, HIDDEN), jnp.float32),
        "enc": enc,
        "entity_classifier": classifier(next(keys), HIDDEN, N_ENT),
        "relation_classifier": classifier(next(keys), 2 * HIDDEN, N_REL),
    }


# ---------------- full forward ------------------------------------------------------
def kg_bert_forward(params, input_ids, attention_mask, entity1_pos, entity2_pos):
    B, S = input_ids.shape
    # Embedding lookups are JAX glue; everything else runs inside the fused kernel.
    emb = (params["word_emb"][input_ids] + params["pos_emb"][None, :, :]).astype(jnp.float32)
    mask_bias = (1.0 - attention_mask.astype(jnp.float32)) * -1e9        # (B, S)

    _, ent_pad, rel_pad = pallas_kg_bert(
        emb, mask_bias,
        entity1_pos.astype(jnp.int32), entity2_pos.astype(jnp.int32), params)

    entity1_type_logits = ent_pad[:B, :N_ENT]
    entity2_type_logits = ent_pad[B:, :N_ENT]
    relation_logits = rel_pad[:, :N_REL]
    return entity1_type_logits, entity2_type_logits, relation_logits


# ---------------- main --------------------------------------------------------------
if __name__ == "__main__":
    key = jax.random.PRNGKey(0)
    kp, ki, k1, k2 = jax.random.split(key, 4)

    params = init_params(kp)

    input_ids = jax.random.randint(ki, (BATCH, SEQ), 0, VOCAB, dtype=jnp.int32)
    attention_mask = jnp.concatenate(
        [jnp.ones((BATCH, SEQ - 4), jnp.int32),
         jnp.array([[1, 1, 1, 1], [0, 0, 0, 0]], jnp.int32)], axis=1)   # 2nd seq padded
    entity1_pos = jax.random.randint(k1, (BATCH,), 0, SEQ - 4, dtype=jnp.int32)
    entity2_pos = jax.random.randint(k2, (BATCH,), 0, SEQ - 4, dtype=jnp.int32)

    forward = jax.jit(kg_bert_forward)
    e1_logits, e2_logits, rel_logits = forward(
        params, input_ids, attention_mask, entity1_pos, entity2_pos)
    jax.block_until_ready((e1_logits, e2_logits, rel_logits))

    assert e1_logits.shape == (BATCH, N_ENT)
    assert e2_logits.shape == (BATCH, N_ENT)
    assert rel_logits.shape == (BATCH, N_REL)
    # TODO(synk): real roberta-base (12 layers, H=768, pretrained weights) is replaced by a
    # deterministic synthetic scaled-down encoder with identical forward structure.
    print("KERNEL_OK")
</pallas_src>

<mosaic_0001>
module attributes {stable_mosaic.version = 11 : i64} {
  func.func @kg_encoder_kernel(%arg0: i32, %arg1: memref<2xi32, #tpu.memory_space<smem>>, %arg2: memref<2xi32, #tpu.memory_space<smem>>, %arg3: memref<2x16x64xf32, #tpu.memory_space<vmem>>, %arg4: memref<2x16xf32, #tpu.memory_space<vmem>>, %arg5: memref<1x64xf32, #tpu.memory_space<vmem>>, %arg6: memref<1x64xf32, #tpu.memory_space<vmem>>, %arg7: memref<1x64x192xbf16, #tpu.memory_space<vmem>>, %arg8: memref<1x1x192xf32, #tpu.memory_space<vmem>>, %arg9: memref<1x64x64xbf16, #tpu.memory_space<vmem>>, %arg10: memref<1x1x64xf32, #tpu.memory_space<vmem>>, %arg11: memref<1x1x64xf32, #tpu.memory_space<vmem>>, %arg12: memref<1x1x64xf32, #tpu.memory_space<vmem>>, %arg13: memref<1x64x256xbf16, #tpu.memory_space<vmem>>, %arg14: memref<1x1x256xf32, #tpu.memory_space<vmem>>, %arg15: memref<1x256x64xbf16, #tpu.memory_space<vmem>>, %arg16: memref<1x1x64xf32, #tpu.memory_space<vmem>>, %arg17: memref<1x1x64xf32, #tpu.memory_space<vmem>>, %arg18: memref<1x1x64xf32, #tpu.memory_space<vmem>>, %arg19: memref<64x64xbf16, #tpu.memory_space<vmem>>, %arg20: memref<1x64xf32, #tpu.memory_space<vmem>>, %arg21: memref<1x64xf32, #tpu.memory_space<vmem>>, %arg22: memref<1x64xf32, #tpu.memory_space<vmem>>, %arg23: memref<64x128xbf16, #tpu.memory_space<vmem>>, %arg24: memref<1x128xf32, #tpu.memory_space<vmem>>, %arg25: memref<128x64xbf16, #tpu.memory_space<vmem>>, %arg26: memref<1x64xf32, #tpu.memory_space<vmem>>, %arg27: memref<1x64xf32, #tpu.memory_space<vmem>>, %arg28: memref<1x64xf32, #tpu.memory_space<vmem>>, %arg29: memref<64x128xbf16, #tpu.memory_space<vmem>>, %arg30: memref<1x128xf32, #tpu.memory_space<vmem>>, %arg31: memref<2x16x64xf32, #tpu.memory_space<vmem>>, %arg32: memref<4x128xf32, #tpu.memory_space<vmem>>, %arg33: memref<2x128xf32, #tpu.memory_space<vmem>>) attributes {dimension_semantics = [#tpu.dimension_semantics<arbitrary>], iteration_bounds = array<i64: 2>, scalar_prefetch = 2 : i64, scratch_operands = 0 : i64, tpu.core_type = #tpu.core_type<tc>, window_params = [{pipeline_mode = #tpu.pipeline_mode<synchronous>, transform_indices = @transform_0, window_bounds = array<i64: 2, 16, 64>}, {pipeline_mode = #tpu.pipeline_mode<synchronous>, transform_indices = @transform_1, window_bounds = array<i64: 2, 16>}, {pipeline_mode = #tpu.pipeline_mode<synchronous>, transform_indices = @transform_2, window_bounds = array<i64: 1, 64>}, {pipeline_mode = #tpu.pipeline_mode<synchronous>, transform_indices = @transform_3, window_bounds = array<i64: 1, 64>}, {transform_indices = @transform_4, window_bounds = array<i64: 1, 64, 192>}, {transform_indices = @transform_5, window_bounds = array<i64: 1, 1, 192>}, {transform_indices = @transform_6, window_bounds = array<i64: 1, 64, 64>}, {transform_indices = @transform_7, window_bounds = array<i64: 1, 1, 64>}, {transform_indices = @transform_8, window_bounds = array<i64: 1, 1, 64>}, {transform_indices = @transform_9, window_bounds = array<i64: 1, 1, 64>}, {transform_indices = @transform_10, window_bounds = array<i64: 1, 64, 256>}, {transform_indices = @transform_11, window_bounds = array<i64: 1, 1, 256>}, {transform_indices = @transform_12, window_bounds = array<i64: 1, 256, 64>}, {transform_indices = @transform_13, window_bounds = array<i64: 1, 1, 64>}, {transform_indices = @transform_14, window_bounds = array<i64: 1, 1, 64>}, {transform_indices = @transform_15, window_bounds = array<i64: 1, 1, 64>}, {pipeline_mode = #tpu.pipeline_mode<synchronous>, transform_indices = @transform_16, window_bounds = array<i64: 64, 64>}, {pipeline_mode = #tpu.pipeline_mode<synchronous>, transform_indices = @transform_17, window_bounds = array<i64: 1, 64>}, {pipeline_mode = #tpu.pipeline_mode<synchronous>, transform_indices = @transform_18, window_bounds = array<i64: 1, 64>}, {pipeline_mode = #tpu.pipeline_mode<synchronous>, transform_indices = @transform_19, window_bounds = array<i64: 1, 64>}, {pipeline_mode = #tpu.pipeline_mode<synchronous>, transform_indices = @transform_20, window_bounds = array<i64: 64, 128>}, {pipeline_mode = #tpu.pipeline_mode<synchronous>, transform_indices = @transform_21, window_bounds = array<i64: 1, 128>}, {pipeline_mode = #tpu.pipeline_mode<synchronous>, transform_indices = @transform_22, window_bounds = array<i64: 128, 64>}, {pipeline_mode = #tpu.pipeline_mode<synchronous>, transform_indices = @transform_23, window_bounds = array<i64: 1, 64>}, {pipeline_mode = #tpu.pipeline_mode<synchronous>, transform_indices = @transform_24, window_bounds = array<i64: 1, 64>}, {pipeline_mode = #tpu.pipeline_mode<synchronous>, transform_indices = @transform_25, window_bounds = array<i64: 1, 64>}, {pipeline_mode = #tpu.pipeline_mode<synchronous>, transform_indices = @transform_26, window_bounds = array<i64: 64, 128>}, {pipeline_mode = #tpu.pipeline_mode<synchronous>, transform_indices = @transform_27, window_bounds = array<i64: 1, 128>}, {pipeline_mode = #tpu.pipeline_mode<synchronous>, transform_indices = @transform_28, window_bounds = array<i64: 2, 16, 64>}, {pipeline_mode = #tpu.pipeline_mode<synchronous>, transform_indices = @transform_29, window_bounds = array<i64: 4, 128>}, {pipeline_mode = #tpu.pipeline_mode<synchronous>, transform_indices = @transform_30, window_bounds = array<i64: 2, 128>}]} {
    %c0_i32 = arith.constant 0 : i32
    %0 = arith.cmpi eq, %arg0, %c0_i32 : i32
    %1 = arith.extui %0 : i1 to i32
    %c0_i32_0 = arith.constant 0 : i32
    %2 = arith.cmpi ne, %1, %c0_i32_0 : i32
    scf.if %2 {
      %c0_67 = arith.constant 0 : index
      %c0_68 = arith.constant 0 : index
      %c0_69 = arith.constant 0 : index
      %168 = vector.load %arg3[%c0_67, %c0_68, %c0_69] : memref<2x16x64xf32, #tpu.memory_space<vmem>>, vector<2x16x64xf32>
      %c0_70 = arith.constant 0 : index
      %c0_71 = arith.constant 0 : index
      %169 = vector.load %arg5[%c0_70, %c0_71] : memref<1x64xf32, #tpu.memory_space<vmem>>, vector<1x64xf32>
      %c0_72 = arith.constant 0 : index
      %c0_73 = arith.constant 0 : index
      %170 = vector.load %arg6[%c0_72, %c0_73] : memref<1x64xf32, #tpu.memory_space<vmem>>, vector<1x64xf32>
      %cst_74 = arith.constant dense<0.000000e+00> : vector<2x16xf32>
      %171 = vector.multi_reduction <add>, %168, %cst_74 [2] : vector<2x16x64xf32> to vector<2x16xf32>
      %172 = vector.shape_cast %171 : vector<2x16xf32> to vector<2x16x1xf32>
      %cst_75 = arith.constant 6.400000e+01 : f32
      %173 = vector.broadcast %cst_75 : f32 to vector<2x16x1xf32>
      %174 = arith.divf %172, %173 : vector<2x16x1xf32>
      %175 = vector.broadcast %174 : vector<2x16x1xf32> to vector<2x16x64xf32>
      %176 = arith.subf %168, %175 : vector<2x16x64xf32>
      %177 = arith.mulf %176, %176 : vector<2x16x64xf32>
      %cst_76 = arith.constant dense<0.000000e+00> : vector<2x16xf32>
      %178 = vector.multi_reduction <add>, %177, %cst_76 [2] : vector<2x16x64xf32> to vector<2x16xf32>
      %179 = vector.shape_cast %178 : vector<2x16xf32> to vector<2x16x1xf32>
      %cst_77 = arith.constant 6.400000e+01 : f32
      %180 = vector.broadcast %cst_77 : f32 to vector<2x16x1xf32>
      %181 = arith.divf %179, %180 : vector<2x16x1xf32>
      %182 = vector.broadcast %174 : vector<2x16x1xf32> to vector<2x16x64xf32>
      %183 = arith.subf %168, %182 : vector<2x16x64xf32>
      %cst_78 = arith.constant 9.99999974E-6 : f32
      %184 = vector.broadcast %cst_78 : f32 to vector<2x16x1xf32>
      %185 = arith.addf %181, %184 : vector<2x16x1xf32>
      %186 = math.rsqrt %185 : vector<2x16x1xf32>
      %187 = vector.broadcast %186 : vector<2x16x1xf32> to vector<2x16x64xf32>
      %188 = arith.mulf %183, %187 : vector<2x16x64xf32>
      %189 = vector.shape_cast %169 : vector<1x64xf32> to vector<1x1x64xf32>
      %190 = vector.broadcast %189 : vector<1x1x64xf32> to vector<2x16x64xf32>
      %191 = arith.mulf %188, %190 : vector<2x16x64xf32>
      %192 = vector.shape_cast %170 : vector<1x64xf32> to vector<1x1x64xf32>
      %193 = vector.broadcast %192 : vector<1x1x64xf32> to vector<2x16x64xf32>
      %194 = arith.addf %191, %193 : vector<2x16x64xf32>
      %c0_79 = arith.constant 0 : index
      %c0_80 = arith.constant 0 : index
      %c0_81 = arith.constant 0 : index
      %195 = vector.load %arg31[%c0_79, %c0_80, %c0_81] : memref<2x16x64xf32, #tpu.memory_space<vmem>>, vector<2x16x64xf32>
      tpu.vector_store %arg31[%c0_79, %c0_80, %c0_81], %194 {strides = array<i32>} : memref<2x16x64xf32, #tpu.memory_space<vmem>>, vector<2x16x64xf32>,
    } else {
    }
    %c0 = arith.constant 0 : index
    %c0_1 = arith.constant 0 : index
    %c0_2 = arith.constant 0 : index
    %3 = vector.load %arg31[%c0, %c0_1, %c0_2] : memref<2x16x64xf32, #tpu.memory_space<vmem>>, vector<2x16x64xf32>
    %4 = vector.shape_cast %3 : vector<2x16x64xf32> to vector<32x64xf32>
    %5 = arith.truncf %4 : vector<32x64xf32> to vector<32x64xbf16>
    %c0_3 = arith.constant 0 : index
    %c0_4 = arith.constant 0 : index
    %c0_5 = arith.constant 0 : index
    %6 = vector.load %arg7[%c0_3, %c0_4, %c0_5] : memref<1x64x192xbf16, #tpu.memory_space<vmem>>, vector<1x64x192xbf16>
    %7 = vector.shape_cast %6 : vector<1x64x192xbf16> to vector<64x192xbf16>
    %cst = arith.constant dense<0.000000e+00> : vector<32x192xf32>
    %8 = tpu.matmul %5, %7, %cst {dimension_numbers = #tpu.dot_dimension_numbers<[1], [0], [0], [1], [0, 0, 1, 1], [], []>} : vector<32x64xbf16>, vector<64x192xbf16>, vector<32x192xf32> -> vector<32x192xf32>
    %c0_6 = arith.constant 0 : index
    %c0_7 = arith.constant 0 : index
    %c0_8 = arith.constant 0 : index
    %9 = vector.load %arg8[%c0_6, %c0_7, %c0_8] : memref<1x1x192xf32, #tpu.memory_space<vmem>>, vector<1x1x192xf32>
    %10 = vector.shape_cast %9 : vector<1x1x192xf32> to vector<1x192xf32>
    %11 = vector.broadcast %10 : vector<1x192xf32> to vector<32x192xf32>
    %12 = arith.addf %8, %11 : vector<32x192xf32>
    %13 = vector.extract_strided_slice %12 {offsets = [0, 0], sizes = [32, 16], strides = [1, 1]} : vector<32x192xf32> to vector<32x16xf32>
    %14 = vector.shape_cast %13 : vector<32x16xf32> to vector<2x16x16xf32>
    %15 = vector.extract_strided_slice %12 {offsets = [0, 16], sizes = [32, 16], strides = [1, 1]} : vector<32x192xf32> to vector<32x16xf32>
    %16 = vector.shape_cast %15 : vector<32x16xf32> to vector<2x16x16xf32>
    %17 = vector.extract_strided_slice %12 {offsets = [0, 32], sizes = [32, 16], strides = [1, 1]} : vector<32x192xf32> to vector<32x16xf32>
    %18 = vector.shape_cast %17 : vector<32x16xf32> to vector<2x16x16xf32>
    %19 = vector.extract_strided_slice %12 {offsets = [0, 48], sizes = [32, 16], strides = [1, 1]} : vector<32x192xf32> to vector<32x16xf32>
    %20 = vector.shape_cast %19 : vector<32x16xf32> to vector<2x16x16xf32>
    %21 = tpu.concatenate %14, %16, %18, %20 in 0 : vector<2x16x16xf32>, vector<2x16x16xf32>, vector<2x16x16xf32>, vector<2x16x16xf32> -> vector<8x16x16xf32>
    %22 = arith.truncf %21 : vector<8x16x16xf32> to vector<8x16x16xbf16>
    %23 = vector.extract_strided_slice %12 {offsets = [0, 64], sizes = [32, 16], strides = [1, 1]} : vector<32x192xf32> to vector<32x16xf32>
    %24 = vector.shape_cast %23 : vector<32x16xf32> to vector<2x16x16xf32>
    %25 = vector.extract_strided_slice %12 {offsets = [0, 80], sizes = [32, 16], strides = [1, 1]} : vector<32x192xf32> to vector<32x16xf32>
    %26 = vector.shape_cast %25 : vector<32x16xf32> to vector<2x16x16xf32>
    %27 = vector.extract_strided_slice %12 {offsets = [0, 96], sizes = [32, 16], strides = [1, 1]} : vector<32x192xf32> to vector<32x16xf32>
    %28 = vector.shape_cast %27 : vector<32x16xf32> to vector<2x16x16xf32>
    %29 = vector.extract_strided_slice %12 {offsets = [0, 112], sizes = [32, 16], strides = [1, 1]} : vector<32x192xf32> to vector<32x16xf32>
    %30 = vector.shape_cast %29 : vector<32x16xf32> to vector<2x16x16xf32>
    %31 = tpu.concatenate %24, %26, %28, %30 in 0 : vector<2x16x16xf32>, vector<2x16x16xf32>, vector<2x16x16xf32>, vector<2x16x16xf32> -> vector<8x16x16xf32>
    %32 = arith.truncf %31 : vector<8x16x16xf32> to vector<8x16x16xbf16>
    %33 = vector.extract_strided_slice %12 {offsets = [0, 128], sizes = [32, 16], strides = [1, 1]} : vector<32x192xf32> to vector<32x16xf32>
    %34 = vector.shape_cast %33 : vector<32x16xf32> to vector<2x16x16xf32>
    %35 = vector.extract_strided_slice %12 {offsets = [0, 144], sizes = [32, 16], strides = [1, 1]} : vector<32x192xf32> to vector<32x16xf32>
    %36 = vector.shape_cast %35 : vector<32x16xf32> to vector<2x16x16xf32>
    %37 = vector.extract_strided_slice %12 {offsets = [0, 160], sizes = [32, 16], strides = [1, 1]} : vector<32x192xf32> to vector<32x16xf32>
    %38 = vector.shape_cast %37 : vector<32x16xf32> to vector<2x16x16xf32>
    %39 = vector.extract_strided_slice %12 {offsets = [0, 176], sizes = [32, 16], strides = [1, 1]} : vector<32x192xf32> to vector<32x16xf32>
    %40 = vector.shape_cast %39 : vector<32x16xf32> to vector<2x16x16xf32>
    %41 = tpu.concatenate %34, %36, %38, %40 in 0 : vector<2x16x16xf32>, vector<2x16x16xf32>, vector<2x16x16xf32>, vector<2x16x16xf32> -> vector<8x16x16xf32>
    %42 = arith.truncf %41 : vector<8x16x16xf32> to vector<8x16x16xbf16>
    "tpu.trace_start"() <{level = 10 : i32, message = "gqd,gkd->gqk"}> : () -> ()
    %cst_9 = arith.constant dense<0.000000e+00> : vector<8x16x16xf32>
    %43 = tpu.matmul %22, %32, %cst_9 {dimension_numbers = #tpu.dot_dimension_numbers<[2], [2], [1], [1], [0, 0, 0, 1, 1, 1], [0], [0]>} : vector<8x16x16xbf16>, vector<8x16x16xbf16>, vector<8x16x16xf32> -> vector<8x16x16xf32>
    "tpu.trace_stop"() : () -> ()
    %cst_10 = arith.constant 2.500000e-01 : f32
    %44 = vector.broadcast %cst_10 : f32 to vector<8x16x16xf32>
    %45 = arith.mulf %43, %44 : vector<8x16x16xf32>
    %c0_11 = arith.constant 0 : index
    %c0_12 = arith.constant 0 : index
    %46 = vector.load %arg4[%c0_11, %c0_12] : memref<2x16xf32, #tpu.memory_space<vmem>>, vector<2x16xf32>
    %47 = vector.shape_cast %46 : vector<2x16xf32> to vector<2x1x16xf32>
    %48 = tpu.concatenate %47, %47, %47, %47 in 0 : vector<2x1x16xf32>, vector<2x1x16xf32>, vector<2x1x16xf32>, vector<2x1x16xf32> -> vector<8x1x16xf32>
    %49 = vector.broadcast %48 : vector<8x1x16xf32> to vector<8x16x16xf32>
    %50 = arith.addf %45, %49 : vector<8x16x16xf32>
    %cst_13 = arith.constant dense<0xFF800000> : vector<8x16xf32>
    %51 = vector.multi_reduction <maximumf>, %50, %cst_13 [2] : vector<8x16x16xf32> to vector<8x16xf32>
    %52 = vector.shape_cast %51 : vector<8x16xf32> to vector<8x16x1xf32>
    %53 = vector.broadcast %52 : vector<8x16x1xf32> to vector<8x16x16xf32>
    %54 = arith.subf %50, %53 : vector<8x16x16xf32>
    %55 = math.exp %54 : vector<8x16x16xf32>
    %cst_14 = arith.constant dense<0.000000e+00> : vector<8x16xf32>
    %56 = vector.multi_reduction <add>, %55, %cst_14 [2] : vector<8x16x16xf32> to vector<8x16xf32>
    %57 = vector.shape_cast %56 : vector<8x16xf32> to vector<8x16x1xf32>
    %58 = tpu.reciprocal %57 {approx = true} : vector<8x16x1xf32> -> vector<8x16x1xf32>
    %59 = vector.broadcast %58 : vector<8x16x1xf32> to vector<8x16x16xf32>
    %60 = arith.mulf %55, %59 : vector<8x16x16xf32>
    %61 = arith.truncf %60 : vector<8x16x16xf32> to vector<8x16x16xbf16>
    "tpu.trace_start"() <{level = 10 : i32, message = "gqk,gkd->gqd"}> : () -> ()
    %cst_15 = arith.constant dense<0.000000e+00> : vector<8x16x16xf32>
    %62 = tpu.matmul %61, %42, %cst_15 {dimension_numbers = #tpu.dot_dimension_numbers<[2], [1], [1], [2], [0, 0, 0, 1, 1, 2], [0], [0]>} : vector<8x16x16xbf16>, vector<8x16x16xbf16>, vector<8x16x16xf32> -> vector<8x16x16xf32>
    "tpu.trace_stop"() : () -> ()
    %63 = vector.extract_strided_slice %62 {offsets = [0, 0, 0], sizes = [2, 16, 16], strides = [1, 1, 1]} : vector<8x16x16xf32> to vector<2x16x16xf32>
    %64 = vector.shape_cast %63 : vector<2x16x16xf32> to vector<32x16xf32>
    %65 = vector.extract_strided_slice %62 {offsets = [2, 0, 0], sizes = [2, 16, 16], strides = [1, 1, 1]} : vector<8x16x16xf32> to vector<2x16x16xf32>
    %66 = vector.shape_cast %65 : vector<2x16x16xf32> to vector<32x16xf32>
    %67 = vector.extract_strided_slice %62 {offsets = [4, 0, 0], sizes = [2, 16, 16], strides = [1, 1, 1]} : vector<8x16x16xf32> to vector<2x16x16xf32>
    %68 = vector.shape_cast %67 : vector<2x16x16xf32> to vector<32x16xf32>
    %69 = vector.extract_strided_slice %62 {offsets = [6, 0, 0], sizes = [2, 16, 16], strides = [1, 1, 1]} : vector<8x16x16xf32> to vector<2x16x16xf32>
    %70 = vector.shape_cast %69 : vector<2x16x16xf32> to vector<32x16xf32>
    %71 = tpu.concatenate %64, %66, %68, %70 in 1 : vector<32x16xf32>, vector<32x16xf32>, vector<32x16xf32>, vector<32x16xf32> -> vector<32x64xf32>
    %72 = arith.truncf %71 : vector<32x64xf32> to vector<32x64xbf16>
    %c0_16 = arith.constant 0 : index
    %c0_17 = arith.constant 0 : index
    %c0_18 = arith.constant 0 : index
    %73 = vector.load %arg9[%c0_16, %c0_17, %c0_18] : memref<1x64x64xbf16, #tpu.memory_space<vmem>>, vector<1x64x64xbf16>
    %74 = vector.shape_cast %73 : vector<1x64x64xbf16> to vector<64x64xbf16>
    %cst_19 = arith.constant dense<0.000000e+00> : vector<32x64xf32>
    %75 = tpu.matmul %72, %74, %cst_19 {dimension_numbers = #tpu.dot_dimension_numbers<[1], [0], [0], [1], [0, 0, 1, 1], [], []>} : vector<32x64xbf16>, vector<64x64xbf16>, vector<32x64xf32> -> vector<32x64xf32>
    %c0_20 = arith.constant 0 : index
    %c0_21 = arith.constant 0 : index
    %c0_22 = arith.constant 0 : index
    %76 = vector.load %arg10[%c0_20, %c0_21, %c0_22] : memref<1x1x64xf32, #tpu.memory_space<vmem>>, vector<1x1x64xf32>
    %77 = vector.shape_cast %76 : vector<1x1x64xf32> to vector<1x64xf32>
    %78 = vector.broadcast %77 : vector<1x64xf32> to vector<32x64xf32>
    %79 = arith.addf %75, %78 : vector<32x64xf32>
    %80 = arith.addf %4, %79 : vector<32x64xf32>
    %c0_23 = arith.constant 0 : index
    %c0_24 = arith.constant 0 : index
    %c0_25 = arith.constant 0 : index
    %81 = vector.load %arg11[%c0_23, %c0_24, %c0_25] : memref<1x1x64xf32, #tpu.memory_space<vmem>>, vector<1x1x64xf32>
    %82 = vector.shape_cast %81 : vector<1x1x64xf32> to vector<1x64xf32>
    %c0_26 = arith.constant 0 : index
    %c0_27 = arith.constant 0 : index
    %c0_28 = arith.constant 0 : index
    %83 = vector.load %arg12[%c0_26, %c0_27, %c0_28] : memref<1x1x64xf32, #tpu.memory_space<vmem>>, vector<1x1x64xf32>
    %84 = vector.shape_cast %83 : vector<1x1x64xf32> to vector<1x64xf32>
    %cst_29 = arith.constant dense<0.000000e+00> : vector<32xf32>
    %85 = vector.multi_reduction <add>, %80, %cst_29 [1] : vector<32x64xf32> to vector<32xf32>
    %86 = vector.shape_cast %85 : vector<32xf32> to vector<32x1xf32>
    %cst_30 = arith.constant 6.400000e+01 : f32
    %87 = vector.broadcast %cst_30 : f32 to vector<32x1xf32>
    %88 = arith.divf %86, %87 : vector<32x1xf32>
    %89 = vector.broadcast %88 : vector<32x1xf32> to vector<32x64xf32>
    %90 = arith.subf %80, %89 : vector<32x64xf32>
    %91 = arith.mulf %90, %90 : vector<32x64xf32>
    %cst_31 = arith.constant dense<0.000000e+00> : vector<32xf32>
    %92 = vector.multi_reduction <add>, %91, %cst_31 [1] : vector<32x64xf32> to vector<32xf32>
    %93 = vector.shape_cast %92 : vector<32xf32> to vector<32x1xf32>
    %cst_32 = arith.constant 6.400000e+01 : f32
    %94 = vector.broadcast %cst_32 : f32 to vector<32x1xf32>
    %95 = arith.divf %93, %94 : vector<32x1xf32>
    %96 = vector.broadcast %88 : vector<32x1xf32> to vector<32x64xf32>
    %97 = arith.subf %80, %96 : vector<32x64xf32>
    %cst_33 = arith.constant 9.99999974E-6 : f32
    %98 = vector.broadcast %cst_33 : f32 to vector<32x1xf32>
    %99 = arith.addf %95, %98 : vector<32x1xf32>
    %100 = math.rsqrt %99 : vector<32x1xf32>
    %101 = vector.broadcast %100 : vector<32x1xf32> to vector<32x64xf32>
    %102 = arith.mulf %97, %101 : vector<32x64xf32>
    %103 = vector.broadcast %82 : vector<1x64xf32> to vector<32x64xf32>
    %104 = arith.mulf %102, %103 : vector<32x64xf32>
    %105 = vector.broadcast %84 : vector<1x64xf32> to vector<32x64xf32>
    %106 = arith.addf %104, %105 : vector<32x64xf32>
    %107 = arith.truncf %106 : vector<32x64xf32> to vector<32x64xbf16>
    %c0_34 = arith.constant 0 : index
    %c0_35 = arith.constant 0 : index
    %c0_36 = arith.constant 0 : index
    %108 = vector.load %arg13[%c0_34, %c0_35, %c0_36] : memref<1x64x256xbf16, #tpu.memory_space<vmem>>, vector<1x64x256xbf16>
    %109 = vector.shape_cast %108 : vector<1x64x256xbf16> to vector<64x256xbf16>
    %cst_37 = arith.constant dense<0.000000e+00> : vector<32x256xf32>
    %110 = tpu.matmul %107, %109, %cst_37 {dimension_numbers = #tpu.dot_dimension_numbers<[1], [0], [0], [1], [0, 0, 1, 1], [], []>} : vector<32x64xbf16>, vector<64x256xbf16>, vector<32x256xf32> -> vector<32x256xf32>
    %c0_38 = arith.constant 0 : index
    %c0_39 = arith.constant 0 : index
    %c0_40 = arith.constant 0 : index
    %111 = vector.load %arg14[%c0_38, %c0_39, %c0_40] : memref<1x1x256xf32, #tpu.memory_space<vmem>>, vector<1x1x256xf32>
    %112 = vector.shape_cast %111 : vector<1x1x256xf32> to vector<1x256xf32>
    %113 = vector.broadcast %112 : vector<1x256xf32> to vector<32x256xf32>
    %114 = arith.addf %110, %113 : vector<32x256xf32>
    %115 = arith.mulf %114, %114 : vector<32x256xf32>
    %116 = arith.mulf %114, %115 : vector<32x256xf32>
    %cst_41 = arith.constant 4.471500e-02 : f32
    %117 = vector.broadcast %cst_41 : f32 to vector<32x256xf32>
    %118 = arith.mulf %117, %116 : vector<32x256xf32>
    %119 = arith.addf %114, %118 : vector<32x256xf32>
    %cst_42 = arith.constant 0.797884583 : f32
    %120 = vector.broadcast %cst_42 : f32 to vector<32x256xf32>
    %121 = arith.mulf %120, %119 : vector<32x256xf32>
    %122 = math.tanh %121 : vector<32x256xf32>
    %cst_43 = arith.constant 1.000000e+00 : f32
    %123 = vector.broadcast %cst_43 : f32 to vector<32x256xf32>
    %124 = arith.addf %123, %122 : vector<32x256xf32>
    %cst_44 = arith.constant 5.000000e-01 : f32
    %125 = vector.broadcast %cst_44 : f32 to vector<32x256xf32>
    %126 = arith.mulf %125, %124 : vector<32x256xf32>
    %127 = arith.mulf %114, %126 : vector<32x256xf32>
    %128 = arith.truncf %127 : vector<32x256xf32> to vector<32x256xbf16>
    %c0_45 = arith.constant 0 : index
    %c0_46 = arith.constant 0 : index
    %c0_47 = arith.constant 0 : index
    %129 = vector.load %arg15[%c0_45, %c0_46, %c0_47] : memref<1x256x64xbf16, #tpu.memory_space<vmem>>, vector<1x256x64xbf16>
    %130 = vector.shape_cast %129 : vector<1x256x64xbf16> to vector<256x64xbf16>
    %cst_48 = arith.constant dense<0.000000e+00> : vector<32x64xf32>
    %131 = tpu.matmul %128, %130, %cst_48 {dimension_numbers = #tpu.dot_dimension_numbers<[1], [0], [0], [1], [0, 0, 1, 1], [], []>} : vector<32x256xbf16>, vector<256x64xbf16>, vector<32x64xf32> -> vector<32x64xf32>
    %c0_49 = arith.constant 0 : index
    %c0_50 = arith.constant 0 : index
    %c0_51 = arith.constant 0 : index
    %132 = vector.load %arg16[%c0_49, %c0_50, %c0_51] : memref<1x1x64xf32, #tpu.memory_space<vmem>>, vector<1x1x64xf32>
    %133 = vector.shape_cast %132 : vector<1x1x64xf32> to vector<1x64xf32>
    %134 = vector.broadcast %133 : vector<1x64xf32> to vector<32x64xf32>
    %135 = arith.addf %131, %134 : vector<32x64xf32>
    %136 = arith.addf %106, %135 : vector<32x64xf32>
    %c0_52 = arith.constant 0 : index
    %c0_53 = arith.constant 0 : index
    %c0_54 = arith.constant 0 : index
    %137 = vector.load %arg17[%c0_52, %c0_53, %c0_54] : memref<1x1x64xf32, #tpu.memory_space<vmem>>, vector<1x1x64xf32>
    %138 = vector.shape_cast %137 : vector<1x1x64xf32> to vector<1x64xf32>
    %c0_55 = arith.constant 0 : index
    %c0_56 = arith.constant 0 : index
    %c0_57 = arith.constant 0 : index
    %139 = vector.load %arg18[%c0_55, %c0_56, %c0_57] : memref<1x1x64xf32, #tpu.memory_space<vmem>>, vector<1x1x64xf32>
    %140 = vector.shape_cast %139 : vector<1x1x64xf32> to vector<1x64xf32>
    %cst_58 = arith.constant dense<0.000000e+00> : vector<32xf32>
    %141 = vector.multi_reduction <add>, %136, %cst_58 [1] : vector<32x64xf32> to vector<32xf32>
    %142 = vector.shape_cast %141 : vector<32xf32> to vector<32x1xf32>
    %cst_59 = arith.constant 6.400000e+01 : f32
    %143 = vector.broadcast %cst_59 : f32 to vector<32x1xf32>
    %144 = arith.divf %142, %143 : vector<32x1xf32>
    %145 = vector.broadcast %144 : vector<32x1xf32> to vector<32x64xf32>
    %146 = arith.subf %136, %145 : vector<32x64xf32>
    %147 = arith.mulf %146, %146 : vector<32x64xf32>
    %cst_60 = arith.constant dense<0.000000e+00> : vector<32xf32>
    %148 = vector.multi_reduction <add>, %147, %cst_60 [1] : vector<32x64xf32> to vector<32xf32>
    %149 = vector.shape_cast %148 : vector<32xf32> to vector<32x1xf32>
    %cst_61 = arith.constant 6.400000e+01 : f32
    %150 = vector.broadcast %cst_61 : f32 to vector<32x1xf32>
    %151 = arith.divf %149, %150 : vector<32x1xf32>
    %152 = vector.broadcast %144 : vector<32x1xf32> to vector<32x64xf32>
    %153 = arith.subf %136, %152 : vector<32x64xf32>
    %cst_62 = arith.constant 9.99999974E-6 : f32
    %154 = vector.broadcast %cst_62 : f32 to vector<32x1xf32>
    %155 = arith.addf %151, %154 : vector<32x1xf32>
    %156 = math.rsqrt %155 : vector<32x1xf32>
    %157 = vector.broadcast %156 : vector<32x1xf32> to vector<32x64xf32>
    %158 = arith.mulf %153, %157 : vector<32x64xf32>
    %159 = vector.broadcast %138 : vector<1x64xf32> to vector<32x64xf32>
    %160 = arith.mulf %158, %159 : vector<32x64xf32>
    %161 = vector.broadcast %140 : vector<1x64xf32> to vector<32x64xf32>
    %162 = arith.addf %160, %161 : vector<32x64xf32>
    %163 = vector.shape_cast %162 : vector<32x64xf32> to vector<2x16x64xf32>
    %c0_63 = arith.constant 0 : index
    %c0_64 = arith.constant 0 : index
    %c0_65 = arith.constant 0 : index
    %164 = vector.load %arg31[%c0_63, %c0_64, %c0_65] : memref<2x16x64xf32, #tpu.memory_space<vmem>>, vector<2x16x64xf32>
    tpu.vector_store %arg31[%c0_63, %c0_64, %c0_65], %163 {strides = array<i32>} : memref<2x16x64xf32, #tpu.memory_space<vmem>>, vector<2x16x64xf32>,
    %c1_i32 = arith.constant 1 : i32
    %165 = arith.cmpi eq, %arg0, %c1_i32 : i32
    %166 = arith.extui %165 : i1 to i32
    %c0_i32_66 = arith.constant 0 : i32
    %167 = arith.cmpi ne, %166, %c0_i32_66 : i32
    scf.if %167 {
      %c0_67 = arith.constant 0 : index
      %168 = memref.load %arg1[%c0_67] : memref<2xi32, #tpu.memory_space<smem>>
      %c0_68 = arith.constant 0 : index
      %169 = arith.index_cast %168 : i32 to index
      %c0_69 = arith.constant 0 : index
      %170 = vector.load %arg31[%c0_68, %169, %c0_69] : memref<2x16x64xf32, #tpu.memory_space<vmem>>, vector<1x1x64xf32>
      %171 = vector.shape_cast %170 : vector<1x1x64xf32> to vector<1x64xf32>
      %c1 = arith.constant 1 : index
      %172 = memref.load %arg1[%c1] : memref<2xi32, #tpu.memory_space<smem>>
      %c1_70 = arith.constant 1 : index
      %173 = arith.index_cast %172 : i32 to index
      %c0_71 = arith.constant 0 : index
      %174 = vector.load %arg31[%c1_70, %173, %c0_71] : memref<2x16x64xf32, #tpu.memory_space<vmem>>, vector<1x1x64xf32>
      %175 = vector.shape_cast %174 : vector<1x1x64xf32> to vector<1x64xf32>
      %176 = tpu.concatenate %171, %175 in 0 : vector<1x64xf32>, vector<1x64xf32> -> vector<2x64xf32>
      %c0_72 = arith.constant 0 : index
      %177 = memref.load %arg2[%c0_72] : memref<2xi32, #tpu.memory_space<smem>>
      %c0_73 = arith.constant 0 : index
      %178 = arith.index_cast %177 : i32 to index
      %c0_74 = arith.constant 0 : index
      %179 = vector.load %arg31[%c0_73, %178, %c0_74] : memref<2x16x64xf32, #tpu.memory_space<vmem>>, vector<1x1x64xf32>
      %180 = vector.shape_cast %179 : vector<1x1x64xf32> to vector<1x64xf32>
      %c1_75 = arith.constant 1 : index
      %181 = memref.load %arg2[%c1_75] : memref<2xi32, #tpu.memory_space<smem>>
      %c1_76 = arith.constant 1 : index
      %182 = arith.index_cast %181 : i32 to index
      %c0_77 = arith.constant 0 : index
      %183 = vector.load %arg31[%c1_76, %182, %c0_77] : memref<2x16x64xf32, #tpu.memory_space<vmem>>, vector<1x1x64xf32>
      %184 = vector.shape_cast %183 : vector<1x1x64xf32> to vector<1x64xf32>
      %185 = tpu.concatenate %180, %184 in 0 : vector<1x64xf32>, vector<1x64xf32> -> vector<2x64xf32>
      %186 = tpu.concatenate %176, %185 in 0 : vector<2x64xf32>, vector<2x64xf32> -> vector<4x64xf32>
      %187 = tpu.concatenate %176, %185 in 1 : vector<2x64xf32>, vector<2x64xf32> -> vector<2x128xf32>
      %c0_78 = arith.constant 0 : index
      %c0_79 = arith.constant 0 : index
      %188 = vector.load %arg19[%c0_78, %c0_79] : memref<64x64xbf16, #tpu.memory_space<vmem>>, vector<64x64xbf16>
      %c0_80 = arith.constant 0 : index
      %c0_81 = arith.constant 0 : index
      %189 = vector.load %arg20[%c0_80, %c0_81] : memref<1x64xf32, #tpu.memory_space<vmem>>, vector<1x64xf32>
      %c0_82 = arith.constant 0 : index
      %c0_83 = arith.constant 0 : index
      %190 = vector.load %arg21[%c0_82, %c0_83] : memref<1x64xf32, #tpu.memory_space<vmem>>, vector<1x64xf32>
      %c0_84 = arith.constant 0 : index
      %c0_85 = arith.constant 0 : index
      %191 = vector.load %arg22[%c0_84, %c0_85] : memref<1x64xf32, #tpu.memory_space<vmem>>, vector<1x64xf32>
      %c0_86 = arith.constant 0 : index
      %c0_87 = arith.constant 0 : index
      %192 = vector.load %arg23[%c0_86, %c0_87] : memref<64x128xbf16, #tpu.memory_space<vmem>>, vector<64x128xbf16>
      %c0_88 = arith.constant 0 : index
      %c0_89 = arith.constant 0 : index
      %193 = vector.load %arg24[%c0_88, %c0_89] : memref<1x128xf32, #tpu.memory_space<vmem>>, vector<1x128xf32>
      %194 = arith.truncf %186 : vector<4x64xf32> to vector<4x64xbf16>
      %cst_90 = arith.constant dense<0.000000e+00> : vector<4x64xf32>
      %195 = tpu.matmul %194, %188, %cst_90 {dimension_numbers = #tpu.dot_dimension_numbers<[1], [0], [0], [1], [0, 0, 1, 1], [], []>} : vector<4x64xbf16>, vector<64x64xbf16>, vector<4x64xf32> -> vector<4x64xf32>
      %196 = vector.broadcast %189 : vector<1x64xf32> to vector<4x64xf32>
      %197 = arith.addf %195, %196 : vector<4x64xf32>
      %cst_91 = arith.constant dense<0.000000e+00> : vector<4xf32>
      %198 = vector.multi_reduction <add>, %197, %cst_91 [1] : vector<4x64xf32> to vector<4xf32>
      %199 = vector.shape_cast %198 : vector<4xf32> to vector<4x1xf32>
      %cst_92 = arith.constant 6.400000e+01 : f32
      %200 = vector.broadcast %cst_92 : f32 to vector<4x1xf32>
      %201 = arith.divf %199, %200 : vector<4x1xf32>
      %202 = vector.broadcast %201 : vector<4x1xf32> to vector<4x64xf32>
      %203 = arith.subf %197, %202 : vector<4x64xf32>
      %204 = arith.mulf %203, %203 : vector<4x64xf32>
      %cst_93 = arith.constant dense<0.000000e+00> : vector<4xf32>
      %205 = vector.multi_reduction <add>, %204, %cst_93 [1] : vector<4x64xf32> to vector<4xf32>
      %206 = vector.shape_cast %205 : vector<4xf32> to vector<4x1xf32>
      %cst_94 = arith.constant 6.400000e+01 : f32
      %207 = vector.broadcast %cst_94 : f32 to vector<4x1xf32>
      %208 = arith.divf %206, %207 : vector<4x1xf32>
      %209 = vector.broadcast %201 : vector<4x1xf32> to vector<4x64xf32>
      %210 = arith.subf %197, %209 : vector<4x64xf32>
      %cst_95 = arith.constant 9.99999974E-6 : f32
      %211 = vector.broadcast %cst_95 : f32 to vector<4x1xf32>
      %212 = arith.addf %208, %211 : vector<4x1xf32>
      %213 = math.rsqrt %212 : vector<4x1xf32>
      %214 = vector.broadcast %213 : vector<4x1xf32> to vector<4x64xf32>
      %215 = arith.mulf %210, %214 : vector<4x64xf32>
      %216 = vector.broadcast %190 : vector<1x64xf32> to vector<4x64xf32>
      %217 = arith.mulf %215, %216 : vector<4x64xf32>
      %218 = vector.broadcast %191 : vector<1x64xf32> to vector<4x64xf32>
      %219 = arith.addf %217, %218 : vector<4x64xf32>
      %cst_96 = arith.constant 0.000000e+00 : f32
      %220 = vector.broadcast %cst_96 : f32 to vector<4x64xf32>
      %221 = arith.maximumf %219, %220 : vector<4x64xf32>
      %222 = arith.truncf %221 : vector<4x64xf32> to vector<4x64xbf16>
      %cst_97 = arith.constant dense<0.000000e+00> : vector<4x128xf32>
      %223 = tpu.matmul %222, %192, %cst_97 {dimension_numbers = #tpu.dot_dimension_numbers<[1], [0], [0], [1], [0, 0, 1, 1], [], []>} : vector<4x64xbf16>, vector<64x128xbf16>, vector<4x128xf32> -> vector<4x128xf32>
      %224 = vector.broadcast %193 : vector<1x128xf32> to vector<4x128xf32>
      %225 = arith.addf %223, %224 : vector<4x128xf32>
      %c0_98 = arith.constant 0 : index
      %c0_99 = arith.constant 0 : index
      %226 = vector.load %arg32[%c0_98, %c0_99] : memref<4x128xf32, #tpu.memory_space<vmem>>, vector<4x128xf32>
      tpu.vector_store %arg32[%c0_98, %c0_99], %225 {strides = array<i32>} : memref<4x128xf32, #tpu.memory_space<vmem>>, vector<4x128xf32>,
      %c0_100 = arith.constant 0 : index
      %c0_101 = arith.constant 0 : index
      %227 = vector.load %arg25[%c0_100, %c0_101] : memref<128x64xbf16, #tpu.memory_space<vmem>>, vector<128x64xbf16>
      %c0_102 = arith.constant 0 : index
      %c0_103 = arith.constant 0 : index
      %228 = vector.load %arg26[%c0_102, %c0_103] : memref<1x64xf32, #tpu.memory_space<vmem>>, vector<1x64xf32>
      %c0_104 = arith.constant 0 : index
      %c0_105 = arith.constant 0 : index
      %229 = vector.load %arg27[%c0_104, %c0_105] : memref<1x64xf32, #tpu.memory_space<vmem>>, vector<1x64xf32>
      %c0_106 = arith.constant 0 : index
      %c0_107 = arith.constant 0 : index
      %230 = vector.load %arg28[%c0_106, %c0_107] : memref<1x64xf32, #tpu.memory_space<vmem>>, vector<1x64xf32>
      %c0_108 = arith.constant 0 : index
      %c0_109 = arith.constant 0 : index
      %231 = vector.load %arg29[%c0_108, %c0_109] : memref<64x128xbf16, #tpu.memory_space<vmem>>, vector<64x128xbf16>
      %c0_110 = arith.constant 0 : index
      %c0_111 = arith.constant 0 : index
      %232 = vector.load %arg30[%c0_110, %c0_111] : memref<1x128xf32, #tpu.memory_space<vmem>>, vector<1x128xf32>
      %233 = arith.truncf %187 : vector<2x128xf32> to vector<2x128xbf16>
      %cst_112 = arith.constant dense<0.000000e+00> : vector<2x64xf32>
      %234 = tpu.matmul %233, %227, %cst_112 {dimension_numbers = #tpu.dot_dimension_numbers<[1], [0], [0], [1], [0, 0, 1, 1], [], []>} : vector<2x128xbf16>, vector<128x64xbf16>, vector<2x64xf32> -> vector<2x64xf32>
      %235 = vector.broadcast %228 : vector<1x64xf32> to vector<2x64xf32>
      %236 = arith.addf %234, %235 : vector<2x64xf32>
      %cst_113 = arith.constant dense<0.000000e+00> : vector<2xf32>
      %237 = vector.multi_reduction <add>, %236, %cst_113 [1] : vector<2x64xf32> to vector<2xf32>
      %238 = vector.shape_cast %237 : vector<2xf32> to vector<2x1xf32>
      %cst_114 = arith.constant 6.400000e+01 : f32
      %239 = vector.broadcast %cst_114 : f32 to vector<2x1xf32>
      %240 = arith.divf %238, %239 : vector<2x1xf32>
      %241 = vector.broadcast %240 : vector<2x1xf32> to vector<2x64xf32>
      %242 = arith.subf %236, %241 : vector<2x64xf32>
      %243 = arith.mulf %242, %242 : vector<2x64xf32>
      %cst_115 = arith.constant dense<0.000000e+00> : vector<2xf32>
      %244 = vector.multi_reduction <add>, %243, %cst_115 [1] : vector<2x64xf32> to vector<2xf32>
      %245 = vector.shape_cast %244 : vector<2xf32> to vector<2x1xf32>
      %cst_116 = arith.constant 6.400000e+01 : f32
      %246 = vector.broadcast %cst_116 : f32 to vector<2x1xf32>
      %247 = arith.divf %245, %246 : vector<2x1xf32>
      %248 = vector.broadcast %240 : vector<2x1xf32> to vector<2x64xf32>
      %249 = arith.subf %236, %248 : vector<2x64xf32>
      %cst_117 = arith.constant 9.99999974E-6 : f32
      %250 = vector.broadcast %cst_117 : f32 to vector<2x1xf32>
      %251 = arith.addf %247, %250 : vector<2x1xf32>
      %252 = math.rsqrt %251 : vector<2x1xf32>
      %253 = vector.broadcast %252 : vector<2x1xf32> to vector<2x64xf32>
      %254 = arith.mulf %249, %253 : vector<2x64xf32>
      %255 = vector.broadcast %229 : vector<1x64xf32> to vector<2x64xf32>
      %256 = arith.mulf %254, %255 : vector<2x64xf32>
      %257 = vector.broadcast %230 : vector<1x64xf32> to vector<2x64xf32>
      %258 = arith.addf %256, %257 : vector<2x64xf32>
      %cst_118 = arith.constant 0.000000e+00 : f32
      %259 = vector.broadcast %cst_118 : f32 to vector<2x64xf32>
      %260 = arith.maximumf %258, %259 : vector<2x64xf32>
      %261 = arith.truncf %260 : vector<2x64xf32> to vector<2x64xbf16>
      %cst_119 = arith.constant dense<0.000000e+00> : vector<2x128xf32>
      %262 = tpu.matmul %261, %231, %cst_119 {dimension_numbers = #tpu.dot_dimension_numbers<[1], [0], [0], [1], [0, 0, 1, 1], [], []>} : vector<2x64xbf16>, vector<64x128xbf16>, vector<2x128xf32> -> vector<2x128xf32>
      %263 = vector.broadcast %232 : vector<1x128xf32> to vector<2x128xf32>
      %264 = arith.addf %262, %263 : vector<2x128xf32>
      %c0_120 = arith.constant 0 : index
      %c0_121 = arith.constant 0 : index
      %265 = vector.load %arg33[%c0_120, %c0_121] : memref<2x128xf32, #tpu.memory_space<vmem>>, vector<2x128xf32>
      tpu.vector_store %arg33[%c0_120, %c0_121], %264 {strides = array<i32>} : memref<2x128xf32, #tpu.memory_space<vmem>>, vector<2x128xf32>,
    } else {
    }
    return
  }
  func.func @transform_0(%arg0: i32, %arg1: memref<2xi32, #tpu.memory_space<smem>>, %arg2: memref<2xi32, #tpu.memory_space<smem>>) -> (i32, i32, i32) {
    %c0_i32 = arith.constant 0 : i32
    %c0_i32_0 = arith.constant 0 : i32
    %c0_i32_1 = arith.constant 0 : i32
    %c0_i32_2 = arith.constant 0 : i32
    return %c0_i32, %c0_i32_0, %c0_i32_1 : i32, i32, i32
  }
  func.func @transform_1(%arg0: i32, %arg1: memref<2xi32, #tpu.memory_space<smem>>, %arg2: memref<2xi32, #tpu.memory_space<smem>>) -> (i32, i32) {
    %c0_i32 = arith.constant 0 : i32
    %c0_i32_0 = arith.constant 0 : i32
    %c0_i32_1 = arith.constant 0 : i32
    return %c0_i32, %c0_i32_0 : i32, i32
  }
  func.func @transform_2(%arg0: i32, %arg1: memref<2xi32, #tpu.memory_space<smem>>, %arg2: memref<2xi32, #tpu.memory_space<smem>>) -> (i32, i32) {
    %c0_i32 = arith.constant 0 : i32
    %c0_i32_0 = arith.constant 0 : i32
    %c0_i32_1 = arith.constant 0 : i32
    return %c0_i32, %c0_i32_0 : i32, i32
  }
  func.func @transform_3(%arg0: i32, %arg1: memref<2xi32, #tpu.memory_space<smem>>, %arg2: memref<2xi32, #tpu.memory_space<smem>>) -> (i32, i32) {
    %c0_i32 = arith.constant 0 : i32
    %c0_i32_0 = arith.constant 0 : i32
    %c0_i32_1 = arith.constant 0 : i32
    return %c0_i32, %c0_i32_0 : i32, i32
  }
  func.func @transform_4(%arg0: i32, %arg1: memref<2xi32, #tpu.memory_space<smem>>, %arg2: memref<2xi32, #tpu.memory_space<smem>>) -> (i32, i32, i32) {
    %c0_i32 = arith.constant 0 : i32
    %c0_i32_0 = arith.constant 0 : i32
    %c0_i32_1 = arith.constant 0 : i32
    return %arg0, %c0_i32, %c0_i32_0 : i32, i32, i32
  }
  func.func @transform_5(%arg0: i32, %arg1: memref<2xi32, #tpu.memory_space<smem>>, %arg2: memref<2xi32, #tpu.memory_space<smem>>) -> (i32, i32, i32) {
    %c0_i32 = arith.constant 0 : i32
    %c0_i32_0 = arith.constant 0 : i32
    %c0_i32_1 = arith.constant 0 : i32
    return %arg0, %c0_i32, %c0_i32_0 : i32, i32, i32
  }
  func.func @transform_6(%arg0: i32, %arg1: memref<2xi32, #tpu.memory_space<smem>>, %arg2: memref<2xi32, #tpu.memory_space<smem>>) -> (i32, i32, i32) {
    %c0_i32 = arith.constant 0 : i32
    %c0_i32_0 = arith.constant 0 : i32
    %c0_i32_1 = arith.constant 0 : i32
    return %arg0, %c0_i32, %c0_i32_0 : i32, i32, i32
  }
  func.func @transform_7(%arg0: i32, %arg1: memref<2xi32, #tpu.memory_space<smem>>, %arg2: memref<2xi32, #tpu.memory_space<smem>>) -> (i32, i32, i32) {
    %c0_i32 = arith.constant 0 : i32
    %c0_i32_0 = arith.constant 0 : i32
    %c0_i32_1 = arith.constant 0 : i32
    return %arg0, %c0_i32, %c0_i32_0 : i32, i32, i32
  }
  func.func @transform_8(%arg0: i32, %arg1: memref<2xi32, #tpu.memory_space<smem>>, %arg2: memref<2xi32, #tpu.memory_space<smem>>) -> (i32, i32, i32) {
    %c0_i32 = arith.constant 0 : i32
    %c0_i32_0 = arith.constant 0 : i32
    %c0_i32_1 = arith.constant 0 : i32
    return %arg0, %c0_i32, %c0_i32_0 : i32, i32, i32
  }
  func.func @transform_9(%arg0: i32, %arg1: memref<2xi32, #tpu.memory_space<smem>>, %arg2: memref<2xi32, #tpu.memory_space<smem>>) -> (i32, i32, i32) {
    %c0_i32 = arith.constant 0 : i32
    %c0_i32_0 = arith.constant 0 : i32
    %c0_i32_1 = arith.constant 0 : i32
    return %arg0, %c0_i32, %c0_i32_0 : i32, i32, i32
  }
  func.func @transform_10(%arg0: i32, %arg1: memref<2xi32, #tpu.memory_space<smem>>, %arg2: memref<2xi32, #tpu.memory_space<smem>>) -> (i32, i32, i32) {
    %c0_i32 = arith.constant 0 : i32
    %c0_i32_0 = arith.constant 0 : i32
    %c0_i32_1 = arith.constant 0 : i32
    return %arg0, %c0_i32, %c0_i32_0 : i32, i32, i32
  }
  func.func @transform_11(%arg0: i32, %arg1: memref<2xi32, #tpu.memory_space<smem>>, %arg2: memref<2xi32, #tpu.memory_space<smem>>) -> (i32, i32, i32) {
    %c0_i32 = arith.constant 0 : i32
    %c0_i32_0 = arith.constant 0 : i32
    %c0_i32_1 = arith.constant 0 : i32
    return %arg0, %c0_i32, %c0_i32_0 : i32, i32, i32
  }
  func.func @transform_12(%arg0: i32, %arg1: memref<2xi32, #tpu.memory_space<smem>>, %arg2: memref<2xi32, #tpu.memory_space<smem>>) -> (i32, i32, i32) {
    %c0_i32 = arith.constant 0 : i32
    %c0_i32_0 = arith.constant 0 : i32
    %c0_i32_1 = arith.constant 0 : i32
    return %arg0, %c0_i32, %c0_i32_0 : i32, i32, i32
  }
  func.func @transform_13(%arg0: i32, %arg1: memref<2xi32, #tpu.memory_space<smem>>, %arg2: memref<2xi32, #tpu.memory_space<smem>>) -> (i32, i32, i32) {
    %c0_i32 = arith.constant 0 : i32
    %c0_i32_0 = arith.constant 0 : i32
    %c0_i32_1 = arith.constant 0 : i32
    return %arg0, %c0_i32, %c0_i32_0 : i32, i32, i32
  }
  func.func @transform_14(%arg0: i32, %arg1: memref<2xi32, #tpu.memory_space<smem>>, %arg2: memref<2xi32, #tpu.memory_space<smem>>) -> (i32, i32, i32) {
    %c0_i32 = arith.constant 0 : i32
    %c0_i32_0 = arith.constant 0 : i32
    %c0_i32_1 = arith.constant 0 : i32
    return %arg0, %c0_i32, %c0_i32_0 : i32, i32, i32
  }
  func.func @transform_15(%arg0: i32, %arg1: memref<2xi32, #tpu.memory_space<smem>>, %arg2: memref<2xi32, #tpu.memory_space<smem>>) -> (i32, i32, i32) {
    %c0_i32 = arith.constant 0 : i32
    %c0_i32_0 = arith.constant 0 : i32
    %c0_i32_1 = arith.constant 0 : i32
    return %arg0, %c0_i32, %c0_i32_0 : i32, i32, i32
  }
  func.func @transform_16(%arg0: i32, %arg1: memref<2xi32, #tpu.memory_space<smem>>, %arg2: memref<2xi32, #tpu.memory_space<smem>>) -> (i32, i32) {
    %c0_i32 = arith.constant 0 : i32
    %c0_i32_0 = arith.constant 0 : i32
    %c0_i32_1 = arith.constant 0 : i32
    return %c0_i32, %c0_i32_0 : i32, i32
  }
  func.func @transform_17(%arg0: i32, %arg1: memref<2xi32, #tpu.memory_space<smem>>, %arg2: memref<2xi32, #tpu.memory_space<smem>>) -> (i32, i32) {
    %c0_i32 = arith.constant 0 : i32
    %c0_i32_0 = arith.constant 0 : i32
    %c0_i32_1 = arith.constant 0 : i32
    return %c0_i32, %c0_i32_0 : i32, i32
  }
  func.func @transform_18(%arg0: i32, %arg1: memref<2xi32, #tpu.memory_space<smem>>, %arg2: memref<2xi32, #tpu.memory_space<smem>>) -> (i32, i32) {
    %c0_i32 = arith.constant 0 : i32
    %c0_i32_0 = arith.constant 0 : i32
    %c0_i32_1 = arith.constant 0 : i32
    return %c0_i32, %c0_i32_0 : i32, i32
  }
  func.func @transform_19(%arg0: i32, %arg1: memref<2xi32, #tpu.memory_space<smem>>, %arg2: memref<2xi32, #tpu.memory_space<smem>>) -> (i32, i32) {
    %c0_i32 = arith.constant 0 : i32
    %c0_i32_0 = arith.constant 0 : i32
    %c0_i32_1 = arith.constant 0 : i32
    return %c0_i32, %c0_i32_0 : i32, i32
  }
  func.func @transform_20(%arg0: i32, %arg1: memref<2xi32, #tpu.memory_space<smem>>, %arg2: memref<2xi32, #tpu.memory_space<smem>>) -> (i32, i32) {
    %c0_i32 = arith.constant 0 : i32
    %c0_i32_0 = arith.constant 0 : i32
    %c0_i32_1 = arith.constant 0 : i32
    return %c0_i32, %c0_i32_0 : i32, i32
  }
  func.func @transform_21(%arg0: i32, %arg1: memref<2xi32, #tpu.memory_space<smem>>, %arg2: memref<2xi32, #tpu.memory_space<smem>>) -> (i32, i32) {
    %c0_i32 = arith.constant 0 : i32
    %c0_i32_0 = arith.constant 0 : i32
    %c0_i32_1 = arith.constant 0 : i32
    return %c0_i32, %c0_i32_0 : i32, i32
  }
  func.func @transform_22(%arg0: i32, %arg1: memref<2xi32, #tpu.memory_space<smem>>, %arg2: memref<2xi32, #tpu.memory_space<smem>>) -> (i32, i32) {
    %c0_i32 = arith.constant 0 : i32
    %c0_i32_0 = arith.constant 0 : i32
    %c0_i32_1 = arith.constant 0 : i32
    return %c0_i32, %c0_i32_0 : i32, i32
  }
  func.func @transform_23(%arg0: i32, %arg1: memref<2xi32, #tpu.memory_space<smem>>, %arg2: memref<2xi32, #tpu.memory_space<smem>>) -> (i32, i32) {
    %c0_i32 = arith.constant 0 : i32
    %c0_i32_0 = arith.constant 0 : i32
    %c0_i32_1 = arith.constant 0 : i32
    return %c0_i32, %c0_i32_0 : i32, i32
  }
  func.func @transform_24(%arg0: i32, %arg1: memref<2xi32, #tpu.memory_space<smem>>, %arg2: memref<2xi32, #tpu.memory_space<smem>>) -> (i32, i32) {
    %c0_i32 = arith.constant 0 : i32
    %c0_i32_0 = arith.constant 0 : i32
    %c0_i32_1 = arith.constant 0 : i32
    return %c0_i32, %c0_i32_0 : i32, i32
  }
  func.func @transform_25(%arg0: i32, %arg1: memref<2xi32, #tpu.memory_space<smem>>, %arg2: memref<2xi32, #tpu.memory_space<smem>>) -> (i32, i32) {
    %c0_i32 = arith.constant 0 : i32
    %c0_i32_0 = arith.constant 0 : i32
    %c0_i32_1 = arith.constant 0 : i32
    return %c0_i32, %c0_i32_0 : i32, i32
  }
  func.func @transform_26(%arg0: i32, %arg1: memref<2xi32, #tpu.memory_space<smem>>, %arg2: memref<2xi32, #tpu.memory_space<smem>>) -> (i32, i32) {
    %c0_i32 = arith.constant 0 : i32
    %c0_i32_0 = arith.constant 0 : i32
    %c0_i32_1 = arith.constant 0 : i32
    return %c0_i32, %c0_i32_0 : i32, i32
  }
  func.func @transform_27(%arg0: i32, %arg1: memref<2xi32, #tpu.memory_space<smem>>, %arg2: memref<2xi32, #tpu.memory_space<smem>>) -> (i32, i32) {
    %c0_i32 = arith.constant 0 : i32
    %c0_i32_0 = arith.constant 0 : i32
    %c0_i32_1 = arith.constant 0 : i32
    return %c0_i32, %c0_i32_0 : i32, i32
  }
  func.func @transform_28(%arg0: i32, %arg1: memref<2xi32, #tpu.memory_space<smem>>, %arg2: memref<2xi32, #tpu.memory_space<smem>>) -> (i32, i32, i32) {
    %c0_i32 = arith.constant 0 : i32
    %c0_i32_0 = arith.constant 0 : i32
    %c0_i32_1 = arith.constant 0 : i32
    %c0_i32_2 = arith.constant 0 : i32
    return %c0_i32, %c0_i32_0, %c0_i32_1 : i32, i32, i32
  }
  func.func @transform_29(%arg0: i32, %arg1: memref<2xi32, #tpu.memory_space<smem>>, %arg2: memref<2xi32, #tpu.memory_space<smem>>) -> (i32, i32) {
    %c0_i32 = arith.constant 0 : i32
    %c0_i32_0 = arith.constant 0 : i32
    %c0_i32_1 = arith.constant 0 : i32
    return %c0_i32, %c0_i32_0 : i32, i32
  }
  func.func @transform_30(%arg0: i32, %arg1: memref<2xi32, #tpu.memory_space<smem>>, %arg2: memref<2xi32, #tpu.memory_space<smem>>) -> (i32, i32) {
    %c0_i32 = arith.constant 0 : i32
    %c0_i32_0 = arith.constant 0 : i32
    %c0_i32_1 = arith.constant 0 : i32
    return %c0_i32, %c0_i32_0 : i32, i32
  }
}

</mosaic_0001>

<bundles_post_ra>
// kernel: kg_bert_forward.1
= control target key start
LH: loop header
LB: loop body
LE: loop exit
PB: predicated region body
PF: predicated region fallthrough
CT: control target
= control target key end

     0   :  { %s4126_s6 = smov 2   ;;  %s4127_s10 = smov 3   ;;  %s4935_s0 = inlined_call_operand.smem [shape: u32[33], index: -1, kind: input, shape index: {}] }
   0x1   :  { %s4182_s5 = sld [smem:[%s4935_s0]]   ;;  %s4128_s14 = smov 4  }
   0x2   :  { %s4187_s9 = sld [smem:[%s4935_s0 + %s4126_s6]]   ;;  %s4129_s18 = smov 5  }
   0x3   :  { %s4192_s13 = sld [smem:[%s4935_s0 + %s4127_s10]]   ;;  %s4130_s22 = smov 6  }
   0x4   :  { %s4197_s17 = sld [smem:[%s4935_s0 + %s4128_s14]]   ;;  %s4131_s26 = smov 7  }
   0x5   :  { %s4202_s21 = sld [smem:[%s4935_s0 + %s4129_s18]]   ;;  %s4132_s30 = smov 8  }
   0x6   :  { %s4207_s25 = sld [smem:[%s4935_s0 + %s4130_s22]]   ;;  %s4133_s4 = smov 9  }
   0x7   :  { %s4212_s29 = sld [smem:[%s4935_s0 + %s4131_s26]]   ;;  %s4134_s10 = smov 10  }
   0x8   :  { %s4217_s3 = sld [smem:[%s4935_s0 + %s4132_s30]]   ;;  %s4135_s15 = smov 11  }
   0x9   :  { %4943 = sst [smem:[#allocation12_spill]] %s4192_s13  ;;  %s4136_s20 = smov 12  }
   0xa   :  { %4944 = sst [smem:[#allocation13_spill]] %s4197_s17  ;;  %s4137_s26 = smov 13  }
   0xb   :  { %4945 = sst [smem:[#allocation14_spill]] %s4202_s21  ;;  %s4138_s1 = smov 14  }
   0xc   :  { %s4222_s8 = sld [smem:[%s4935_s0 + %s4133_s4]]   ;;  %s4139_s7 = smov 15  }
   0xd   :  { %s4227_s14 = sld [smem:[%s4935_s0 + %s4134_s10]]   ;;  %s4141_s22 = smov 17  }
   0xe   :  { %s4232_s19 = sld [smem:[%s4935_s0 + %s4135_s15]]   ;;  %s4140_s15 = smov 16  }
   0xf   :  { %s4237_s24 = sld [smem:[%s4935_s0 + %s4136_s20]]   ;;  %s4142_s28 = smov 18  }
  0x10   :  { %s4242_s30 = sld [smem:[%s4935_s0 + %s4137_s26]]   ;;  %s4155_s11 = smov 31  }
  0x11   :  { %s4247_s6 = sld [smem:[%s4935_s0 + %s4138_s1]]   ;;  %s4156_s18 = smov 32  }
  0x12   :  { %s4252_s12 = sld [smem:[%s4935_s0 + %s4139_s7]]   ;;  %s4143_s7 = smov 19  }
  0x13   :  { %s4257_s20 = sld [smem:[%s4935_s0 + %s4140_s15]]   ;;  %s4144_s15 = smov 20  }
  0x14   :  { %s4262_s27 = sld [smem:[%s4935_s0 + %s4141_s22]]   ;;  %s4145_s22 = smov 21  }
  0x15   :  { %s4267_s4 = sld [smem:[%s4935_s0 + %s4142_s28]]   ;;  %s4146_s28 = smov 22  }
  0x16   :  { %s4272_s13 = sld [smem:[%s4935_s0 + %s4143_s7]]   ;;  %s4147_s7 = smov 23  }
  0x17   :  { %s4277_s21 = sld [smem:[%s4935_s0 + %s4144_s15]]   ;;  %s4148_s15 = smov 24  }
  0x18   :  { %s4282_s17 = sld [smem:[%s4935_s0 + %s4145_s22]]   ;;  %s4149_s22 = smov 25  }
  0x19   :  { %s4292_s16 = sld [smem:[%s4935_s0 + %s4147_s7]]   ;;  %s4151_s7 = smov 27  }
  0x1a   :  { %s4297_s23 = sld [smem:[%s4935_s0 + %s4148_s15]]  }
  0x1b   :  { %4946 = sst [smem:[#allocation15_spill]] %s4267_s4 }
  0x1c   :  { %4947 = sst [smem:[#allocation16_spill]] %s4272_s13 }
  0x1d   :  { %4948 = sst [smem:[#allocation17_spill]] %s4277_s21  ;;  %s4152_s21 = smov 28  }
  0x1e   :  { %4949 = sst [smem:[#allocation18_spill]] %s4282_s17 }
  0x1f   :  { %s4287_s4 = sld [smem:[%s4935_s0 + %s4146_s28]]   ;;  %s4150_s28 = smov 26  }
  0x20   :  { %4951 = sst [smem:[#allocation20_spill]] %s4292_s16 }
  0x21   :  { %4952 = sst [smem:[#allocation21_spill]] %s4297_s23 }
  0x22   :  { %s4302_s1 = sld [smem:[%s4935_s0 + %s4149_s22]]   ;;  %s4153_s22 = smov 29  }
  0x23   :  { %s4307_s10 = sld [smem:[%s4935_s0 + %s4150_s28]]   ;;  %s4154_s28 = smov 30  }
  0x24   :  { %s4312_s13 = sld [smem:[%s4935_s0 + %s4151_s7]]   ;;  %s72_s7 = sshll.u32 %s4182_s5, 4  ;;  %s73_s7 = int_to_ptr.vmem [resolvable:$true] %s72_s7 }
  0x25   :  { %4950 = sst [smem:[#allocation19_spill]] %s4287_s4 }
  0x26   :  { %s4317_s17 = sld [smem:[%s4935_s0 + %s4152_s21]]  }
  0x27   :  { %s4322_s4 = sld [smem:[%s4935_s0 + %s4153_s22]]   ;;  %s4028_s22 = sshra.s32 %s73_s7, 4  ;;  %s4029_s22 = int_to_ptr.vmem [resolvable:$true] %s4028_s22 }
  0x28   :  { %4953 = sst [smem:[#allocation22_spill]] %s4302_s1  ;;  %s4030_s26 = scalar_lea.vmem %s4029_s22, 1 }
  0x29   :  { %4954 = sst [smem:[#allocation23_spill]] %s4307_s10  ;;  %p4031_p0 = scmp.ne.s32.totalorder %s4029_s22, %s4030_s26 }
  0x2a   :  { %4955 = sst [smem:[#allocation24_spill]] %s4312_s13  ;;  %s4032_s10 = scalar_lea.vmem %s4182_s5, 1 }
  0x2b   :  { %s4327_s16 = sld [smem:[%s4935_s0 + %s4154_s28]]   ;;  %p4033_p1 = scmp.lt.s32.totalorder %s4029_s22, %s4182_s5 }
  0x2c   :  { %4956 = sst [smem:[#allocation25_spill]] %s4317_s17  ;;  %p4034_p2 = scmp.lt.s32.totalorder %s4032_s10, %s4030_s26 }
  0x2d   :  { %4957 = sst [smem:[#allocation26_spill]] %s4322_s4 }
  0x2e   :  { %s4333_s21 = sld [smem:[%s4935_s0 + %s4155_s11]]   ;;  %p4035_p3 = por %p4034_p2, %p4033_p1 }
  0x2f   :  { %s4338_s1 = sld [smem:[%s4935_s0 + %s4156_s18]]  }
  0x30   :  { %p4036_p4 = pnand %p4035_p3, %p4031_p0 }
  0x31   :  { %4958 = sst [smem:[#allocation27_spill]] %s4327_s16 }
  0x34   :  { %4959 = sst [smem:[#allocation28_spill]] %s4333_s21 }
  0x35   :  { %4960 = sst [smem:[#allocation29_spill]] %s4338_s1 }
  0x36   :  { %4039 = shalt.err (!%p4036_p4)  }
  0x37   :  { %s4157_s13 = smov [#allocation3]   ;;  %s4158_s28 = smov 1  }
  0x38   :  { %75 = dma.vmem_to_smem %s73_s7, 16, %s4157_s13, [#allocation2] }
  0x39   :  { %s3367_s15 = sld [smem:[%s4935_s0 + %s4158_s28]]  }
  0x3f   :  { %s77_s23 = sshll.u32 %s3367_s15, 4  ;;  %s4044_s1 = scalar_lea.vmem %s3367_s15, 1  ;;  %s78_s23 = int_to_ptr.vmem [resolvable:$true] %s77_s23 }
  0x40   :  { %s4040_s17 = sshra.s32 %s78_s23, 4  ;;  %s4041_s17 = int_to_ptr.vmem [resolvable:$true] %s4040_s17 }
  0x41   :  { %s4042_s18 = scalar_lea.vmem %s4041_s17, 1  ;;  %p4045_p6 = scmp.lt.s32.totalorder %s4041_s17, %s3367_s15 }
  0x42   :  { %p4043_p5 = scmp.ne.s32.totalorder %s4041_s17, %s4042_s18  ;;  %p4046_p7 = scmp.lt.s32.totalorder %s4044_s1, %s4042_s18 }
  0x44   :  { %p4047_p8 = por %p4046_p7, %p4045_p6 }
  0x46   :  { %p4048_p9 = pnand %p4047_p8, %p4043_p5 }
  0x48   :  { %4051 = shalt.err (!%p4048_p9)  }
  0x49   :  { %s4159_s5 = smov [#allocation4]  }
  0x4a   :  { %80 = dma.vmem_to_smem %s78_s23, 16, %s4159_s5, [#allocation2] }
  0x4b   :  { %4112 = dma.done.wait [#allocation2], 32 }
  0x4c   :  { %4113 = vsyncadd [#allocation2], 4294967264 }
  0x4d   :  { %83 = sfence }
  0x4e   :  { %84 = vsyncpa [#allocation6], 0 }
  0x4f   :  { %85 = vsyncpa [#allocation8], 0  ;;  %s4345_s0 = smov 0  }
  0x50 LB: > { %4961 = sst [smem:[#allocation30_spill]] %s4124_s0  ;;  %s4351_s7 = sadd.s32 4294967295, %s4124_s0   ;;  %s4124_s0 = sphi %s4345_s0, %s91_s0  }
  0x51   : > { %p3402_p10 = scmp.ge.s32.totalorder %s4124_s0, 1  ;;  %p948_p11 = scmp.lt.s32.totalorder %s4124_s0, 3 }
  0x53   : > { %p949_p12 = pnand %p3402_p10, %p948_p11 }
  0x54   : > { %p1062_p13 = scmp.lt.s32.totalorder (!%p949_p12), %s4351_s7, 1  ;;  %p3413_p0 = scmp.ne.s32.totalorder (!%p949_p12), %s4351_s7, 0 }
  0x55   : > { %952 = sbr.rel (%p949_p12) target bundleno = 3238 (0xca6), region = 132 }
  0x5a   : > { %s4357_s1 = scalar_select %p1062_p13, %s4351_s7, 1 }
  0x5c   : > { %s3678_s22 = sshll.u32 %s4357_s1, 6  ;;  %s3405_s26 = sshll.u32 %s4357_s1, 1 }
  0x5d   : > { %s4362_s10 = scalar_lea.vmem %s4207_s25, %s3678_s22  ;;  %s4365_s13 = scalar_lea.vmem %s4212_s29, %s3405_s26 }
  0x5e   : > { %s3679_s28 = sshll.u32 %s4357_s1, 5  ;;  %s1078_s2 = scalar_lea.vmem %s4222_s8, %s4357_s1 }
  0x5f   : > { %s4371_s11 = scalar_lea.vmem %s4217_s3, %s3679_s28  ;;  %s1081_s15 = scalar_lea.vmem %s4227_s14, %s4357_s1 }
  0x60   : > { %s1084_s23 = scalar_lea.vmem %s4232_s19, %s4357_s1  ;;  %s4378_s17 = scalar_lea.vmem %s4237_s24, %s3678_s22 }
  0x61   : > { %s4381_s18 = scalar_lea.vmem %s4242_s30, %s3405_s26  ;;  %s3681_s5 = sshll.u32 %s4357_s1, 7 }
  0x62   : > { %s4385_s0 = scalar_lea.vmem %s4247_s6, %s3681_s5  ;;  %s1101_s16 = scalar_lea.vmem %s4252_s12, %s4357_s1 }
  0x63   : > { %s1104_s4 = scalar_lea.vmem %s4257_s20, %s4357_s1  ;;  %s1107_s21 = scalar_lea.vmem %s4262_s27, %s4357_s1 }
  0x64   : > { %1112 = sbr.rel (%p3413_p0) target bundleno = 384 (0x180), region = 136  ;;  %s4962_s22 = sld [smem:[#allocation13_spill]] (!%p3413_p0) }
  0x65   : > { %s4963_s26 = sld [smem:[#allocation14_spill]] (!%p3413_p0) }
  0x69   : > { %v1115_v0 = vld [vmem:[%s4187_s9 + $0x10] sm:$0xff]  ;;  %vm1119_vm0 = vcmask 523264   ;;  %v1113_v1 = vld [vmem:[%s4187_s9] sm:$0xff]  ;;  %v1116_v4 = vld [vmem:[%s4187_s9 + $0x18] sm:$0xff]  ;;  %v4160_v8 = vmov 64.0  }
  0x6a   : > { %v1126_v2 = vsel %vm1119_vm0, %v1115_v0, 0.0  ;;  %v1120_v3 = vsel %vm1119_vm0, %v1113_v1, 0.0  ;;  %v1114_v5 = vld [vmem:[%s4187_s9 + $0x8] sm:$0xff]  ;;  %v1129_v6 = vsel %vm1119_vm0, %v1116_v4, 0.0  ;;  %3808 = vrcp.f32 %v4160_v8  ;;  %v3806_v61 = vld [vmem:[%s4962_s22] ss:$0 sm:$0xff] }
  0x6b   : > { %1127 = vadd.xlane.f32.xlu1 %v1126_v2  ;;  %1121 = vadd.xlane.f32.xlu0 %v1120_v3  ;;  %v1123_v7 = vsel %vm1119_vm0, %v1114_v5, 0.0  ;;  %v3807_v2 = vld [vmem:[%s4963_s26] ss:$0 sm:$0xff] }
  0x70   : > { %v3809_v9 = vpop.eup %3808 }
  0x71   : > { %v1133_v10 = vmul.f32 64.0, %v3809_v9  ;;  %vm1137_vm1 = vweird.f32 %v3809_v9 }
  0x73   : > { %1130 = vadd.xlane.f32.xlu1 %v1129_v6  ;;  %1124 = vadd.xlane.f32.xlu0 %v1123_v7  ;;  %v1134_v11 = vsub.f32 1.0, %v1133_v10 }
  0x75   : > { %v1135_v12 = vmul.f32 %v3809_v9, %v1134_v11 }
  0x77   : > { %v1136_v13 = vadd.f32 %v3809_v9, %v1135_v12 }
  0x79   : > { %v1138_v14 = vsel %vm1137_vm1, %v3809_v9, %v1136_v13 }
  0xde   : > { %v1128_v15 = vpop.xlane.xlu1 %1127  ;;  %v1122_v16 = vpop.xlane.xlu0 %1121 }
  0xdf   : > { %v1141_v17 = vmul.f32 %v1138_v14, %v1128_v15  ;;  %v1139_v18 = vmul.f32 %v1138_v14, %v1122_v16 }
  0xe1   : > { %v4402_v19 = vsub.f32 %v1115_v0, %v1141_v17  ;;  %v1143_v20 = vsub.f32 %v1113_v1, %v1139_v18 }
  0xe3   : > { %v1149_v21 = vmul.f32 %v4402_v19, %v4402_v19  ;;  %v1147_v22 = vmul.f32 %v1143_v20, %v1143_v20 }
  0xe5   : > { %v1157_v23 = vsel %vm1119_vm0, %v1149_v21, 0.0  ;;  %v1151_v24 = vsel %vm1119_vm0, %v1147_v22, 0.0 }
  0xe6   : > { %v1131_v25 = vpop.xlane.xlu1 %1130  ;;  %1158 = vadd.xlane.f32.xlu0 %v1157_v23  ;;  %1152 = vadd.xlane.f32.xlu2 %v1151_v24  ;;  %v1125_v26 = vpop.xlane.xlu0 %1124 }
  0xe7   : > { %v1142_v27 = vmul.f32 %v1138_v14, %v1131_v25  ;;  %v1140_v28 = vmul.f32 %v1138_v14, %v1125_v26 }
  0xe9   : > { %v4408_v29 = vsub.f32 %v1116_v4, %v1142_v27  ;;  %v4410_v30 = vsub.f32 %v1114_v5, %v1140_v28 }
  0xeb   : > { %v1150_v31 = vmul.f32 %v4408_v29, %v4408_v29  ;;  %v1148_v32 = vmul.f32 %v4410_v30, %v4410_v30 }
  0xed   : > { %v1160_v33 = vsel %vm1119_vm0, %v1150_v31, 0.0  ;;  %v1154_v34 = vsel %vm1119_vm0, %v1148_v32, 0.0 }
  0xee   : > { %1161 = vadd.xlane.f32.xlu1 %v1160_v33  ;;  %1155 = vadd.xlane.f32.xlu2 %v1154_v34 }
 0x159   : > { %v1153_v35 = vpop.xlane.xlu2 %1152  ;;  %v1159_v36 = vpop.xlane.xlu0 %1158 }
 0x15a   : > { %v1163_v37 = vmul.f32 %v1153_v35, %v1138_v14  ;;  %v1165_v38 = vmul.f32 %v1159_v36, %v1138_v14 }
 0x15c   : > { %v1167_v39 = vadd.f32 1e-05, %v1163_v37  ;;  %v1169_v40 = vadd.f32 1e-05, %v1165_v38 }
 0x15e   : > { %3810 = vrsqrt.f32 %v1167_v39  ;;  %vm1177_vm4 = vweird.f32 %v1167_v39  ;;  %vm1197_vm6 = vweird.f32 %v1169_v40 }
 0x15f   : > { %3812 = vrsqrt.f32 %v1169_v40 }
 0x161   : > { %v1162_v41 = vpop.xlane.xlu1 %1161  ;;  %v1156_v42 = vpop.xlane.xlu2 %1155 }
 0x162   : > { %v1166_v43 = vmul.f32 %v1162_v41, %v1138_v14  ;;  %v1164_v44 = vmul.f32 %v1156_v42, %v1138_v14 }
 0x164   : > { %v3811_v45 = vpop.eup %3810  ;;  %v1170_v46 = vadd.f32 1e-05, %v1166_v43  ;;  %v1168_v47 = vadd.f32 1e-05, %v1164_v44 }
 0x165   : > { %v3813_v48 = vpop.eup %3812  ;;  %v1172_v49 = vmul.f32 %v3811_v45, %v1167_v39  ;;  %vm1178_vm2 = vweird.f32 %v3811_v45 }
 0x166   : > { %v1192_v50 = vmul.f32 %v3813_v48, %v1169_v40  ;;  %3814 = vrsqrt.f32 %v1170_v46  ;;  %vm1198_vm3 = vweird.f32 %v3813_v48  ;;  %vm1179_vm5 = vmor %vm1177_vm4, %vm1178_vm2  ;;  %vm1207_vm10 = vweird.f32 %v1170_v46 }
 0x167   : > { %v1173_v51 = vmul.f32 %v3811_v45, %v1172_v49  ;;  %3816 = vrsqrt.f32 %v1168_v47  ;;  %vm1199_vm7 = vmor %vm1197_vm6, %vm1198_vm3  ;;  %vm1187_vm12 = vweird.f32 %v1168_v47 }
 0x168   : > { %v1193_v52 = vmul.f32 %v3813_v48, %v1192_v50 }
 0x169   : > { %v1174_v53 = vmul.f32 0.5, %v1173_v51 }
 0x16a   : > { %v1194_v54 = vmul.f32 0.5, %v1193_v52 }
 0x16b   : > { %v1175_v55 = vsub.f32 1.5, %v1174_v53 }
 0x16c   : > { %v3815_v56 = vpop.eup %3814  ;;  %v1195_v57 = vsub.f32 1.5, %v1194_v54 }
 0x16d   : > { %v3817_v58 = vpop.eup %3816  ;;  %v1176_v59 = vmul.f32 %v3811_v45, %v1175_v55  ;;  %v1202_v60 = vmul.f32 %v3815_v56, %v1170_v46  ;;  %vm1208_vm8 = vweird.f32 %v3815_v56 }
 0x16e   : > { %v1196_v62 = vmul.f32 %v3813_v48, %v1195_v57  ;;  %v1182_v63 = vmul.f32 %v3817_v58, %v1168_v47  ;;  %vm1188_vm9 = vweird.f32 %v3817_v58  ;;  %vm1209_vm11 = vmor %vm1207_vm10, %vm1208_vm8 }
 0x16f   : > { %v1180_v0 = vsel %vm1179_vm5, %v3811_v45, %v1176_v59  ;;  %v1203_v1 = vmul.f32 %v3815_v56, %v1202_v60  ;;  %vm1189_vm13 = vmor %vm1187_vm12, %vm1188_vm9 }
 0x170   : > { %v1211_v3 = vmul.f32 %v1180_v0, %v1143_v20  ;;  %v1200_v4 = vsel %vm1199_vm7, %v3813_v48, %v1196_v62  ;;  %v1183_v5 = vmul.f32 %v3817_v58, %v1182_v63 }
 0x171   : > { %v1213_v6 = vmul.f32 %v1200_v4, %v4402_v19  ;;  %v1204_v7 = vmul.f32 0.5, %v1203_v1 }
 0x172   : > { %v1218_v8 = vmul.f32 %v3806_v61, %v1211_v3  ;;  %v1184_v9 = vmul.f32 0.5, %v1183_v5 }
 0x173   : > { %v1220_v10 = vmul.f32 %v3806_v61, %v1213_v6  ;;  %v1205_v11 = vsub.f32 1.5, %v1204_v7 }
 0x174   : > { %v1225_v12 = vadd.f32 %v3807_v2, %v1218_v8  ;;  %v1185_v13 = vsub.f32 1.5, %v1184_v9 }
 0x175   : > { %v1227_v14 = vadd.f32 %v3807_v2, %v1220_v10  ;;  %v1206_v15 = vmul.f32 %v3815_v56, %v1205_v11 }
 0x176   : > { %1229 = vst.msk [vmem:[#allocation5] sm:$0xff] %vm1119_vm0, %v1225_v12  ;;  %v1186_v16 = vmul.f32 %v3817_v58, %v1185_v13 }
 0x177   : > { %1231 = vst.msk [vmem:[#allocation5 + $0x10] sm:$0xff] %vm1119_vm0, %v1227_v14  ;;  %v1210_v17 = vsel %vm1209_vm11, %v3815_v56, %v1206_v15 }
 0x178   : > { %v1214_v18 = vmul.f32 %v1210_v17, %v4408_v29  ;;  %v1190_v19 = vsel %vm1189_vm13, %v3817_v58, %v1186_v16 }
 0x179   : > { %v1212_v20 = vmul.f32 %v1190_v19, %v4410_v30 }
 0x17a   : > { %v1221_v21 = vmul.f32 %v3806_v61, %v1214_v18 }
 0x17b   : > { %v1219_v22 = vmul.f32 %v3806_v61, %v1212_v20 }
 0x17c   : > { %v1228_v23 = vadd.f32 %v3807_v2, %v1221_v21 }
 0x17d   : > { %v1226_v24 = vadd.f32 %v3807_v2, %v1219_v22 }
 0x17e   : > { %1232 = vst.msk [vmem:[#allocation5 + $0x18] sm:$0xff] %vm1119_vm0, %v1228_v23 }
 0x17f   : > { %1230 = vst.msk [vmem:[#allocation5 + $0x8] sm:$0xff] %vm1119_vm0, %v1226_v24 }
 0x180 PF: > { %v3440_v25 = vld [vmem:[%s4362_s10 + $0x30] sm:$0xf]  ;;  %v3689_v26 = vld [vmem:[%s4362_s10 + $0x34] sm:$0xf0]  ;;  %v3432_v27 = vld [vmem:[%s4362_s10 + $0x20] sm:$0xf] }
 0x181   : > { %v3441_v28 = vor.u32 %v3689_v26, %v3440_v25  ;;  %v3687_v29 = vld [vmem:[%s4362_s10 + $0x24] sm:$0xf0]  ;;  %v3424_v31 = vld [vmem:[%s4362_s10 + $0x10] sm:$0xf]  ;;  %v3685_v32 = vld [vmem:[%s4362_s10 + $0x14] sm:$0xf0] }
 0x182   : > { %v3433_v30 = vor.u32 %v3687_v29, %v3432_v27  ;;  %v3425_v33 = vor.u32 %v3685_v32, %v3424_v31  ;;  %v3416_v34 = vld [vmem:[%s4362_s10] sm:$0xf]  ;;  %v3683_v35 = vld [vmem:[%s4362_s10 + $0x4] sm:$0xf0]  ;;  %vm1293_vm14 = vcmask 523264   ;;  %v1235_v40 = vld [vmem:[#allocation5 + $0x10] sm:$0xff] }
 0x183   : > { %1304 = vmatpush.bf16.msra.mxu0 %v3441_v28  ;;  %v3417_v36 = vor.u32 %v3683_v35, %v3416_v34  ;;  %v1233_v37 = vld [vmem:[#allocation5] sm:$0xff]  ;;  %v3688_v47 = vld [vmem:[%s4362_s10 + $0x34] sm:$0xf]  ;;  %v3442_v48 = vld [vmem:[%s4362_s10 + $0x38] sm:$0xf0]  ;;  %s4162_s28 = smov 112  }
 0x184   : > { %v4438_v43 = vld [vmem:[%s4365_s13] sm:$0x3]  ;;  %v3686_v49 = vld [vmem:[%s4362_s10 + $0x24] sm:$0xf]  ;;  %v3445_v50 = vor.u32 %v3688_v47, %v3442_v48  ;;  %v3434_v51 = vld [vmem:[%s4362_s10 + $0x28] sm:$0xf0] }
 0x185   : > { %v1236_v41 = vld [vmem:[#allocation5 + $0x18] sm:$0xff]  ;;  %v1249_v45 = vperm.slane %v4438_v43, 0  ;;  %v3437_v53 = vor.u32 %v3686_v49, %v3434_v51  ;;  %v3684_v56 = vld [vmem:[%s4362_s10 + $0x14] sm:$0xf]  ;;  %s4161_s13 = smov 96   ;;  %s4163_s5 = smov 64  }
 0x186   : > { %v1234_v38 = vld [vmem:[#allocation5 + $0x8] sm:$0xff]  ;;  %v1238_v42 = vpack.c.bf16 %v1236_v41, %v1235_v40  ;;  %1323 = vmatpush.bf16.msra.mxu1 %v3445_v50  ;;  %v3426_v57 = vld [vmem:[%s4362_s10 + $0x18] sm:$0xf0]  ;;  %v3682_v63 = vld [vmem:[%s4362_s10 + $0x4] sm:$0xf]  ;;  %s4164_s22 = smov 80  }
 0x187   : > { %1305 = vmatpush.bf16.msra.mxu0 %v3433_v30  ;;  %v1237_v39 = vpack.c.bf16 %v1234_v38, %v1233_v37  ;;  %v3429_v60 = vor.u32 %v3684_v56, %v3426_v57  ;;  %v3418_v0 = vld [vmem:[%s4362_s10 + $0x8] sm:$0xf0]  ;;  %vm1457_vm15 = vcmask 130048   ;;  %s4964_s10 = sld [smem:[#allocation12_spill]]  ;;  %s4165_s26 = smov 16   ;;  %vm2174_vm0 = vcmask 261120  }
 0x188   : > { %v3421_v3 = vor.u32 %v3682_v63, %v3418_v0  ;;  %vm2179_vm1 = vcmask 392192   ;;  %p3584_p1 = scmp.ne.s32.totalorder %s4351_s7, 1 }
 0x189   : > { %s2824_s1 = sld [smem:[#allocation3]] (!%p3584_p1) }
 0x18a   : > { %1324 = vmatpush.bf16.msra.mxu1 %v3437_v53 }
 0x18b   : > { %1306 = vmatpush.bf16.msra.mxu0 %v3425_v33 }
 0x18e   : > { %1325 = vmatpush.bf16.msra.mxu1 %v3429_v60 }
 0x18f   : > { %1307 = vmatpush.bf16.msra.mxu0 %v3417_v36 }
 0x192   : > { %3446 = vmatmul.msk.bf16.vlgmr.msra.gmra.mxu0 %vm1293_vm14, %v1237_v39  ;;  %1326 = vmatpush.bf16.msra.mxu1 %v3421_v3 }
 0x195   : > { %3448 = vmatmul.msk.bf16.vlgmr.msra.gmra.mxu1 %vm1293_vm14, %v1237_v39 }
 0x1a2   : > { %3447 = vmatmul.msk.bf16.gmra.mxu0 %vm1293_vm14, %v1238_v42 }
 0x1a5   : > { %3449 = vmatmul.msk.bf16.gmra.mxu1 %vm1293_vm14, %v1238_v42 }
 0x20f   : > { %v1309_v44 = vpop.f32.mrf.mxu0 }
 0x210   : > { %v1310_v46 = vadd.f32 %v1309_v44, %v1249_v45 }
 0x212   : > { %v1378_v55 = vpack.c.bf16 %v1310_v46, %v1310_v46 }
 0x214   : > { %v1452_v61 = vunpack.c.l.b16 %v1378_v55 }
 0x217   : > { %v1311_v52 = vpop.f32.mrf.mxu0 }
 0x218   : > { %v1312_v54 = vadd.f32 %v1311_v52, %v1249_v45  ;;  %v1328_v52 = vpop.f32.mrf.mxu1 }
 0x21a   : > { %v3828_v58 = vpack.i.bf16 %v1312_v54, %v1310_v46  ;;  %v1379_v59 = vpack.c.bf16 %v1312_v54, %v1312_v54 }
 0x21c   : > { %3829 = vrot.lane.b32.xlu1 %v3828_v58, %s4161_s13  ;;  %3819 = vrot.lane.b32.xlu0 %v3828_v58, %s4162_s28  ;;  %v1453_v62 = vunpack.c.l.b16 %v1379_v59 }
 0x21e   : > { %v1454_v1 = vpack.c.b16 %v1453_v62, %v1452_v61 }
 0x21f   : > { %v1314_v2 = vpop.f32.mrf.mxu0 }
 0x220   : > { %1455 = vrot.lane.b32.xlu2 %v1454_v1, %s4163_s5  ;;  %v1315_v4 = vadd.f32 %v1314_v2, %v1249_v45  ;;  %v1330_v2 = vpop.f32.mrf.mxu1 }
 0x222   : > { %v1380_v7 = vpack.c.bf16 %v1315_v4, %v1315_v4 }
 0x224   : > { %3834 = vrot.lane.b32.xlu1 %v3828_v58, %s4164_s22  ;;  %v1480_v10 = vunpack.c.l.b16 %v1380_v7 }
 0x227   : > { %v1316_v5 = vpop.f32.mrf.mxu0 }
 0x228   : > { %v1317_v6 = vadd.f32 %v1316_v5, %v1249_v45 }
 0x22a   : > { %v3823_v8 = vpack.i.bf16 %v1317_v6, %v1315_v4  ;;  %v1381_v9 = vpack.c.bf16 %v1317_v6, %v1317_v6 }
 0x22c   : > { %3824 = vrot.lane.b32.xlu0 %v3823_v8, %s4162_s28  ;;  %3839 = vrot.lane.b32.xlu2 %v3823_v8, %s4161_s13  ;;  %v1481_v11 = vunpack.c.l.b16 %v1381_v9 }
 0x22e   : > { %v4456_v12 = vpack.c.b16 %v1481_v11, %v1480_v10  ;;  %v1683_v11 = vld [vmem:[%s4964_s10] sm:$0x3]  ;;  %s4969_s10 = sld [smem:[#allocation19_spill]] (!%p3584_p1) }
 0x230   : > { %1483 = vrot.lane.b32.xlu1 %v4456_v12, %s4163_s5 }
 0x234   : > { %3844 = vrot.lane.b32.xlu0 %v3823_v8, %s4164_s22 }
 0x27a   : > { %v1456_v13 = vpop.permute.xlu2 %1455 }
 0x27b   : > { %v1462_v14 = vsel %vm1457_vm15, %v1456_v13, 0 }
 0x27c   : > { %1471 = vmatpush.bf16.xpose.msra.mxu3 %v1462_v14 }
 0x283   : > { %3450 = vmatmul.msk.bf16.vlgmr.msra.gmra.mxu3 %vm1457_vm15, %v1454_v1  ;;  %v1250_v1 = vperm.slane %v4438_v43, 1 }
 0x285   : > { %v1329_v5 = vadd.f32 %v1328_v52, %v1250_v1  ;;  %v1331_v6 = vadd.f32 %v1330_v2, %v1250_v1 }
 0x286   : > { %v3840_v39 = vpop.permute.xlu2 %3839 }
 0x287   : > { %v3842_v44 = vunpack.i.h.bf16 %v3840_v39  ;;  %v3841_v45 = vunpack.i.l.bf16 %v3840_v39  ;;  %v4477_v7 = vpack.i.bf16 %v1331_v6, %v1329_v5  ;;  %v1685_v39 = vrot.slane %v1683_v11, 1 }
 0x289   : > { %v1389_v53 = vpack.c.bf16 %v3842_v44, %v3842_v44  ;;  %v1388_v54 = vpack.c.bf16 %v3841_v45, %v3841_v45 }
 0x28b   : > { %v1589_v59 = vunpack.c.l.b16 %v1389_v53  ;;  %v1588_v60 = vunpack.c.l.b16 %v1388_v54 }
 0x28d   : > { %v1590_v4 = vpack.c.b16 %v1589_v59, %v1588_v60 }
 0x28e   : > { %v3830_v15 = vpop.permute.xlu1 %3829  ;;  %v3820_v16 = vpop.permute.xlu0 %3819 }
 0x28f   : > { %v3832_v17 = vunpack.i.h.bf16 %v3830_v15  ;;  %v3831_v18 = vunpack.i.l.bf16 %v3830_v15  ;;  %v3822_v19 = vunpack.i.h.bf16 %v3820_v16  ;;  %v3821_v20 = vunpack.i.l.bf16 %v3820_v16 }
 0x291   : > { %v1387_v21 = vpack.c.bf16 %v3832_v17, %v3832_v17  ;;  %v1386_v22 = vpack.c.bf16 %v3831_v18, %v3831_v18  ;;  %v1383_v23 = vpack.c.bf16 %v3822_v19, %v3822_v19  ;;  %v1382_v24 = vpack.c.bf16 %v3821_v20, %v3821_v20 }
 0x292   : > { %v1434_v18 = vpack.c.bf16 %v1329_v5, %v1329_v5  ;;  %v1435_v19 = vpack.c.bf16 %v1331_v6, %v1331_v6 }
 0x293   : > { %v1562_v25 = vunpack.c.l.b16 %v1387_v21  ;;  %v1561_v26 = vunpack.c.l.b16 %v1386_v22  ;;  %v1508_v27 = vunpack.c.l.b16 %v1383_v23  ;;  %v1507_v28 = vunpack.c.l.b16 %v1382_v24 }
 0x294   : > { %v1905_v22 = vunpack.c.l.b16 %v1434_v18  ;;  %v1906_v23 = vunpack.c.l.b16 %v1435_v19 }
 0x295   : > { %v4464_v29 = vpack.c.b16 %v1562_v25, %v1561_v26  ;;  %v1509_v30 = vpack.c.b16 %v1508_v27, %v1507_v28 }
 0x296   : > { %v3835_v31 = vpop.permute.xlu1 %3834  ;;  %v1907_v27 = vpack.c.b16 %v1906_v23, %v1905_v22 }
 0x297   : > { %v3837_v32 = vunpack.i.h.bf16 %v3835_v31  ;;  %v3836_v33 = vunpack.i.l.bf16 %v3835_v31  ;;  %1564 = vrot.lane.b32.xlu1 %v4464_v29, %s4163_s5  ;;  %1510 = vrot.lane.b32.xlu2 %v1509_v30, %s4163_s5  ;;  %v1333_v31 = vpop.f32.mrf.mxu1 }
 0x299   : > { %v1391_v34 = vpack.c.bf16 %v3837_v32, %v3837_v32  ;;  %v1390_v35 = vpack.c.bf16 %v3836_v33, %v3836_v33 }
 0x29b   : > { %v1616_v36 = vunpack.c.l.b16 %v1391_v34  ;;  %v1615_v37 = vunpack.c.l.b16 %v1390_v35 }
 0x29d   : > { %v1617_v38 = vpack.c.b16 %v1616_v36, %v1615_v37 }
 0x29e   : > { %v3825_v40 = vpop.permute.xlu0 %3824 }
 0x29f   : > { %v3827_v41 = vunpack.i.h.bf16 %v3825_v40  ;;  %v3826_v42 = vunpack.i.l.bf16 %v3825_v40  ;;  %1618 = vrot.lane.b32.xlu2 %v1617_v38, %s4163_s5  ;;  %v1335_v36 = vpop.f32.mrf.mxu1  ;;  %v4512_v40 = vperm.slane %v1685_v39, 0 }
 0x2a0   : > { %v1336_v37 = vadd.f32 %v1335_v36, %v1250_v1 }
 0x2a1   : > { %v1385_v46 = vpack.c.bf16 %v3827_v41, %v3827_v41  ;;  %v1384_v47 = vpack.c.bf16 %v3826_v42, %v3826_v42 }
 0x2a2   : > { %v1484_v48 = vpop.permute.xlu1 %1483 }
 0x2a3   : > { %v1535_v49 = vunpack.c.l.b16 %v1385_v46  ;;  %v1534_v50 = vunpack.c.l.b16 %v1384_v47  ;;  %v1489_v51 = vsel %vm1457_vm15, %v1484_v48, 0 }
 0x2a4   : > { %1498 = vmatpush.bf16.xpose.msrb.mxu3 %v1489_v51  ;;  %v1437_v51 = vpack.c.bf16 %v1336_v37, %v1336_v37 }
 0x2a5   : > { %v1536_v55 = vpack.c.b16 %v1535_v49, %v1534_v50 }
 0x2a6   : > { %v3845_v56 = vpop.permute.xlu0 %3844 }
 0x2a7   : > { %v3847_v57 = vunpack.i.h.bf16 %v3845_v56  ;;  %v3846_v58 = vunpack.i.l.bf16 %v3845_v56  ;;  %1537 = vrot.lane.b32.xlu0 %v1536_v55, %s4163_s5  ;;  %v1934_v56 = vunpack.c.l.b16 %v1437_v51 }
 0x2a9   : > { %v1393_v61 = vpack.c.bf16 %v3847_v57, %v3847_v57  ;;  %v1392_v62 = vpack.c.bf16 %v3846_v58, %v3846_v58 }
 0x2ab   : > { %v1643_v63 = vunpack.c.l.b16 %v1393_v61  ;;  %v1642_v0 = vunpack.c.l.b16 %v1392_v62  ;;  %3451 = vmatmul.msk.bf16.vlgmr.msrb.gmra.mxu3 %vm1457_vm15, %v4456_v12  ;;  %v4486_v12 = vperm.slane %v1683_v11, 0 }
 0x2ad   : > { %v1644_v3 = vpack.c.b16 %v1643_v63, %v1642_v0 }
 0x2af   : > { %1645 = vrot.lane.b32.xlu1 %v1644_v3, %s4163_s5  ;;  %1591 = vrot.lane.b32.xlu0 %v1590_v4, %s4163_s5  ;;  %s4967_s5 = sld [smem:[#allocation16_spill]] (!%p3584_p1) }
 0x2b7   : > { %3849 = vrot.lane.b32.xlu0 %v4477_v7, %s4162_s28  ;;  %3854 = vrot.lane.b32.xlu1 %v4477_v7, %s4161_s13 }
 0x2f1   : > { %v1511_v8 = vpop.permute.xlu2 %1510 }
 0x2f2   : > { %v1516_v9 = vsel %vm1457_vm15, %v1511_v8, 0 }
 0x2f3   : > { %1525 = vmatpush.bf16.xpose.msra.mxu2 %v1516_v9 }
 0x2f9   : > { %v1619_v43 = vpop.permute.xlu2 %1618 }
 0x2fa   : > { %3452 = vmatmul.msk.bf16.vlgmr.msra.gmra.mxu2 %vm1457_vm15, %v1509_v30  ;;  %v1624_v10 = vsel %vm1457_vm15, %v1619_v43, 0 }
 0x2fb   : > { %1633 = vmatpush.bf16.xpose.msrb.mxu0 %v1624_v10 }
 0x302   : > { %3456 = vmatmul.msk.bf16.vlgmr.msrb.gmra.mxu0 %vm1457_vm15, %v1617_v38 }
 0x306   : > { %v1473_v13 = vpop.f32.mrf.mxu3 }
 0x307   : > { %v1667_v14 = vmul.f32 0.25, %v1473_v13 }
 0x309   : > { %v1565_v15 = vpop.permute.xlu1 %1564  ;;  %v4489_v16 = vadd.f32 %v4486_v12, %v1667_v14 }
 0x30a   : > { %v1570_v17 = vsel %vm1457_vm15, %v1565_v15, 0 }
 0x30b   : > { %1579 = vmatpush.bf16.xpose.msrb.mxu2 %v1570_v17  ;;  %v1706_v20 = vsel %vm1457_vm15, %v4489_v16, -inf }
 0x30c   : > { %1707 = vmax.xlane.f32.xlu2 %v1706_v20 }
 0x30e   : > { %v1475_v21 = vpop.f32.mrf.mxu3 }
 0x30f   : > { %v1668_v24 = vmul.f32 0.25, %v1475_v21 }
 0x311   : > { %v4495_v25 = vadd.f32 %v4486_v12, %v1668_v24 }
 0x312   : > { %3454 = vmatmul.msk.bf16.vlgmr.msrb.gmra.mxu2 %vm1457_vm15, %v4464_v29  ;;  %v1334_v29 = vadd.f32 %v1333_v31, %v1250_v1 }
 0x313   : > { %v1709_v26 = vsel %vm1457_vm15, %v4495_v25, -inf  ;;  %1919 = vmatpush.bf16.msra.mxu2 %v1907_v27 }
 0x314   : > { %1710 = vmax.xlane.f32.xlu0 %v1709_v26  ;;  %v4507_v38 = vpack.i.bf16 %v1336_v37, %v1334_v29  ;;  %v1436_v50 = vpack.c.bf16 %v1334_v29, %v1334_v29 }
 0x316   : > { %3859 = vrot.lane.b32.xlu1 %v4507_v38, %s4162_s28  ;;  %s4167_s28 = smov 48  }
 0x319   : > { %v1538_v28 = vpop.permute.xlu0 %1537 }
 0x31a   : > { %v1543_v30 = vsel %vm1457_vm15, %v1538_v28, 0 }
 0x31b   : > { %1552 = vmatpush.bf16.xpose.msra.mxu3 %v1543_v30 }
 0x321   : > { %v1646_v32 = vpop.permute.xlu1 %1645  ;;  %v1592_v33 = vpop.permute.xlu0 %1591 }
 0x322   : > { %v1597_v34 = vsel %vm1457_vm15, %v1592_v33, 0  ;;  %3453 = vmatmul.msk.bf16.vlgmr.msra.gmra.mxu3 %vm1457_vm15, %v1536_v55  ;;  %v1651_v35 = vsel %vm1457_vm15, %v1646_v32, 0  ;;  %v1933_v55 = vunpack.c.l.b16 %v1436_v50 }
 0x323   : > { %1606 = vmatpush.bf16.xpose.msrb.mxu3 %v1597_v34  ;;  %1660 = vmatpush.bf16.xpose.msrb.mxu1 %v1651_v35 }
 0x324   : > { %v1935_v61 = vpack.c.b16 %v1934_v56, %v1933_v55 }
 0x329   : > { %v3850_v52 = vpop.permute.xlu0 %3849  ;;  %v3855_v9 = vpop.permute.xlu1 %3854 }
 0x32a   : > { %3457 = vmatmul.msk.bf16.vlgmr.msrb.gmra.mxu1 %vm1457_vm15, %v1644_v3  ;;  %v3852_v53 = vunpack.i.h.bf16 %v3850_v52  ;;  %v3851_v54 = vunpack.i.l.bf16 %v3850_v52  ;;  %v3857_v10 = vunpack.i.h.bf16 %v3855_v9  ;;  %v3856_v11 = vunpack.i.l.bf16 %v3855_v9 }
 0x32b   : > { %1947 = vmatpush.bf16.msra.mxu3 %v1935_v61 }
 0x32c   : > { %v1439_v57 = vpack.c.bf16 %v3852_v53, %v3852_v53  ;;  %v1438_v58 = vpack.c.bf16 %v3851_v54, %v3851_v54  ;;  %v1443_v15 = vpack.c.bf16 %v3857_v10, %v3857_v10  ;;  %v1442_v17 = vpack.c.bf16 %v3856_v11, %v3856_v11 }
 0x32e   : > { %v1500_v41 = vpop.f32.mrf.mxu3  ;;  %v1962_v59 = vunpack.c.l.b16 %v1439_v57  ;;  %v1961_v60 = vunpack.c.l.b16 %v1438_v58  ;;  %v2018_v22 = vunpack.c.l.b16 %v1443_v15 }
 0x32f   : > { %v1669_v42 = vmul.f32 0.25, %v1500_v41 }
 0x330   : > { %v1963_v62 = vpack.c.b16 %v1962_v59, %v1961_v60 }
 0x331   : > { %v4515_v44 = vadd.f32 %v4512_v40, %v1669_v42 }
 0x332   : > { %3455 = vmatmul.msk.bf16.vlgmr.msrb.gmra.mxu3 %vm1457_vm15, %v1590_v4  ;;  %1975 = vmatpush.bf16.msra.mxu0 %v1963_v62 }
 0x333   : > { %v1712_v45 = vsel %vm1457_vm15, %v4515_v44, -inf }
 0x334   : > { %1713 = vmax.xlane.f32.xlu2 %v1712_v45 }
 0x336   : > { %v1502_v46 = vpop.f32.mrf.mxu3 }
 0x337   : > { %v1670_v47 = vmul.f32 0.25, %v1502_v46 }
 0x339   : > { %v4521_v48 = vadd.f32 %v4512_v40, %v1670_v47 }
 0x33b   : > { %v1715_v49 = vsel %vm1457_vm15, %v4521_v48, -inf }
 0x33c   : > { %1716 = vmax.xlane.f32.xlu0 %v1715_v49 }
 0x37d   : > { %v1527_v63 = vpop.f32.mrf.mxu2 }
 0x37e   : > { %v1671_v0 = vmul.f32 0.25, %v1527_v63 }
 0x37f   : > { %v1635_v1 = vpop.f32.mrf.mxu0  ;;  %v1708_v3 = vpop.xlane.xlu2 %1707 }
 0x380   : > { %v1679_v2 = vmul.f32 0.25, %v1635_v1  ;;  %v4526_v4 = vadd.f32 %v4486_v12, %v1671_v0  ;;  %v1754_v8 = vsub.f32 %v4489_v16, %v1708_v3  ;;  %v2017_v16 = vunpack.c.l.b16 %v1442_v17 }
 0x382   : > { %v1718_v5 = vsel %vm1457_vm15, %v4526_v4, -inf  ;;  %v4531_v6 = vadd.f32 %v4486_v12, %v1679_v2  ;;  %v1770_v18 = vmul.f32 1.442695, %v1754_v8  ;;  %v2019_v24 = vpack.c.b16 %v2018_v22, %v2017_v16 }
 0x383   : > { %1719 = vmax.xlane.f32.xlu1 %v1718_v5 }
 0x384   : > { %v1742_v43 = vsel %vm1457_vm15, %v4531_v6, -inf  ;;  %3914 = vpow2.f32 %v1770_v18  ;;  %2031 = vmatpush.bf16.msrb.mxu2 %v2019_v24 }
 0x385   : > { %v1529_v13 = vpop.f32.mrf.mxu2  ;;  %1743 = vmax.xlane.f32.xlu2 %v1742_v43 }
 0x386   : > { %v1672_v14 = vmul.f32 0.25, %v1529_v13 }
 0x387   : > { %v1637_v19 = vpop.f32.mrf.mxu0  ;;  %v1711_v41 = vpop.xlane.xlu0 %1710 }
 0x388   : > { %v1680_v20 = vmul.f32 0.25, %v1637_v19  ;;  %v4537_v21 = vadd.f32 %v4486_v12, %v1672_v14  ;;  %v1755_v47 = vsub.f32 %v4495_v25, %v1711_v41 }
 0x38a   : > { %v4540_v23 = vadd.f32 %v4486_v12, %v1680_v20  ;;  %v1721_v26 = vsel %vm1457_vm15, %v4537_v21, -inf  ;;  %v4546_v28 = vpop.eup %3914  ;;  %v1772_v54 = vmul.f32 1.442695, %v1755_v47 }
 0x38b   : > { %v1802_v30 = vsel %vm1457_vm15, %v4546_v28, 0.0 }
 0x38c   : > { %v1745_v27 = vsel %vm1457_vm15, %v4540_v23, -inf  ;;  %3916 = vpow2.f32 %v1772_v54 }
 0x38d   : > { %1722 = vmax.xlane.f32.xlu2 %v1721_v26  ;;  %1746 = vmax.xlane.f32.xlu0 %v1745_v27 }
 0x392   : > { %v4581_v11 = vpop.eup %3916 }
 0x393   : > { %v1805_v15 = vsel %vm1457_vm15, %v4581_v11, 0.0 }
 0x395   : > { %v1581_v31 = vpop.f32.mrf.mxu2  ;;  %1803 = vadd.xlane.f32.xlu2 %v1802_v30 }
 0x396   : > { %v1675_v32 = vmul.f32 0.25, %v1581_v31 }
 0x398   : > { %v4551_v33 = vadd.f32 %v4486_v12, %v1675_v32 }
 0x39a   : > { %v1730_v34 = vsel %vm1457_vm15, %v4551_v33, -inf }
 0x39b   : > { %1731 = vmax.xlane.f32.xlu1 %v1730_v34 }
 0x39d   : > { %v1583_v35 = vpop.f32.mrf.mxu2 }
 0x39e   : > { %v1676_v29 = vmul.f32 0.25, %v1583_v35 }
 0x3a0   : > { %v4556_v36 = vadd.f32 %v4486_v12, %v1676_v29  ;;  %v3860_v12 = vpop.permute.xlu1 %3859 }
 0x3a1   : > { %v3862_v52 = vunpack.i.h.bf16 %v3860_v12  ;;  %v3861_v53 = vunpack.i.l.bf16 %v3860_v12 }
 0x3a2   : > { %v1733_v37 = vsel %vm1457_vm15, %v4556_v36, -inf }
 0x3a3   : > { %1734 = vmax.xlane.f32.xlu2 %v1733_v37  ;;  %v1441_v25 = vpack.c.bf16 %v3862_v52, %v3862_v52  ;;  %v1440_v61 = vpack.c.bf16 %v3861_v53, %v3861_v53 }
 0x3a5   : > { %v1554_v39 = vpop.f32.mrf.mxu3  ;;  %v1990_v0 = vunpack.c.l.b16 %v1441_v25  ;;  %v1989_v2 = vunpack.c.l.b16 %v1440_v61 }
 0x3a6   : > { %v1673_v49 = vmul.f32 0.25, %v1554_v39 }
 0x3a7   : > { %v1662_v42 = vpop.f32.mrf.mxu1  ;;  %v1714_v57 = vpop.xlane.xlu2 %1713  ;;  %v1991_v9 = vpack.c.b16 %v1990_v0, %v1989_v2 }
 0x3a8   : > { %v1681_v45 = vmul.f32 0.25, %v1662_v42  ;;  %v4568_v60 = vadd.f32 %v4512_v40, %v1673_v49  ;;  %v1756_v1 = vsub.f32 %v4515_v44, %v1714_v57 }
 0x3a9   : > { %2003 = vmatpush.bf16.msra.mxu1 %v1991_v9 }
 0x3aa   : > { %v4561_v46 = vadd.f32 %v4512_v40, %v1681_v45  ;;  %v1774_v43 = vmul.f32 1.442695, %v1756_v1 }
 0x3ac   : > { %v1748_v50 = vsel %vm1457_vm15, %v4561_v46, -inf }
 0x3ad   : > { %v1556_v51 = vpop.f32.mrf.mxu3  ;;  %1749 = vmax.xlane.f32.xlu0 %v1748_v50 }
 0x3ae   : > { %v1674_v3 = vmul.f32 0.25, %v1556_v51 }
 0x3af   : > { %v1664_v55 = vpop.f32.mrf.mxu1  ;;  %v1717_v56 = vpop.xlane.xlu0 %1716 }
 0x3b0   : > { %v1682_v58 = vmul.f32 0.25, %v1664_v55  ;;  %v1757_v59 = vsub.f32 %v4521_v48, %v1717_v56  ;;  %v1724_v48 = vsel %vm1457_vm15, %v4568_v60, -inf  ;;  %v4579_v10 = vadd.f32 %v4512_v40, %v1674_v3 }
 0x3b2   : > { %v1776_v62 = vmul.f32 1.442695, %v1757_v59  ;;  %v4571_v63 = vadd.f32 %v4512_v40, %v1682_v58  ;;  %v1727_v14 = vsel %vm1457_vm15, %v4579_v10, -inf }
 0x3b4   : > { %3918 = vpow2.f32 %v1776_v62  ;;  %v1751_v5 = vsel %vm1457_vm15, %v4571_v63, -inf }
 0x3b5   : > { %1752 = vmax.xlane.f32.xlu1 %v1751_v5  ;;  %1725 = vmax.xlane.f32.xlu0 %v1724_v48  ;;  %v1608_v8 = vpop.f32.mrf.mxu3  ;;  %3920 = vpow2.f32 %v1774_v43 }
 0x3b6   : > { %v1677_v16 = vmul.f32 0.25, %v1608_v8 }
 0x3b8   : > { %v4601_v26 = vadd.f32 %v4512_v40, %v1677_v16 }
 0x3ba   : > { %v4583_v44 = vpop.eup %3918  ;;  %v1736_v27 = vsel %vm1457_vm15, %v4601_v26, -inf }
 0x3bb   : > { %v1811_v13 = vsel %vm1457_vm15, %v4583_v44, 0.0  ;;  %v4594_v20 = vpop.eup %3920 }
 0x3bc   : > { %1812 = vadd.xlane.f32.xlu2 %v1811_v13  ;;  %v1808_v24 = vsel %vm1457_vm15, %v4594_v20, 0.0 }
 0x3bd   : > { %1728 = vmax.xlane.f32.xlu1 %v1727_v14  ;;  %v1610_v17 = vpop.f32.mrf.mxu3  ;;  %1806 = vadd.xlane.f32.xlu0 %v1805_v15 }
 0x3be   : > { %v1678_v18 = vmul.f32 0.25, %v1610_v17 }
 0x3c0   : > { %v4592_v19 = vadd.f32 %v4512_v40, %v1678_v18 }
 0x3c2   : > { %v1739_v22 = vsel %vm1457_vm15, %v4592_v19, -inf }
 0x3c4   : > { %1740 = vmax.xlane.f32.xlu2 %v1739_v22 }
 0x3c5   : > { %1809 = vadd.xlane.f32.xlu1 %v1808_v24 }
 0x3cd   : > { %1737 = vmax.xlane.f32.xlu1 %v1736_v27 }
 0x3f6   : > { %v1720_v30 = vpop.xlane.xlu1 %1719 }
 0x3f7   : > { %v1758_v31 = vsub.f32 %v4526_v4, %v1720_v30 }
 0x3f8   : > { %v1744_v32 = vpop.xlane.xlu2 %1743 }
 0x3f9   : > { %v1778_v34 = vmul.f32 1.442695, %v1758_v31  ;;  %v1766_v35 = vsub.f32 %v4531_v6, %v1744_v32 }
 0x3fb   : > { %3922 = vpow2.f32 %v1778_v34  ;;  %v1794_v29 = vmul.f32 1.442695, %v1766_v35 }
 0x3fd   : > { %3924 = vpow2.f32 %v1794_v29 }
 0x400   : > { %v1747_v37 = vpop.xlane.xlu0 %1746  ;;  %v1723_v41 = vpop.xlane.xlu2 %1722 }
 0x401   : > { %v4607_v39 = vpop.eup %3922  ;;  %v1767_v40 = vsub.f32 %v4540_v23, %v1747_v37  ;;  %v1759_v4 = vsub.f32 %v4537_v21, %v1723_v41 }
 0x402   : > { %v1814_v42 = vsel %vm1457_vm15, %v4607_v39, 0.0 }
 0x403   : > { %v4612_v45 = vpop.eup %3924  ;;  %v1796_v47 = vmul.f32 1.442695, %v1767_v40  ;;  %1815 = vadd.xlane.f32.xlu1 %v1814_v42  ;;  %v1780_v49 = vmul.f32 1.442695, %v1759_v4 }
 0x404   : > { %v1838_v6 = vsel %vm1457_vm15, %v4612_v45, 0.0 }
 0x405   : > { %1839 = vadd.xlane.f32.xlu2 %v1838_v6  ;;  %3926 = vpow2.f32 %v1796_v47 }
 0x406   : > { %3928 = vpow2.f32 %v1780_v49 }
 0x408   : > { %v1804_v51 = vpop.xlane.xlu2 %1803 }
 0x40b   : > { %v4617_v50 = vpop.eup %3926 }
 0x40c   : > { %v1841_v23 = vsel %vm1457_vm15, %v4617_v50, 0.0  ;;  %v4622_v54 = vpop.eup %3928 }
 0x40d   : > { %1842 = vadd.xlane.f32.xlu2 %v1841_v23  ;;  %v1817_v21 = vsel %vm1457_vm15, %v4622_v54, 0.0 }
 0x40e   : > { %v1732_v12 = vpop.xlane.xlu1 %1731 }
 0x40f   : > { %v1762_v52 = vsub.f32 %v4551_v33, %v1732_v12 }
 0x411   : > { %v1786_v53 = vmul.f32 1.442695, %v1762_v52 }
 0x413   : > { %3930 = vpow2.f32 %v1786_v53 }
 0x415   : > { %1818 = vadd.xlane.f32.xlu2 %v1817_v21 }
 0x416   : > { %v1735_v55 = vpop.xlane.xlu2 %1734 }
 0x417   : > { %v1763_v56 = vsub.f32 %v4556_v36, %v1735_v55 }
 0x419   : > { %v4627_v57 = vpop.eup %3930  ;;  %v1788_v58 = vmul.f32 1.442695, %v1763_v56 }
 0x41a   : > { %v1826_v59 = vsel %vm1457_vm15, %v4627_v57, 0.0 }
 0x41b   : > { %3932 = vpow2.f32 %v1788_v58  ;;  %1827 = vadd.xlane.f32.xlu1 %v1826_v59 }
 0x41c   : > { %3934 = vrcp.f32 %v1804_v51 }
 0x420   : > { %v4631_v33 = vpop.xlane.xlu0 %1749 }
 0x421   : > { %v4633_v25 = vpop.eup %3932  ;;  %v1768_v23 = vsub.f32 %v4561_v46, %v4631_v33 }
 0x422   : > { %v1829_v61 = vsel %vm1457_vm15, %v4633_v25, 0.0  ;;  %v3935_v48 = vpop.eup %3934 }
 0x423   : > { %1830 = vadd.xlane.f32.xlu2 %v1829_v61  ;;  %v1866_v13 = vmul.f32 %v3935_v48, %v4546_v28  ;;  %v1798_v52 = vmul.f32 1.442695, %v1768_v23 }
 0x425   : > { %v1882_v15 = vpack.c.bf16 %v1866_v13, %v1866_v13 }
 0x427   : > { %v1900_v24 = vunpack.c.l.b16 %v1882_v15 }
 0x428   : > { %v1753_v62 = vpop.xlane.xlu1 %1752  ;;  %v1726_v0 = vpop.xlane.xlu0 %1725 }
 0x429   : > { %v1760_v36 = vsub.f32 %v4568_v60, %v1726_v0  ;;  %v1769_v49 = vsub.f32 %v4571_v63, %v1753_v62 }
 0x42b   : > { %v1782_v1 = vmul.f32 1.442695, %v1760_v36  ;;  %v1800_v51 = vmul.f32 1.442695, %v1769_v49 }
 0x42d   : > { %3936 = vpow2.f32 %v1782_v1 }
 0x42f   : > { %v1813_v2 = vpop.xlane.xlu2 %1812 }
 0x430   : > { %v1729_v3 = vpop.xlane.xlu1 %1728  ;;  %v1807_v5 = vpop.xlane.xlu0 %1806 }
 0x431   : > { %v1761_v8 = vsub.f32 %v4579_v10, %v1729_v3  ;;  %3938 = vrcp.f32 %v1807_v5 }
 0x432   : > { %3940 = vrcp.f32 %v1813_v2 }
 0x433   : > { %v1784_v9 = vmul.f32 1.442695, %v1761_v8  ;;  %v4639_v43 = vpop.eup %3936 }
 0x434   : > { %v1820_v60 = vsel %vm1457_vm15, %v4639_v43, 0.0 }
 0x435   : > { %3942 = vpow2.f32 %v1784_v9  ;;  %1821 = vadd.xlane.f32.xlu0 %v1820_v60 }
 0x437   : > { %v3939_v14 = vpop.eup %3938 }
 0x438   : > { %v1867_v17 = vmul.f32 %v3939_v14, %v4581_v11  ;;  %v1810_v18 = vpop.xlane.xlu1 %1809  ;;  %v3941_v22 = vpop.eup %3940 }
 0x439   : > { %3944 = vrcp.f32 %v1810_v18  ;;  %v1869_v27 = vmul.f32 %v3941_v22, %v4583_v44 }
 0x43a   : > { %v1883_v10 = vpack.c.bf16 %v1867_v17, %v1867_v17 }
 0x43b   : > { %v4645_v16 = vpop.eup %3942  ;;  %v1885_v34 = vpack.c.bf16 %v1869_v27, %v1869_v27 }
 0x43c   : > { %v1901_v30 = vunpack.c.l.b16 %v1883_v10  ;;  %v1823_v28 = vsel %vm1457_vm15, %v4645_v16, 0.0 }
 0x43d   : > { %1824 = vadd.xlane.f32.xlu2 %v1823_v28  ;;  %v1929_v40 = vunpack.c.l.b16 %v1885_v34 }
 0x43e   : > { %v1902_v31 = vpack.c.b16 %v1901_v30, %v1900_v24 }
 0x43f   : > { %v3945_v32 = vpop.eup %3944 }
 0x440   : > { %v1868_v35 = vmul.f32 %v3945_v32, %v4594_v20  ;;  %v1738_v11 = vpop.xlane.xlu1 %1737  ;;  %3458 = vmatmul.msk.bf16.vlgmr.msra.gmra.mxu2 %vm1457_vm15, %v1902_v31 }
 0x441   : > { %v1764_v29 = vsub.f32 %v4601_v26, %v1738_v11  ;;  %v1741_v26 = vpop.xlane.xlu2 %1740 }
 0x442   : > { %v1884_v37 = vpack.c.bf16 %v1868_v35, %v1868_v35  ;;  %v1765_v4 = vsub.f32 %v4592_v19, %v1741_v26 }
 0x443   : > { %v1790_v41 = vmul.f32 1.442695, %v1764_v29 }
 0x444   : > { %v1928_v42 = vunpack.c.l.b16 %v1884_v37  ;;  %v1792_v6 = vmul.f32 1.442695, %v1765_v4 }
 0x445   : > { %3946 = vpow2.f32 %v1790_v41 }
 0x446   : > { %v1930_v44 = vpack.c.b16 %v1929_v40, %v1928_v42  ;;  %3948 = vpow2.f32 %v1792_v6 }
 0x447   : > { %3950 = vpow2.f32 %v1800_v51 }
 0x448   : > { %3459 = vmatmul.msk.bf16.vlgmr.msra.gmra.mxu3 %vm1457_vm15, %v1930_v44  ;;  %3952 = vpow2.f32 %v1798_v52 }
 0x449   : > { %3869 = vrot.lane.b32.xlu0 %v4507_v38, %s4161_s13  ;;  %s4166_s13 = smov 32  }
 0x44b   : > { %v4656_v47 = vpop.eup %3946 }
 0x44c   : > { %v1832_v20 = vsel %vm1457_vm15, %v4656_v47, 0.0  ;;  %v4668_v12 = vpop.eup %3948 }
 0x44d   : > { %1833 = vadd.xlane.f32.xlu1 %v1832_v20  ;;  %v4672_v19 = vpop.eup %3950 }
 0x44e   : > { %v1847_v63 = vsel %vm1457_vm15, %v4672_v19, 0.0 }
 0x455   : > { %3864 = vrot.lane.b32.xlu2 %v4477_v7, %s4164_s22  ;;  %v1835_v7 = vsel %vm1457_vm15, %v4668_v12, 0.0 }
 0x466   : > { %3874 = vrot.lane.b32.xlu1 %v4507_v38, %s4164_s22  ;;  %v4674_v38 = vpop.eup %3952  ;;  %s4968_s22 = sld [smem:[#allocation22_spill]] (!%p3584_p1) }
 0x467   : > { %v1844_v46 = vsel %vm1457_vm15, %v4674_v38, 0.0 }
 0x473   : > { %1836 = vadd.xlane.f32.xlu0 %v1835_v7 }
 0x476   : > { %v1816_v21 = vpop.xlane.xlu1 %1815 }
 0x477   : > { %3954 = vrcp.f32 %v1816_v21 }
 0x478   : > { %v1840_v53 = vpop.xlane.xlu2 %1839 }
 0x47b   : > { %1848 = vadd.xlane.f32.xlu0 %v1847_v63 }
 0x47d   : > { %v3955_v58 = vpop.eup %3954 }
 0x47e   : > { %1845 = vadd.xlane.f32.xlu2 %v1844_v46  ;;  %v1870_v59 = vmul.f32 %v3955_v58, %v4607_v39 }
 0x480   : > { %v1843_v55 = vpop.xlane.xlu2 %1842  ;;  %v1886_v62 = vpack.c.bf16 %v1870_v59, %v1870_v59 }
 0x482   : > { %v1956_v1 = vunpack.c.l.b16 %v1886_v62 }
 0x488   : > { %v1819_v56 = vpop.xlane.xlu2 %1818 }
 0x489   : > { %3956 = vrcp.f32 %v1819_v56 }
 0x48e   : > { %v1828_v33 = vpop.xlane.xlu1 %1827 }
 0x48f   : > { %v3957_v61 = vpop.eup %3956  ;;  %3958 = vrcp.f32 %v1828_v33 }
 0x490   : > { %v1871_v0 = vmul.f32 %v3957_v61, %v4622_v54 }
 0x492   : > { %v1887_v36 = vpack.c.bf16 %v1871_v0, %v1871_v0 }
 0x494   : > { %v1957_v2 = vunpack.c.l.b16 %v1887_v36 }
 0x495   : > { %v3959_v5 = vpop.eup %3958 }
 0x496   : > { %v1831_v3 = vpop.xlane.xlu2 %1830  ;;  %v1958_v48 = vpack.c.b16 %v1957_v2, %v1956_v1  ;;  %v1874_v8 = vmul.f32 %v3959_v5, %v4627_v57 }
 0x497   : > { %3960 = vrcp.f32 %v1831_v3 }
 0x498   : > { %3460 = vmatmul.msk.bf16.vlgmr.msra.gmra.mxu0 %vm1457_vm15, %v1958_v48  ;;  %v1890_v13 = vpack.c.bf16 %v1874_v8, %v1874_v8 }
 0x49a   : > { %v2012_v14 = vunpack.c.l.b16 %v1890_v13 }
 0x49d   : > { %v3961_v9 = vpop.eup %3960 }
 0x49e   : > { %v1875_v39 = vmul.f32 %v3961_v9, %v4633_v25 }
 0x4a0   : > { %v1891_v60 = vpack.c.bf16 %v1875_v39, %v1875_v39 }
 0x4a2   : > { %v2013_v15 = vunpack.c.l.b16 %v1891_v60 }
 0x4a4   : > { %v2014_v54 = vpack.c.b16 %v2013_v15, %v2012_v14 }
 0x4a6   : > { %3462 = vmatmul.msk.bf16.vlgmr.msrb.gmra.mxu2 %vm1457_vm15, %v2014_v54 }
 0x4a8   : > { %v1822_v17 = vpop.xlane.xlu0 %1821 }
 0x4a9   : > { %3962 = vrcp.f32 %v1822_v17 }
 0x4aa   : > { %3964 = vrcp.f32 %v1843_v55 }
 0x4ab   : > { %3966 = vrcp.f32 %v1840_v53 }
 0x4af   : > { %v3963_v22 = vpop.eup %3962 }
 0x4b0   : > { %v1825_v18 = vpop.xlane.xlu2 %1824  ;;  %v3965_v10 = vpop.eup %3964  ;;  %v1872_v57 = vmul.f32 %v3963_v22, %v4639_v43 }
 0x4b1   : > { %3968 = vrcp.f32 %v1825_v18  ;;  %v3967_v24 = vpop.eup %3966  ;;  %v1879_v27 = vmul.f32 %v3965_v10, %v4617_v50 }
 0x4b2   : > { %v1878_v30 = vmul.f32 %v3967_v24, %v4612_v45  ;;  %v1888_v28 = vpack.c.bf16 %v1872_v57, %v1872_v57 }
 0x4b3   : > { %v1895_v11 = vpack.c.bf16 %v1879_v27, %v1879_v27 }
 0x4b4   : > { %v1894_v40 = vpack.c.bf16 %v1878_v30, %v1878_v30  ;;  %v1984_v42 = vunpack.c.l.b16 %v1888_v28 }
 0x4b5   : > { %v2069_v6 = vunpack.c.l.b16 %v1895_v11 }
 0x4b6   : > { %v2068_v51 = vunpack.c.l.b16 %v1894_v40 }
 0x4b7   : > { %v3969_v25 = vpop.eup %3968 }
 0x4b8   : > { %v1873_v31 = vmul.f32 %v3969_v25, %v4645_v16  ;;  %v3865_v32 = vpop.permute.xlu2 %3864  ;;  %v2070_v53 = vpack.c.b16 %v2069_v6, %v2068_v51  ;;  %v3691_v6 = vld [vmem:[%s4371_s11 + $0x8] sm:$0xff] }
 0x4b9   : > { %v3867_v34 = vunpack.i.h.bf16 %v3865_v32  ;;  %v3866_v35 = vunpack.i.l.bf16 %v3865_v32 }
 0x4ba   : > { %v1889_v29 = vpack.c.bf16 %v1873_v31, %v1873_v31 }
 0x4bb   : > { %v1447_v37 = vpack.c.bf16 %v3867_v34, %v3867_v34  ;;  %v1446_v41 = vpack.c.bf16 %v3866_v35, %v3866_v35  ;;  %v3870_v43 = vpop.permute.xlu0 %3869 }
 0x4bc   : > { %v1985_v44 = vunpack.c.l.b16 %v1889_v29  ;;  %v3872_v50 = vunpack.i.h.bf16 %v3870_v43  ;;  %v3871_v4 = vunpack.i.l.bf16 %v3870_v43 }
 0x4bd   : > { %v2074_v20 = vunpack.c.l.b16 %v1447_v37  ;;  %v2073_v26 = vunpack.c.l.b16 %v1446_v41 }
 0x4be   : > { %v1986_v45 = vpack.c.b16 %v1985_v44, %v1984_v42  ;;  %v1445_v23 = vpack.c.bf16 %v3872_v50, %v3872_v50  ;;  %v1444_v16 = vpack.c.bf16 %v3871_v4, %v3871_v4  ;;  %v3693_v50 = vld [vmem:[%s4371_s11 + $0x18] sm:$0xff]  ;;  %v3692_v4 = vld [vmem:[%s4371_s11 + $0x10] sm:$0xff] }
 0x4bf   : > { %v2075_v49 = vpack.c.b16 %v2074_v20, %v2073_v26  ;;  %2232 = vmatpush.bf16.msra.mxu2 %v3693_v50 }
 0x4c0   : > { %3461 = vmatmul.msk.bf16.vlgmr.msra.gmra.mxu1 %vm1457_vm15, %v1986_v45  ;;  %v2046_v52 = vunpack.c.l.b16 %v1445_v23  ;;  %v2045_v7 = vunpack.c.l.b16 %v1444_v16  ;;  %v1834_v46 = vpop.xlane.xlu1 %1833  ;;  %v3690_v45 = vld [vmem:[%s4371_s11] sm:$0xff] }
 0x4c1   : > { %2087 = vmatpush.bf16.msrb.mxu0 %v2075_v49  ;;  %3970 = vrcp.f32 %v1834_v46 }
 0x4c2   : > { %v2047_v63 = vpack.c.b16 %v2046_v52, %v2045_v7 }
 0x4c3   : > { %v1921_v24 = vpop.f32.mrf.mxu2  ;;  %2233 = vmatpush.bf16.msra.mxu2 %v3692_v4 }
 0x4c4   : > { %3464 = vmatmul.msk.bf16.vlgmr.msrb.gmra.mxu0 %vm1457_vm15, %v2070_v53  ;;  %2059 = vmatpush.bf16.msrb.mxu3 %v2047_v63 }
 0x4c7   : > { %v3971_v36 = vpop.eup %3970  ;;  %2234 = vmatpush.bf16.msra.mxu2 %v3691_v6 }
 0x4c8   : > { %v1876_v1 = vmul.f32 %v3971_v36, %v4656_v47 }
 0x4ca   : > { %v1892_v3 = vpack.c.bf16 %v1876_v1, %v1876_v1 }
 0x4cb   : > { %v1923_v30 = vpop.f32.mrf.mxu2  ;;  %v1949_v37 = vpop.f32.mrf.mxu3  ;;  %2235 = vmatpush.bf16.msra.mxu2 %v3690_v45 }
 0x4cc   : > { %v2040_v13 = vunpack.c.l.b16 %v1892_v3 }
 0x4d3   : > { %v1951_v41 = vpop.f32.mrf.mxu3 }
 0x4d8   : > { %v3875_v21 = vpop.permute.xlu1 %3874 }
 0x4d9   : > { %v3877_v55 = vunpack.i.h.bf16 %v3875_v21  ;;  %v3876_v56 = vunpack.i.l.bf16 %v3875_v21 }
 0x4db   : > { %v1449_v58 = vpack.c.bf16 %v3877_v55, %v3877_v55  ;;  %v1448_v59 = vpack.c.bf16 %v3876_v56, %v3876_v56 }
 0x4dd   : > { %v2102_v33 = vunpack.c.l.b16 %v1449_v58  ;;  %v2101_v61 = vunpack.c.l.b16 %v1448_v59 }
 0x4df   : > { %v2103_v62 = vpack.c.b16 %v2102_v33, %v2101_v61 }
 0x4e1   : > { %2115 = vmatpush.bf16.msrb.mxu1 %v2103_v62 }
 0x4e6   : > { %v1837_v0 = vpop.xlane.xlu0 %1836 }
 0x4e7   : > { %3972 = vrcp.f32 %v1837_v0 }
 0x4ed   : > { %v3973_v2 = vpop.eup %3972 }
 0x4ee   : > { %v1877_v5 = vmul.f32 %v3973_v2, %v4668_v12  ;;  %v1849_v48 = vpop.xlane.xlu0 %1848 }
 0x4ef   : > { %3974 = vrcp.f32 %v1849_v48 }
 0x4f0   : > { %v1893_v8 = vpack.c.bf16 %v1877_v5, %v1877_v5 }
 0x4f1   : > { %v1846_v9 = vpop.xlane.xlu2 %1845 }
 0x4f2   : > { %3976 = vrcp.f32 %v1846_v9  ;;  %v2041_v39 = vunpack.c.l.b16 %v1893_v8 }
 0x4f4   : > { %v2042_v60 = vpack.c.b16 %v2041_v39, %v2040_v13 }
 0x4f5   : > { %v3975_v14 = vpop.eup %3974 }
 0x4f6   : > { %v1881_v15 = vmul.f32 %v3975_v14, %v4672_v19  ;;  %3463 = vmatmul.msk.bf16.vlgmr.msrb.gmra.mxu3 %vm1457_vm15, %v2042_v60 }
 0x4f8   : > { %v3977_v54 = vpop.eup %3976  ;;  %v1897_v17 = vpack.c.bf16 %v1881_v15, %v1881_v15 }
 0x4f9   : > { %v1880_v47 = vmul.f32 %v3977_v54, %v4674_v38 }
 0x4fa   : > { %v2097_v22 = vunpack.c.l.b16 %v1897_v17  ;;  %v3908_v17 = vld [vmem:[%s1078_s2] ss:$0 sm:$0xff]  ;;  %s3585_s2 = sld [smem:[#allocation3 + $0x1]] (!%p3584_p1) }
 0x4fb   : > { %v1896_v18 = vpack.c.bf16 %v1880_v47, %v1880_v47 }
 0x4fd   : > { %v2096_v12 = vunpack.c.l.b16 %v1896_v18 }
 0x4ff   : > { %v2098_v10 = vpack.c.b16 %v2097_v22, %v2096_v12  ;;  %v4012_v22 = vld [vmem:[#allocation5] sm:$0xff] }
 0x501   : > { %3465 = vmatmul.msk.bf16.vlgmr.msrb.gmra.mxu1 %vm1457_vm15, %v2098_v10 }
 0x515   : > { %v1977_v57 = vpop.f32.mrf.mxu0 }
 0x51d   : > { %v1979_v27 = vpop.f32.mrf.mxu0 }
 0x51e   : > { %v3878_v25 = vpack.i.bf16 %v1979_v27, %v1977_v57  ;;  %v4013_v27 = vld [vmem:[#allocation5 + $0x8] sm:$0xff] }
 0x520   : > { %3879 = vrot.lane.b32.xlu2 %v3878_v25, %s4165_s26 }
 0x529   : > { %v2033_v19 = vpop.f32.mrf.mxu2 }
 0x531   : > { %v2035_v28 = vpop.f32.mrf.mxu2 }
 0x532   : > { %v3883_v31 = vpack.i.bf16 %v2035_v28, %v2033_v19 }
 0x534   : > { %3884 = vrot.lane.b32.xlu1 %v3883_v31, %s4166_s13  ;;  %v4014_v31 = vld [vmem:[#allocation5 + $0x10] sm:$0xff] }
 0x53d   : > { %v2005_v32 = vpop.f32.mrf.mxu1 }
 0x541   : > { %v2089_v38 = vpop.f32.mrf.mxu0 }
 0x545   : > { %v2007_v34 = vpop.f32.mrf.mxu1 }
 0x546   : > { %v3893_v35 = vpack.i.bf16 %v2007_v34, %v2005_v32 }
 0x548   : > { %3894 = vrot.lane.b32.xlu0 %v3893_v35, %s4165_s26  ;;  %s4970_s26 = sld [smem:[#allocation17_spill]] (!%p3584_p1) }
 0x549   : > { %v2091_v11 = vpop.f32.mrf.mxu0 }
 0x54a   : > { %v3888_v29 = vpack.i.bf16 %v2091_v11, %v2089_v38  ;;  %v4015_v11 = vld [vmem:[#allocation5 + $0x18] sm:$0xff] }
 0x54c   : > { %3889 = vrot.lane.b32.xlu1 %v3888_v29, %s4167_s28 }
 0x579   : > { %v2061_v40 = vpop.f32.mrf.mxu3 }
 0x57a   : > { %v3880_v23 = vpop.permute.xlu2 %3879 }
 0x57b   : > { %v3882_v16 = vunpack.i.h.bf16 %v3880_v23  ;;  %v3881_v51 = vunpack.i.l.bf16 %v3880_v23 }
 0x57d   : > { %v2171_v63 = vsel %vm1457_vm15, %v1923_v30, %v3882_v16  ;;  %v2170_v46 = vsel %vm1457_vm15, %v1921_v24, %v3881_v51 }
 0x57e   : > { %v2117_v42 = vpop.f32.mrf.mxu1 }
 0x581   : > { %v2063_v44 = vpop.f32.mrf.mxu3 }
 0x582   : > { %v3898_v43 = vpack.i.bf16 %v2063_v44, %v2061_v40 }
 0x584   : > { %3899 = vrot.lane.b32.xlu1 %v3898_v43, %s4166_s13  ;;  %s4971_s13 = sld [smem:[#allocation18_spill]] (!%p3584_p1) }
 0x586   : > { %v2119_v20 = vpop.f32.mrf.mxu1 }
 0x587   : > { %v3903_v26 = vpack.i.bf16 %v2119_v20, %v2117_v42 }
 0x589   : > { %3904 = vrot.lane.b32.xlu2 %v3903_v26, %s4167_s28  ;;  %s4972_s28 = sld [smem:[#allocation25_spill]] (!%p3584_p1) }
 0x5a6   : > { %v3885_v49 = vpop.permute.xlu1 %3884 }
 0x5a7   : > { %v3887_v52 = vunpack.i.h.bf16 %v3885_v49  ;;  %v3886_v7 = vunpack.i.l.bf16 %v3885_v49 }
 0x5a9   : > { %v2175_v56 = vsel %vm2174_vm0, %v2170_v46, %v3886_v7  ;;  %v2176_v58 = vsel %vm2174_vm0, %v2171_v63, %v3887_v52 }
 0x5ba   : > { %v3895_v62 = vpop.permute.xlu0 %3894 }
 0x5bb   : > { %v3897_v0 = vunpack.i.h.bf16 %v3895_v62  ;;  %v3896_v36 = vunpack.i.l.bf16 %v3895_v62  ;;  %v3510_v62 = vld [vmem:[%s4378_s17 + $0x30] sm:$0xf] }
 0x5bd   : > { %v2173_v48 = vsel %vm1457_vm15, %v1951_v41, %v3897_v0  ;;  %v2172_v8 = vsel %vm1457_vm15, %v1949_v37, %v3896_v36  ;;  %v4168_v41 = vmov 64.0   ;;  %v3701_v0 = vld [vmem:[%s4378_s17 + $0x34] sm:$0xf0]  ;;  %v3700_v36 = vld [vmem:[%s4378_s17 + $0x34] sm:$0xf] }
 0x5be   : > { %v3890_v53 = vpop.permute.xlu1 %3889  ;;  %3978 = vrcp.f32 %v4168_v41 }
 0x5bf   : > { %v3892_v21 = vunpack.i.h.bf16 %v3890_v53  ;;  %v3891_v55 = vunpack.i.l.bf16 %v3890_v53 }
 0x5c1   : > { %v2181_v59 = vsel %vm2179_vm1, %v2176_v58, %v3892_v21  ;;  %v2180_v33 = vsel %vm2179_vm1, %v2175_v56, %v3891_v55 }
 0x5c2   : > { %v2184_v61 = vpack.c.bf16 %v2181_v59, %v2180_v33 }
 0x5c4   : > { %3482 = vmatmul.msk.bf16.vlgmr.msra.gmra.mxu2 %vm1293_vm14, %v2184_v61  ;;  %v3979_v40 = vpop.eup %3978 }
 0x5c5   : > { %v2266_v42 = vmul.f32 64.0, %v3979_v40  ;;  %vm2270_vm2 = vweird.f32 %v3979_v40 }
 0x5c7   : > { %v2267_v44 = vsub.f32 1.0, %v2266_v42 }
 0x5c9   : > { %v2268_v43 = vmul.f32 %v3979_v40, %v2267_v44 }
 0x5cb   : > { %v2269_v20 = vadd.f32 %v3979_v40, %v2268_v43 }
 0x5cd   : > { %v4723_v26 = vsel %vm2270_vm2, %v3979_v40, %v2269_v20  ;;  %v3909_v20 = vld [vmem:[%s1081_s15] ss:$0 sm:$0xff] }
 0x5e3   : > { %v3905_v1 = vpop.permute.xlu2 %3904 }
 0x5e4   : > { %v3907_v9 = vunpack.i.h.bf16 %v3905_v1  ;;  %v3906_v13 = vunpack.i.l.bf16 %v3905_v1  ;;  %v3511_v1 = vor.u32 %v3701_v0, %v3510_v62 }
 0x5e6   : > { %2428 = vmatpush.bf16.msra.mxu3 %v3511_v1 }
 0x5f6   : > { %v3900_v2 = vpop.permute.xlu1 %3899 }
 0x5f7   : > { %v3902_v3 = vunpack.i.h.bf16 %v3900_v2  ;;  %v3901_v5 = vunpack.i.l.bf16 %v3900_v2  ;;  %v3512_v2 = vld [vmem:[%s4378_s17 + $0x38] sm:$0xf0] }
 0x5f9   : > { %v2178_v39 = vsel %vm2174_vm0, %v2173_v48, %v3902_v3  ;;  %v2177_v60 = vsel %vm2174_vm0, %v2172_v8, %v3901_v5  ;;  %v3515_v3 = vor.u32 %v3700_v36, %v3512_v2  ;;  %v3502_v5 = vld [vmem:[%s4378_s17 + $0x20] sm:$0xf]  ;;  %v3699_v48 = vld [vmem:[%s4378_s17 + $0x24] sm:$0xf0]  ;;  %v3698_v8 = vld [vmem:[%s4378_s17 + $0x24] sm:$0xf] }
 0x5fa   : > { %v2182_v14 = vsel %vm2179_vm1, %v2177_v60, %v3906_v13  ;;  %v2183_v15 = vsel %vm2179_vm1, %v2178_v39, %v3907_v9  ;;  %v3503_v9 = vor.u32 %v3699_v48, %v3502_v5  ;;  %v3504_v13 = vld [vmem:[%s4378_s17 + $0x28] sm:$0xf0]  ;;  %v3494_v60 = vld [vmem:[%s4378_s17 + $0x10] sm:$0xf] }
 0x5fb   : > { %v2185_v54 = vpack.c.bf16 %v2183_v15, %v2182_v14  ;;  %2447 = vmatpush.bf16.msra.mxu0 %v3515_v3  ;;  %v3507_v39 = vor.u32 %v3698_v8, %v3504_v13  ;;  %v3697_v14 = vld [vmem:[%s4378_s17 + $0x14] sm:$0xf0]  ;;  %v3696_v15 = vld [vmem:[%s4378_s17 + $0x14] sm:$0xf] }
 0x5fc   : > { %2429 = vmatpush.bf16.msra.mxu3 %v3503_v9 }
 0x5fd   : > { %3483 = vmatmul.msk.bf16.gmra.mxu2 %vm1293_vm14, %v2185_v54  ;;  %v3495_v54 = vor.u32 %v3697_v14, %v3494_v60 }
 0x5ff   : > { %2448 = vmatpush.bf16.msra.mxu0 %v3507_v39 }
 0x600   : > { %2430 = vmatpush.bf16.msra.mxu3 %v3495_v54 }
 0x647   : > { %v2237_v47 = vpop.f32.mrf.mxu2 }
 0x648   : > { %v2238_v18 = vadd.f32 %v3908_v17, %v2237_v47 }
 0x64a   : > { %v2247_v12 = vadd.f32 %v4012_v22, %v2238_v18 }
 0x64c   : > { %v2253_v10 = vsel %vm1293_vm14, %v2247_v12, 0.0 }
 0x64d   : > { %2254 = vadd.xlane.f32.xlu1 %v2253_v10  ;;  %v3695_v10 = vld [vmem:[%s4378_s17 + $0x4] sm:$0xf0] }
 0x64f   : > { %v2239_v57 = vpop.f32.mrf.mxu2 }
 0x650   : > { %v2240_v24 = vadd.f32 %v3908_v17, %v2239_v57  ;;  %v3694_v57 = vld [vmem:[%s4378_s17 + $0x4] sm:$0xf] }
 0x652   : > { %v2248_v25 = vadd.f32 %v4013_v27, %v2240_v24 }
 0x654   : > { %v2256_v30 = vsel %vm1293_vm14, %v2248_v25, 0.0 }
 0x655   : > { %2257 = vadd.xlane.f32.xlu2 %v2256_v30 }
 0x680   : > { %v2242_v19 = vpop.f32.mrf.mxu2 }
 0x681   : > { %v2243_v28 = vadd.f32 %v3908_v17, %v2242_v19 }
 0x683   : > { %v2249_v32 = vadd.f32 %v4014_v31, %v2243_v28 }
 0x685   : > { %v2259_v38 = vsel %vm1293_vm14, %v2249_v32, 0.0 }
 0x686   : > { %2260 = vadd.xlane.f32.xlu0 %v2259_v38 }
 0x688   : > { %v2244_v34 = vpop.f32.mrf.mxu2 }
 0x689   : > { %v2245_v35 = vadd.f32 %v3908_v17, %v2244_v34  ;;  %v3496_v17 = vld [vmem:[%s4378_s17 + $0x18] sm:$0xf0] }
 0x68a   : > { %v3499_v18 = vor.u32 %v3696_v15, %v3496_v17 }
 0x68b   : > { %v2250_v29 = vadd.f32 %v4015_v11, %v2245_v35 }
 0x68c   : > { %2449 = vmatpush.bf16.msra.mxu0 %v3499_v18  ;;  %v3717_v18 = vld [vmem:[%s4385_s0 + $0x78] sm:$0xff] }
 0x68d   : > { %v2262_v37 = vsel %vm1293_vm14, %v2250_v29, 0.0  ;;  %2689 = vmatpush.bf16.msrb.mxu2 %v3717_v18 }
 0x68e   : > { %2263 = vadd.xlane.f32.xlu1 %v2262_v37 }
 0x6c0   : > { %v2255_v50 = vpop.xlane.xlu1 %2254 }
 0x6c1   : > { %v2272_v4 = vmul.f32 %v4723_v26, %v2255_v50 }
 0x6c3   : > { %v4726_v6 = vsub.f32 %v2247_v12, %v2272_v4  ;;  %v3486_v12 = vld [vmem:[%s4378_s17] sm:$0xf] }
 0x6c4   : > { %v3487_v27 = vor.u32 %v3695_v10, %v3486_v12  ;;  %v3715_v12 = vld [vmem:[%s4385_s0 + $0x68] sm:$0xff]  ;;  %v3708_v10 = vld [vmem:[%s4385_s0 + $0x30] sm:$0xff] }
 0x6c5   : > { %v2280_v45 = vmul.f32 %v4726_v6, %v4726_v6 }
 0x6c6   : > { %2431 = vmatpush.bf16.msra.mxu3 %v3487_v27  ;;  %v3713_v27 = vld [vmem:[%s4385_s0 + $0x58] sm:$0xff] }
 0x6c7   : > { %v2284_v49 = vsel %vm1293_vm14, %v2280_v45, 0.0 }
 0x6c8   : > { %v2258_v23 = vpop.xlane.xlu2 %2257  ;;  %2285 = vadd.xlane.f32.xlu2 %v2284_v49  ;;  %v3910_v49 = vld [vmem:[%s1084_s23] ss:$0 sm:$0xff]  ;;  %s2825_s23 = scalar_lea.vmem (!%p3584_p1), [#allocation5], %s2824_s1  ;;  %s4975_s1 = sld [smem:[#allocation20_spill]] (!%p3584_p1) }
 0x6c9   : > { %v2273_v16 = vmul.f32 %v4723_v26, %v2258_v23 }
 0x6cb   : > { %v4732_v51 = vsub.f32 %v2248_v25, %v2273_v16  ;;  %v3488_v25 = vld [vmem:[%s4378_s17 + $0x8] sm:$0xf0]  ;;  %s3273_s17 = scalar_lea.vmem (!%p3584_p1), [#allocation5], %s3585_s2  ;;  %s4976_s2 = sld [smem:[#allocation28_spill]] (!%p3584_p1) }
 0x6cc   : > { %v3491_v30 = vor.u32 %v3694_v57, %v3488_v25  ;;  %v3714_v57 = vld [vmem:[%s4385_s0 + $0x60] sm:$0xff] }
 0x6cd   : > { %v2281_v52 = vmul.f32 %v4732_v51, %v4732_v51  ;;  %v3706_v25 = vld [vmem:[%s4385_s0 + $0x20] sm:$0xff] }
 0x6ce   : > { %2450 = vmatpush.bf16.msra.mxu0 %v3491_v30  ;;  %v3712_v30 = vld [vmem:[%s4385_s0 + $0x50] sm:$0xff] }
 0x6cf   : > { %v2287_v7 = vsel %vm1293_vm14, %v2281_v52, 0.0 }
 0x6d0   : > { %2288 = vadd.xlane.f32.xlu1 %v2287_v7 }
 0x6f9   : > { %v2261_v53 = vpop.xlane.xlu0 %2260 }
 0x6fa   : > { %v2274_v63 = vmul.f32 %v4723_v26, %v2261_v53 }
 0x6fc   : > { %v4738_v46 = vsub.f32 %v2249_v32, %v2274_v63 }
 0x6fe   : > { %v2282_v21 = vmul.f32 %v4738_v46, %v4738_v46 }
 0x700   : > { %v2290_v55 = vsel %vm1293_vm14, %v2282_v21, 0.0 }
 0x701   : > { %2291 = vadd.xlane.f32.xlu2 %v2290_v55  ;;  %v2264_v56 = vpop.xlane.xlu1 %2263 }
 0x702   : > { %v2275_v58 = vmul.f32 %v4723_v26, %v2264_v56 }
 0x704   : > { %v4744_v59 = vsub.f32 %v2250_v29, %v2275_v58 }
 0x706   : > { %v2283_v33 = vmul.f32 %v4744_v59, %v4744_v59 }
 0x708   : > { %v2293_v61 = vsel %vm1293_vm14, %v2283_v33, 0.0 }
 0x709   : > { %2294 = vadd.xlane.f32.xlu0 %v2293_v61 }
 0x73b   : > { %v2286_v47 = vpop.xlane.xlu2 %2285 }
 0x73c   : > { %v2296_v22 = vmul.f32 %v2286_v47, %v4723_v26 }
 0x73e   : > { %v2300_v24 = vadd.f32 1e-05, %v2296_v22  ;;  %v3709_v22 = vld [vmem:[%s4385_s0 + $0x38] sm:$0xff] }
 0x73f   : > { %2670 = vmatpush.bf16.msra.mxu1 %v3709_v22 }
 0x740   : > { %3980 = vrsqrt.f32 %v2300_v24  ;;  %vm2310_vm4 = vweird.f32 %v2300_v24 }
 0x743   : > { %v2289_v19 = vpop.xlane.xlu1 %2288  ;;  %2671 = vmatpush.bf16.msra.mxu1 %v3708_v10 }
 0x744   : > { %v2297_v28 = vmul.f32 %v2289_v19, %v4723_v26  ;;  %v2372_v19 = vld [vmem:[%s4381_s18] sm:$0x3]  ;;  %s4169_s18 = smov (!%p3584_p1), 64  }
 0x746   : > { %v3981_v31 = vpop.eup %3980  ;;  %v2301_v32 = vadd.f32 1e-05, %v2297_v28  ;;  %v3705_v28 = vld [vmem:[%s4385_s0 + $0x18] sm:$0xff] }
 0x747   : > { %v2305_v38 = vmul.f32 %v3981_v31, %v2300_v24  ;;  %vm2311_vm3 = vweird.f32 %v3981_v31  ;;  %v3707_v24 = vld [vmem:[%s4385_s0 + $0x28] sm:$0xff] }
 0x748   : > { %3982 = vrsqrt.f32 %v2301_v32  ;;  %vm2312_vm5 = vmor %vm2310_vm4, %vm2311_vm3  ;;  %vm2320_vm7 = vweird.f32 %v2301_v32  ;;  %2672 = vmatpush.bf16.msra.mxu1 %v3707_v24 }
 0x749   : > { %v2306_v34 = vmul.f32 %v3981_v31, %v2305_v38  ;;  %v3704_v38 = vld [vmem:[%s4385_s0 + $0x10] sm:$0xff] }
 0x74b   : > { %v2307_v35 = vmul.f32 0.5, %v2306_v34 }
 0x74c   : > { %2673 = vmatpush.bf16.msra.mxu1 %v3706_v25 }
 0x74d   : > { %v2308_v11 = vsub.f32 1.5, %v2307_v35  ;;  %v3710_v35 = vld [vmem:[%s4385_s0 + $0x40] sm:$0xff] }
 0x74e   : > { %v3983_v29 = vpop.eup %3982 }
 0x74f   : > { %v2309_v37 = vmul.f32 %v3981_v31, %v2308_v11  ;;  %v2315_v41 = vmul.f32 %v3983_v29, %v2301_v32  ;;  %vm2321_vm6 = vweird.f32 %v3983_v29  ;;  %v4808_v32 = vperm.slane %v2372_v19, 1 }
 0x750   : > { %vm2322_vm8 = vmor %vm2320_vm7, %vm2321_vm6  ;;  %2674 = vmatpush.bf16.msra.mxu1 %v3705_v28 }
 0x751   : > { %v2316_v40 = vmul.f32 %v3983_v29, %v2315_v41  ;;  %v2313_v42 = vsel %vm2312_vm5, %v3981_v31, %v2309_v37  ;;  %v3711_v31 = vld [vmem:[%s4385_s0 + $0x48] sm:$0xff]  ;;  %v4814_v41 = vperm.slane %v2372_v19, 0 }
 0x752   : > { %v2344_v50 = vmul.f32 %v2313_v42, %v4726_v6 }
 0x753   : > { %v2317_v44 = vmul.f32 0.5, %v2316_v40 }
 0x754   : > { %v2351_v23 = vmul.f32 %v3909_v20, %v2344_v50  ;;  %2675 = vmatpush.bf16.msra.mxu1 %v3704_v38 }
 0x755   : > { %v2318_v43 = vsub.f32 1.5, %v2317_v44  ;;  %v3702_v44 = vld [vmem:[%s4385_s0] sm:$0xff] }
 0x756   : > { %v4775_v7 = vadd.f32 %v3910_v49, %v2351_v23 }
 0x757   : > { %v2319_v4 = vmul.f32 %v3983_v29, %v2318_v43 }
 0x759   : > { %v2323_v45 = vsel %vm2322_vm8, %v3983_v29, %v2319_v4  ;;  %v3703_v29 = vld [vmem:[%s4385_s0 + $0x8] sm:$0xff] }
 0x75a   : > { %v2345_v16 = vmul.f32 %v2323_v45, %v4732_v51  ;;  %2676 = vmatpush.bf16.msra.mxu1 %v3703_v29 }
 0x75c   : > { %v2352_v52 = vmul.f32 %v3909_v20, %v2345_v16 }
 0x75e   : > { %v4777_v53 = vadd.f32 %v3910_v49, %v2352_v52  ;;  %2677 = vmatpush.bf16.msra.mxu1 %v3702_v44 }
 0x760   : > { %v2362_v63 = vpack.c.bf16 %v4777_v53, %v4775_v7 }
 0x762   : > { %3516 = vmatmul.msk.bf16.vlgmr.msra.gmra.mxu3 %vm1293_vm14, %v2362_v63  ;;  %3518 = vmatmul.msk.bf16.vlgmr.msra.gmra.mxu0 %vm1293_vm14, %v2362_v63 }
 0x774   : > { %v2292_v6 = vpop.xlane.xlu2 %2291 }
 0x775   : > { %v2298_v21 = vmul.f32 %v2292_v6, %v4723_v26 }
 0x777   : > { %v2302_v55 = vadd.f32 1e-05, %v2298_v21 }
 0x779   : > { %3984 = vrsqrt.f32 %v2302_v55  ;;  %vm2330_vm10 = vweird.f32 %v2302_v55 }
 0x77c   : > { %v2295_v56 = vpop.xlane.xlu0 %2294 }
 0x77d   : > { %v2299_v51 = vmul.f32 %v2295_v56, %v4723_v26 }
 0x77f   : > { %v3985_v58 = vpop.eup %3984  ;;  %v2303_v33 = vadd.f32 1e-05, %v2299_v51 }
 0x780   : > { %v2325_v61 = vmul.f32 %v3985_v58, %v2302_v55  ;;  %vm2331_vm9 = vweird.f32 %v3985_v58 }
 0x781   : > { %3986 = vrsqrt.f32 %v2303_v33  ;;  %vm2332_vm11 = vmor %vm2330_vm10, %vm2331_vm9  ;;  %vm2340_vm13 = vweird.f32 %v2303_v33 }
 0x782   : > { %v2326_v62 = vmul.f32 %v3985_v58, %v2325_v61 }
 0x784   : > { %v2327_v0 = vmul.f32 0.5, %v2326_v62 }
 0x786   : > { %v2328_v36 = vsub.f32 1.5, %v2327_v0 }
 0x787   : > { %v3987_v1 = vpop.eup %3986 }
 0x788   : > { %v2329_v2 = vmul.f32 %v3985_v58, %v2328_v36  ;;  %v2335_v3 = vmul.f32 %v3987_v1, %v2303_v33  ;;  %vm2341_vm12 = vweird.f32 %v3987_v1 }
 0x789   : > { %vm2342_vm15 = vmor %vm2340_vm13, %vm2341_vm12 }
 0x78a   : > { %v2336_v5 = vmul.f32 %v3987_v1, %v2335_v3  ;;  %v2333_v48 = vsel %vm2332_vm11, %v3985_v58, %v2329_v2 }
 0x78b   : > { %v2346_v13 = vmul.f32 %v2333_v48, %v4738_v46 }
 0x78c   : > { %v2337_v8 = vmul.f32 0.5, %v2336_v5 }
 0x78d   : > { %v2353_v15 = vmul.f32 %v3909_v20, %v2346_v13 }
 0x78e   : > { %v2338_v9 = vsub.f32 1.5, %v2337_v8 }
 0x78f   : > { %v4787_v17 = vadd.f32 %v3910_v49, %v2353_v15 }
 0x790   : > { %v2339_v39 = vmul.f32 %v3987_v1, %v2338_v9 }
 0x792   : > { %v2343_v60 = vsel %vm2342_vm15, %v3987_v1, %v2339_v39 }
 0x793   : > { %v2347_v14 = vmul.f32 %v2343_v60, %v4744_v59  ;;  %v3716_v59 = vld [vmem:[%s4385_s0 + $0x70] sm:$0xff]  ;;  %s3587_s0 = sld [smem:[#allocation4 + $0x1]] (!%p3584_p1) }
 0x794   : > { %2690 = vmatpush.bf16.msrb.mxu2 %v3716_v59 }
 0x795   : > { %v2354_v54 = vmul.f32 %v3909_v20, %v2347_v14 }
 0x797   : > { %v4789_v47 = vadd.f32 %v3910_v49, %v2354_v54 }
 0x798   : > { %2691 = vmatpush.bf16.msrb.mxu2 %v3715_v12 }
 0x799   : > { %v2363_v46 = vpack.c.bf16 %v4789_v47, %v4787_v17  ;;  %s3276_s15 = scalar_lea.vmem (!%p3584_p1), [#allocation5], %s3587_s0  ;;  %s4974_s0 = sld [smem:[#allocation24_spill]] (!%p3584_p1) }
 0x79b   : > { %3517 = vmatmul.msk.bf16.gmra.mxu3 %vm1293_vm14, %v2363_v46  ;;  %3519 = vmatmul.msk.bf16.gmra.mxu0 %vm1293_vm14, %v2363_v46 }
 0x79c   : > { %2692 = vmatpush.bf16.msrb.mxu2 %v3714_v57 }
 0x7a0   : > { %2693 = vmatpush.bf16.msrb.mxu2 %v3713_v27 }
 0x7a4   : > { %2694 = vmatpush.bf16.msrb.mxu2 %v3712_v30 }
 0x7a8   : > { %2695 = vmatpush.bf16.msrb.mxu2 %v3711_v31 }
 0x7ac   : > { %2696 = vmatpush.bf16.msrb.mxu2 %v3710_v35 }
 0x7df   : > { %v2452_v34 = vpop.f32.mrf.mxu0 }
 0x7e0   : > { %v2453_v11 = vadd.f32 %v2452_v34, %v4808_v32 }
 0x7e2   : > { %v2463_v37 = vmul.f32 %v2453_v11, %v2453_v11 }
 0x7e4   : > { %v2471_v40 = vmul.f32 %v2463_v37, %v2453_v11 }
 0x7e5   : > { %v2433_v42 = vpop.f32.mrf.mxu3 }
 0x7e6   : > { %v2479_v43 = vmul.f32 0.044715, %v2471_v40  ;;  %v2434_v20 = vadd.f32 %v2433_v42, %v4814_v41 }
 0x7e7   : > { %v2454_v50 = vpop.f32.mrf.mxu0 }
 0x7e8   : > { %v2487_v4 = vadd.f32 %v2479_v43, %v2453_v11  ;;  %v2462_v45 = vmul.f32 %v2434_v20, %v2434_v20  ;;  %v2455_v49 = vadd.f32 %v2454_v50, %v4808_v32 }
 0x7ea   : > { %v2495_v23 = vmul.f32 0.7978846, %v2487_v4  ;;  %v2470_v16 = vmul.f32 %v2462_v45, %v2434_v20  ;;  %v2465_v52 = vmul.f32 %v2455_v49, %v2455_v49 }
 0x7ec   : > { %v2478_v63 = vmul.f32 0.044715, %v2470_v16  ;;  %v2473_v6 = vmul.f32 %v2465_v52, %v2455_v49  ;;  %3988 = vtanh.f32 %v2495_v23 }
 0x7ed   : > { %v2435_v21 = vpop.f32.mrf.mxu3 }
 0x7ee   : > { %v2486_v55 = vadd.f32 %v2478_v63, %v2434_v20  ;;  %v2481_v56 = vmul.f32 0.044715, %v2473_v6  ;;  %v2436_v51 = vadd.f32 %v2435_v21, %v4814_v41 }
 0x7f0   : > { %v2494_v58 = vmul.f32 0.7978846, %v2486_v55  ;;  %v2489_v33 = vadd.f32 %v2481_v56, %v2455_v49  ;;  %v2464_v61 = vmul.f32 %v2436_v51, %v2436_v51 }
 0x7f2   : > { %v2497_v62 = vmul.f32 0.7978846, %v2489_v33  ;;  %v2472_v0 = vmul.f32 %v2464_v61, %v2436_v51  ;;  %3990 = vtanh.f32 %v2494_v58  ;;  %v3989_v36 = vpop.eup %3988 }
 0x7f3   : > { %v2511_v3 = vadd.f32 1.0, %v3989_v36 }
 0x7f4   : > { %3992 = vtanh.f32 %v2497_v62  ;;  %v2480_v1 = vmul.f32 0.044715, %v2472_v0 }
 0x7f5   : > { %v2519_v9 = vmul.f32 0.5, %v2511_v3 }
 0x7f6   : > { %v2488_v2 = vadd.f32 %v2480_v1, %v2436_v51 }
 0x7f7   : > { %v2527_v14 = vmul.f32 %v2519_v9, %v2453_v11 }
 0x7f8   : > { %v2496_v5 = vmul.f32 0.7978846, %v2488_v2  ;;  %v3991_v48 = vpop.eup %3990 }
 0x7f9   : > { %v2510_v39 = vadd.f32 1.0, %v3991_v48 }
 0x7fa   : > { %v3993_v8 = vpop.eup %3992  ;;  %3994 = vtanh.f32 %v2496_v5 }
 0x7fb   : > { %v2513_v13 = vadd.f32 1.0, %v3993_v8  ;;  %v2518_v46 = vmul.f32 0.5, %v2510_v39 }
 0x7fd   : > { %v2521_v60 = vmul.f32 0.5, %v2513_v13  ;;  %v2526_v12 = vmul.f32 %v2518_v46, %v2434_v20  ;;  %v3911_v13 = vld [vmem:[%s1101_s16] ss:$0 sm:$0xff]  ;;  %s4966_s16 = sld [smem:[#allocation21_spill]] (!%p3584_p1) }
 0x7ff   : > { %v2529_v15 = vmul.f32 %v2521_v60, %v2455_v49 }
 0x800   : > { %v3995_v54 = vpop.eup %3994 }
 0x801   : > { %v2512_v18 = vadd.f32 1.0, %v3995_v54  ;;  %v2535_v59 = vpack.c.bf16 %v2529_v15, %v2527_v14 }
 0x803   : > { %v2520_v22 = vmul.f32 0.5, %v2512_v18  ;;  %2697 = vmatmul.bf16.vlgmr.msrb.gmra.mxu2 %v2535_v59 }
 0x805   : > { %v2528_v10 = vmul.f32 %v2520_v22, %v2436_v51 }
 0x807   : > { %v2534_v57 = vpack.c.bf16 %v2528_v10, %v2526_v12 }
 0x809   : > { %2678 = vmatmul.bf16.vlgmr.msra.gmra.mxu1 %v2534_v57 }
 0x818   : > { %v2457_v24 = vpop.f32.mrf.mxu0 }
 0x819   : > { %v2458_v27 = vadd.f32 %v2457_v24, %v4808_v32 }
 0x81b   : > { %v2467_v25 = vmul.f32 %v2458_v27, %v2458_v27 }
 0x81d   : > { %v2475_v30 = vmul.f32 %v2467_v25, %v2458_v27 }
 0x81e   : > { %v2438_v19 = vpop.f32.mrf.mxu3 }
 0x81f   : > { %v2483_v28 = vmul.f32 0.044715, %v2475_v30  ;;  %v2439_v31 = vadd.f32 %v2438_v19, %v4814_v41 }
 0x820   : > { %v2459_v38 = vpop.f32.mrf.mxu0 }
 0x821   : > { %v2491_v34 = vadd.f32 %v2483_v28, %v2458_v27  ;;  %v2466_v35 = vmul.f32 %v2439_v31, %v2439_v31  ;;  %v2460_v11 = vadd.f32 %v2459_v38, %v4808_v32 }
 0x823   : > { %v2474_v29 = vmul.f32 %v2466_v35, %v2439_v31  ;;  %v2469_v37 = vmul.f32 %v2460_v11, %v2460_v11  ;;  %v2499_v40 = vmul.f32 0.7978846, %v2491_v34 }
 0x825   : > { %v2482_v42 = vmul.f32 0.044715, %v2474_v29  ;;  %v2477_v44 = vmul.f32 %v2469_v37, %v2460_v11  ;;  %3996 = vtanh.f32 %v2499_v40 }
 0x826   : > { %v2440_v43 = vpop.f32.mrf.mxu3 }
 0x827   : > { %v2490_v20 = vadd.f32 %v2482_v42, %v2439_v31  ;;  %v2485_v50 = vmul.f32 0.044715, %v2477_v44  ;;  %v2441_v4 = vadd.f32 %v2440_v43, %v4814_v41 }
 0x829   : > { %v2493_v45 = vadd.f32 %v2485_v50, %v2460_v11  ;;  %v2468_v49 = vmul.f32 %v2441_v4, %v2441_v4  ;;  %v2498_v23 = vmul.f32 0.7978846, %v2490_v20 }
 0x82b   : > { %v2476_v16 = vmul.f32 %v2468_v49, %v2441_v4  ;;  %v2501_v52 = vmul.f32 0.7978846, %v2493_v45  ;;  %3998 = vtanh.f32 %v2498_v23  ;;  %v3997_v63 = vpop.eup %3996 }
 0x82c   : > { %v2515_v21 = vadd.f32 1.0, %v3997_v63 }
 0x82d   : > { %v2484_v6 = vmul.f32 0.044715, %v2476_v16  ;;  %4000 = vtanh.f32 %v2501_v52 }
 0x82e   : > { %v2523_v41 = vmul.f32 0.5, %v2515_v21 }
 0x82f   : > { %v2492_v32 = vadd.f32 %v2484_v6, %v2441_v4 }
 0x830   : > { %v2531_v62 = vmul.f32 %v2523_v41, %v2458_v27 }
 0x831   : > { %v2500_v55 = vmul.f32 0.7978846, %v2492_v32  ;;  %v3999_v56 = vpop.eup %3998 }
 0x832   : > { %v2514_v61 = vadd.f32 1.0, %v3999_v56 }
 0x833   : > { %v4001_v51 = vpop.eup %4000  ;;  %4002 = vtanh.f32 %v2500_v55 }
 0x834   : > { %v2517_v58 = vadd.f32 1.0, %v4001_v51  ;;  %v2522_v3 = vmul.f32 0.5, %v2514_v61 }
 0x836   : > { %v2525_v33 = vmul.f32 0.5, %v2517_v58  ;;  %v2530_v48 = vmul.f32 %v2522_v3, %v2439_v31 }
 0x838   : > { %v2533_v0 = vmul.f32 %v2525_v33, %v2460_v11 }
 0x839   : > { %v4003_v36 = vpop.eup %4002 }
 0x83a   : > { %v2537_v1 = vpack.c.bf16 %v2533_v0, %v2531_v62  ;;  %v2516_v2 = vadd.f32 1.0, %v4003_v36 }
 0x83c   : > { %2702 = vmatmul.bf16.gmra.mxu2 %v2537_v1  ;;  %v2524_v5 = vmul.f32 0.5, %v2516_v2 }
 0x83e   : > { %v2532_v8 = vmul.f32 %v2524_v5, %v2441_v4  ;;  %v3912_v5 = vld [vmem:[%s1104_s4] ss:$0 sm:$0xff]  ;;  %s4965_s4 = sld [smem:[#allocation15_spill]] (!%p3584_p1) }
 0x840   : > { %v2536_v9 = vpack.c.bf16 %v2532_v8, %v2530_v48 }
 0x842   : > { %2683 = vmatmul.bf16.gmra.mxu1 %v2536_v9  ;;  %v3913_v9 = vld [vmem:[%s1107_s21] ss:$0 sm:$0xff]  ;;  %s2836_s21 = sld [smem:[#allocation4]] (!%p3584_p1) }
 0x848   : > { %s2837_s11 = scalar_lea.vmem (!%p3584_p1), [#allocation5], %s2836_s21  ;;  %s4973_s21 = sld [smem:[#allocation23_spill]] (!%p3584_p1) }
 0x886   : > { %v2679_v39 = vpop.f32.mrf.mxu1  ;;  %v2698_v60 = vpop.f32.mrf.mxu2 }
 0x887   : > { %v2680_v14 = vadd.f32 %v3911_v13, %v2679_v39 }
 0x889   : > { %v2699_v15 = vadd.f32 %v2698_v60, %v2680_v14 }
 0x88b   : > { %v2708_v54 = vadd.f32 %v2699_v15, %v4775_v7 }
 0x88d   : > { %v2714_v46 = vsel %vm1293_vm14, %v2708_v54, 0.0 }
 0x88e   : > { %v2681_v18 = vpop.f32.mrf.mxu1  ;;  %2715 = vadd.xlane.f32.xlu1 %v2714_v46  ;;  %v2700_v22 = vpop.f32.mrf.mxu2 }
 0x88f   : > { %v2682_v59 = vadd.f32 %v3911_v13, %v2681_v18 }
 0x891   : > { %v2701_v12 = vadd.f32 %v2700_v22, %v2682_v59 }
 0x893   : > { %v2709_v10 = vadd.f32 %v2701_v12, %v4777_v53 }
 0x895   : > { %v2717_v57 = vsel %vm1293_vm14, %v2709_v10, 0.0 }
 0x896   : > { %2718 = vadd.xlane.f32.xlu2 %v2717_v57 }
 0x8bf   : > { %v2684_v24 = vpop.f32.mrf.mxu1  ;;  %v2703_v27 = vpop.f32.mrf.mxu2 }
 0x8c0   : > { %v2685_v25 = vadd.f32 %v3911_v13, %v2684_v24 }
 0x8c2   : > { %v2704_v30 = vadd.f32 %v2703_v27, %v2685_v25 }
 0x8c4   : > { %v2710_v19 = vadd.f32 %v2704_v30, %v4787_v17 }
 0x8c6   : > { %v2720_v7 = vsel %vm1293_vm14, %v2710_v19, 0.0 }
 0x8c7   : > { %v2686_v28 = vpop.f32.mrf.mxu1  ;;  %2721 = vadd.xlane.f32.xlu0 %v2720_v7  ;;  %v2705_v38 = vpop.f32.mrf.mxu2 }
 0x8c8   : > { %v2687_v31 = vadd.f32 %v3911_v13, %v2686_v28 }
 0x8ca   : > { %v2706_v34 = vadd.f32 %v2705_v38, %v2687_v31 }
 0x8cc   : > { %v2711_v35 = vadd.f32 %v2706_v34, %v4789_v47 }
 0x8ce   : > { %v2723_v53 = vsel %vm1293_vm14, %v2711_v35, 0.0 }
 0x8cf   : > { %2724 = vadd.xlane.f32.xlu1 %v2723_v53 }
 0x901   : > { %v2716_v11 = vpop.xlane.xlu1 %2715 }
 0x902   : > { %v2726_v29 = vmul.f32 %v2716_v11, %v4723_v26 }
 0x904   : > { %v2730_v37 = vsub.f32 %v2708_v54, %v2726_v29 }
 0x906   : > { %v2734_v40 = vmul.f32 %v2730_v37, %v2730_v37 }
 0x908   : > { %v2738_v42 = vsel %vm1293_vm14, %v2734_v40, 0.0 }
 0x909   : > { %v2719_v17 = vpop.xlane.xlu2 %2718  ;;  %2739 = vadd.xlane.f32.xlu2 %v2738_v42 }
 0x90a   : > { %v2727_v44 = vmul.f32 %v2719_v17, %v4723_v26 }
 0x90c   : > { %v2731_v43 = vsub.f32 %v2709_v10, %v2727_v44 }
 0x90e   : > { %v2735_v20 = vmul.f32 %v2731_v43, %v2731_v43 }
 0x910   : > { %v2741_v50 = vsel %vm1293_vm14, %v2735_v20, 0.0 }
 0x911   : > { %2742 = vadd.xlane.f32.xlu0 %v2741_v50 }
 0x93a   : > { %v2722_v47 = vpop.xlane.xlu0 %2721 }
 0x93b   : > { %v2728_v4 = vmul.f32 %v2722_v47, %v4723_v26 }
 0x93d   : > { %v4840_v45 = vsub.f32 %v2710_v19, %v2728_v4 }
 0x93f   : > { %v2736_v49 = vmul.f32 %v4840_v45, %v4840_v45 }
 0x941   : > { %v2744_v23 = vsel %vm1293_vm14, %v2736_v49, 0.0 }
 0x942   : > { %2745 = vadd.xlane.f32.xlu1 %v2744_v23  ;;  %v2725_v16 = vpop.xlane.xlu1 %2724 }
 0x943   : > { %v2729_v52 = vmul.f32 %v2725_v16, %v4723_v26 }
 0x945   : > { %v4846_v63 = vsub.f32 %v2711_v35, %v2729_v52 }
 0x947   : > { %v2737_v6 = vmul.f32 %v4846_v63, %v4846_v63 }
 0x949   : > { %v2747_v32 = vsel %vm1293_vm14, %v2737_v6, 0.0 }
 0x94a   : > { %2748 = vadd.xlane.f32.xlu2 %v2747_v32 }
 0x97c   : > { %v2740_v21 = vpop.xlane.xlu2 %2739 }
 0x97d   : > { %v2750_v55 = vmul.f32 %v2740_v21, %v4723_v26 }
 0x97f   : > { %v2754_v56 = vadd.f32 1e-05, %v2750_v55 }
 0x981   : > { %4004 = vrsqrt.f32 %v2754_v56  ;;  %vm2764_vm1 = vweird.f32 %v2754_v56 }
 0x984   : > { %v2743_v51 = vpop.xlane.xlu0 %2742 }
 0x985   : > { %v2751_v58 = vmul.f32 %v2743_v51, %v4723_v26 }
 0x987   : > { %v4005_v41 = vpop.eup %4004  ;;  %v2755_v33 = vadd.f32 1e-05, %v2751_v58 }
 0x988   : > { %v2759_v61 = vmul.f32 %v4005_v41, %v2754_v56  ;;  %vm2765_vm0 = vweird.f32 %v4005_v41 }
 0x989   : > { %4006 = vrsqrt.f32 %v2755_v33  ;;  %vm2766_vm2 = vmor %vm2764_vm1, %vm2765_vm0  ;;  %vm2774_vm4 = vweird.f32 %v2755_v33 }
 0x98a   : > { %v2760_v62 = vmul.f32 %v4005_v41, %v2759_v61 }
 0x98c   : > { %v2761_v0 = vmul.f32 0.5, %v2760_v62 }
 0x98e   : > { %v2762_v36 = vsub.f32 1.5, %v2761_v0 }
 0x98f   : > { %v4007_v1 = vpop.eup %4006 }
 0x990   : > { %v2763_v2 = vmul.f32 %v4005_v41, %v2762_v36  ;;  %v2769_v3 = vmul.f32 %v4007_v1, %v2755_v33  ;;  %vm2775_vm3 = vweird.f32 %v4007_v1 }
 0x991   : > { %vm2776_vm5 = vmor %vm2774_vm4, %vm2775_vm3 }
 0x992   : > { %v2767_v48 = vsel %vm2766_vm2, %v4005_v41, %v2763_v2  ;;  %v2770_v8 = vmul.f32 %v4007_v1, %v2769_v3 }
 0x993   : > { %v2798_v13 = vmul.f32 %v2767_v48, %v2730_v37 }
 0x994   : > { %v2771_v39 = vmul.f32 0.5, %v2770_v8 }
 0x995   : > { %v2805_v60 = vmul.f32 %v3912_v5, %v2798_v13 }
 0x996   : > { %v2772_v14 = vsub.f32 1.5, %v2771_v39 }
 0x997   : > { %v2812_v15 = vadd.f32 %v3913_v9, %v2805_v60 }
 0x998   : > { %v2773_v54 = vmul.f32 %v4007_v1, %v2772_v14 }
 0x999   : > { %2816 = vst.msk [vmem:[#allocation5] sm:$0xff] %vm1293_vm14, %v2812_v15 }
 0x99a   : > { %v2777_v46 = vsel %vm2776_vm5, %v4007_v1, %v2773_v54 }
 0x99b   : > { %v2799_v18 = vmul.f32 %v2777_v46, %v2731_v43 }
 0x99d   : > { %v2806_v59 = vmul.f32 %v3912_v5, %v2799_v18 }
 0x99f   : > { %v2813_v22 = vadd.f32 %v3913_v9, %v2806_v59 }
 0x9a1   : > { %2817 = vst.msk [vmem:[#allocation5 + $0x8] sm:$0xff] %vm1293_vm14, %v2813_v22 }
 0x9b5   : > { %v2746_v12 = vpop.xlane.xlu1 %2745 }
 0x9b6   : > { %v2752_v10 = vmul.f32 %v2746_v12, %v4723_v26 }
 0x9b8   : > { %v2756_v57 = vadd.f32 1e-05, %v2752_v10 }
 0x9ba   : > { %4008 = vrsqrt.f32 %v2756_v57  ;;  %vm2784_vm7 = vweird.f32 %v2756_v57 }
 0x9bd   : > { %v2749_v24 = vpop.xlane.xlu2 %2748 }
 0x9be   : > { %v2753_v27 = vmul.f32 %v2749_v24, %v4723_v26 }
 0x9c0   : > { %v4009_v25 = vpop.eup %4008  ;;  %v2757_v30 = vadd.f32 1e-05, %v2753_v27 }
 0x9c1   : > { %v2779_v19 = vmul.f32 %v4009_v25, %v2756_v57  ;;  %vm2785_vm6 = vweird.f32 %v4009_v25 }
 0x9c2   : > { %4010 = vrsqrt.f32 %v2757_v30  ;;  %vm2786_vm8 = vmor %vm2784_vm7, %vm2785_vm6  ;;  %vm2794_vm10 = vweird.f32 %v2757_v30 }
 0x9c3   : > { %v2780_v7 = vmul.f32 %v4009_v25, %v2779_v19 }
 0x9c5   : > { %v2781_v28 = vmul.f32 0.5, %v2780_v7 }
 0x9c7   : > { %v2782_v31 = vsub.f32 1.5, %v2781_v28 }
 0x9c8   : > { %v4011_v38 = vpop.eup %4010 }
 0x9c9   : > { %v2783_v34 = vmul.f32 %v4009_v25, %v2782_v31  ;;  %v2789_v35 = vmul.f32 %v4011_v38, %v2757_v30  ;;  %vm2795_vm9 = vweird.f32 %v4011_v38 }
 0x9ca   : > { %vm2796_vm11 = vmor %vm2794_vm10, %vm2795_vm9 }
 0x9cb   : > { %v2787_v53 = vsel %vm2786_vm8, %v4009_v25, %v2783_v34  ;;  %v2790_v11 = vmul.f32 %v4011_v38, %v2789_v35 }
 0x9cc   : > { %v2800_v29 = vmul.f32 %v2787_v53, %v4840_v45 }
 0x9cd   : > { %v2791_v37 = vmul.f32 0.5, %v2790_v11 }
 0x9ce   : > { %v2807_v40 = vmul.f32 %v3912_v5, %v2800_v29 }
 0x9cf   : > { %v2792_v42 = vsub.f32 1.5, %v2791_v37 }
 0x9d0   : > { %v2814_v17 = vadd.f32 %v3913_v9, %v2807_v40 }
 0x9d1   : > { %v2793_v44 = vmul.f32 %v4011_v38, %v2792_v42 }
 0x9d2   : > { %2818 = vst.msk [vmem:[#allocation5 + $0x10] sm:$0xff] %vm1293_vm14, %v2814_v17 }
 0x9d3   : > { %v2797_v43 = vsel %vm2796_vm11, %v4011_v38, %v2793_v44 }
 0x9d4   : > { %v2801_v20 = vmul.f32 %v2797_v43, %v4846_v63 }
 0x9d6   : > { %v2808_v50 = vmul.f32 %v3912_v5, %v2801_v20  ;;  %2823 = sbr.rel (%p3584_p1) target bundleno = 3197 (0xc7d), region = 140 }
 0x9d8   : > { %v2815_v47 = vadd.f32 %v3913_v9, %v2808_v50 }
 0x9da   : > { %2819 = vst.msk [vmem:[#allocation5 + $0x18] sm:$0xff] %vm1293_vm14, %v2815_v47 }
 0x9db   : > { %v3721_v4 = vld [vmem:[%s4965_s4 + $0x18] sm:$0xff]  ;;  %v3720_v49 = vld [vmem:[%s4965_s4 + $0x10] sm:$0xff]  ;;  %v3719_v16 = vld [vmem:[%s4965_s4 + $0x8] sm:$0xff]  ;;  %vm2834_vm12 = vcmask 1040384   ;;  %vm2850_vm13 = vcmask 1041408   ;;  %vm2920_vm15 = vcmask 519168  }
 0x9dc   : > { %v3733_v45 = vld [vmem:[%s4966_s16 + $0x38] sm:$0xff]  ;;  %2911 = vmatpush.bf16.msra.mxu0 %v3721_v4  ;;  %v3732_v23 = vld [vmem:[%s4966_s16 + $0x30] sm:$0xff]  ;;  %v3731_v52 = vld [vmem:[%s4966_s16 + $0x28] sm:$0xff]  ;;  %vm3090_vm0 = vcmask 517120  }
 0x9dd   : > { %3077 = vmatpush.bf16.msra.mxu2 %v3733_v45  ;;  %v3718_v21 = vld [vmem:[%s4965_s4] sm:$0xff]  ;;  %v3729_v36 = vld [vmem:[%s4966_s16 + $0x18] sm:$0xff]  ;;  %v3728_v1 = vld [vmem:[%s4966_s16 + $0x10] sm:$0xff] }
 0x9de   : > { %v3730_v41 = vld [vmem:[%s4966_s16 + $0x20] sm:$0xff]  ;;  %v3727_v2 = vld [vmem:[%s4966_s16 + $0x8] sm:$0xff]  ;;  %v3725_v27 = vld [vmem:[%s4969_s10 + $0x18] sm:$0xff] }
 0x9df   : > { %v3726_v3 = vld [vmem:[%s4966_s16] sm:$0xff]  ;;  %2987 = vmatpush.bf16.msra.mxu1 %v3725_v27  ;;  %v3724_v25 = vld [vmem:[%s4969_s10 + $0x10] sm:$0xff]  ;;  %v3723_v30 = vld [vmem:[%s4969_s10 + $0x8] sm:$0xff] }
 0x9e0   : > { %2912 = vmatpush.bf16.msra.mxu0 %v3720_v49  ;;  %v4016_v9 = vld [vmem:[%s4967_s5] ss:$0 sm:$0xff] }
 0x9e1   : > { %3078 = vmatpush.bf16.msra.mxu2 %v3732_v23  ;;  %v2838_v63 = vld [vmem:[%s2837_s11] sm:$0x1]  ;;  %v3588_v6 = vld [vmem:[%s3276_s15 + $0x10] sm:$0x1]  ;;  %s4977_s11 = sld [smem:[#allocation26_spill]] }
 0x9e2   : > { %v2844_v32 = vrot.slane %v3588_v6, 7  ;;  %v2826_v55 = vld [vmem:[%s2825_s23] sm:$0x1]  ;;  %v3586_v56 = vld [vmem:[%s3273_s17 + $0x10] sm:$0x1] }
 0x9e3   : > { %v2832_v58 = vrot.slane %v3586_v56, 7  ;;  %v4017_v15 = vld [vmem:[%s4968_s22] ss:$0 sm:$0xff]  ;;  %2988 = vmatpush.bf16.msra.mxu1 %v3724_v25 }
 0x9e4   : > { %2913 = vmatpush.bf16.msra.mxu0 %v3719_v16  ;;  %v2846_v51 = vsel %vm2834_vm12, %v2838_v63, %v2844_v32  ;;  %v3722_v19 = vld [vmem:[%s4969_s10] sm:$0xff]  ;;  %v3737_v16 = vld [vmem:[%s4972_s28 + $0x18] sm:$0xff]  ;;  %v3735_v63 = vld [vmem:[%s4972_s28 + $0x8] sm:$0xff] }
 0x9e5   : > { %3079 = vmatpush.bf16.msra.mxu2 %v3731_v52  ;;  %2852 = vrot.lane.b32.xlu0 %v2846_v51, %s4169_s18  ;;  %v2848_v33 = vrot.slane %v2846_v51, 6  ;;  %v2835_v61 = vsel %vm2834_vm12, %v2826_v55, %v2832_v58  ;;  %v4018_v43 = vld [vmem:[%s4970_s26] ss:$0 sm:$0xff]  ;;  %v3736_v52 = vld [vmem:[%s4972_s28 + $0x10] sm:$0xff] }
 0x9e6   : > { %v4019_v47 = vld [vmem:[%s4971_s13] ss:$0 sm:$0xff]  ;;  %3157 = vmatpush.bf16.msra.mxu3 %v3737_v16 }
 0x9e7   : > { %v2851_v62 = vsel %vm2850_vm13, %v2835_v61, %v2848_v33  ;;  %2989 = vmatpush.bf16.msra.mxu1 %v3723_v30  ;;  %v3734_v6 = vld [vmem:[%s4972_s28] sm:$0xff] }
 0x9e8   : > { %2914 = vmatpush.bf16.msra.mxu0 %v3718_v21  ;;  %v2876_v0 = vpack.c.bf16 %v2851_v62, %v2851_v62  ;;  %v4020_v62 = vld [vmem:[%s4973_s21] ss:$0 sm:$0xff] }
 0x9e9   : > { %3080 = vmatpush.bf16.msra.mxu2 %v3730_v41 }
 0x9ea   : > { %3158 = vmatpush.bf16.msra.mxu3 %v3736_v52 }
 0x9eb   : > { %3605 = vmatmul.msk.bf16.vlgmr.msra.gmra.mxu0 %vm1293_vm14, %v2876_v0  ;;  %2990 = vmatpush.bf16.msra.mxu1 %v3722_v19 }
 0x9ed   : > { %3081 = vmatpush.bf16.msra.mxu2 %v3729_v36 }
 0x9ee   : > { %3159 = vmatpush.bf16.msra.mxu3 %v3735_v63 }
 0x9f1   : > { %3082 = vmatpush.bf16.msra.mxu2 %v3728_v1  ;;  %v4021_v1 = vld [vmem:[%s4974_s0] ss:$0 sm:$0xff] }
 0x9f2   : > { %3160 = vmatpush.bf16.msra.mxu3 %v3734_v6 }
 0x9f5   : > { %3083 = vmatpush.bf16.msra.mxu2 %v3727_v2 }
 0x9f9   : > { %3084 = vmatpush.bf16.msra.mxu2 %v3726_v3 }
 0xa57   : > { %v2853_v5 = vpop.permute.xlu0 %2852 }
 0xa58   : > { %v2855_v48 = vsel %vm1293_vm14, %v2835_v61, %v2853_v5 }
 0xa59   : > { %v3025_v8 = vpack.c.bf16 %v2855_v48, %v2855_v48  ;;  %v4022_v48 = vld [vmem:[%s4975_s1] ss:$0 sm:$0xff] }
 0xa5b   : > { %3085 = vmatmul.bf16.vlgmr.msra.gmra.mxu2 %v3025_v8 }
 0xa68   : > { %v2916_v13 = vpop.f32.mrf.mxu0 }
 0xa69   : > { %v2917_v39 = vadd.f32 %v4016_v9, %v2916_v13 }
 0xa6b   : > { %v2921_v60 = vsel %vm2920_vm15, %v2917_v39, 0.0 }
 0xa6c   : > { %2922 = vadd.xlane.f32.xlu1 %v2921_v60 }
 0xa70   : > { %v2918_v14 = vpop.f32.mrf.mxu0 }
 0xade   : > { %v3086_v54 = vpop.f32.mrf.mxu2 }
 0xadf   : > { %v2923_v46 = vpop.xlane.xlu1 %2922  ;;  %v3087_v18 = vadd.f32 %v4017_v15, %v3086_v54 }
 0xae0   : > { %v2924_v59 = vmul.f32 %v2923_v46, %v4723_v26 }
 0xae1   : > { %v3091_v12 = vsel %vm3090_vm0, %v3087_v18, 0.0 }
 0xae2   : > { %v2925_v22 = vsub.f32 %v2917_v39, %v2924_v59  ;;  %3092 = vadd.xlane.f32.xlu0 %v3091_v12  ;;  %v4023_v39 = vld [vmem:[%s4977_s11] ss:$0 sm:$0xff] }
 0xae4   : > { %v2926_v10 = vmul.f32 %v2925_v22, %v2925_v22 }
 0xae6   : > { %v2927_v57 = vsel %vm2920_vm15, %v2926_v10, 0.0  ;;  %v3088_v24 = vpop.f32.mrf.mxu2 }
 0xae7   : > { %2928 = vadd.xlane.f32.xlu2 %v2927_v57 }
 0xb55   : > { %v3093_v7 = vpop.xlane.xlu0 %3092 }
 0xb56   : > { %v3094_v28 = vmul.f32 %v3093_v7, %v4723_v26 }
 0xb58   : > { %v3095_v31 = vsub.f32 %v3087_v18, %v3094_v28 }
 0xb5a   : > { %v2929_v38 = vpop.xlane.xlu2 %2928  ;;  %v3096_v35 = vmul.f32 %v3095_v31, %v3095_v31 }
 0xb5b   : > { %v2930_v34 = vmul.f32 %v2929_v38, %v4723_v26 }
 0xb5c   : > { %v3097_v11 = vsel %vm3090_vm0, %v3096_v35, 0.0 }
 0xb5d   : > { %v2931_v53 = vadd.f32 1e-05, %v2930_v34  ;;  %3098 = vadd.xlane.f32.xlu1 %v3097_v11 }
 0xb5f   : > { %4024 = vrsqrt.f32 %v2931_v53  ;;  %vm2938_vm2 = vweird.f32 %v2931_v53 }
 0xb65   : > { %v4025_v29 = vpop.eup %4024 }
 0xb66   : > { %v2933_v37 = vmul.f32 %v4025_v29, %v2931_v53  ;;  %vm2939_vm1 = vweird.f32 %v4025_v29 }
 0xb67   : > { %vm2940_vm3 = vmor %vm2938_vm2, %vm2939_vm1 }
 0xb68   : > { %v2934_v40 = vmul.f32 %v4025_v29, %v2933_v37 }
 0xb6a   : > { %v2935_v42 = vmul.f32 0.5, %v2934_v40 }
 0xb6c   : > { %v2936_v17 = vsub.f32 1.5, %v2935_v42 }
 0xb6e   : > { %v2937_v44 = vmul.f32 %v4025_v29, %v2936_v17 }
 0xb70   : > { %v2941_v20 = vsel %vm2940_vm3, %v4025_v29, %v2937_v44 }
 0xb71   : > { %v2942_v50 = vmul.f32 %v2941_v20, %v2925_v22 }
 0xb73   : > { %v2946_v4 = vmul.f32 %v4018_v43, %v2942_v50 }
 0xb75   : > { %v2950_v45 = vadd.f32 %v4019_v47, %v2946_v4 }
 0xb77   : > { %v2951_v49 = vmax.f32 %v2950_v45, 0.0 }
 0xb79   : > { %v2952_v23 = vpack.c.bf16 %v2951_v49, %v2951_v49 }
 0xb7b   : > { %3622 = vmatmul.msk.bf16.vlgmr.msra.gmra.mxu1 %vm1293_vm14, %v2952_v23 }
 0xbd0   : > { %v3099_v32 = vpop.xlane.xlu1 %3098 }
 0xbd1   : > { %v3100_v21 = vmul.f32 %v3099_v32, %v4723_v26 }
 0xbd3   : > { %v3101_v55 = vadd.f32 1e-05, %v3100_v21 }
 0xbd5   : > { %4026 = vrsqrt.f32 %v3101_v55  ;;  %vm3108_vm5 = vweird.f32 %v3101_v55 }
 0xbdb   : > { %v4027_v56 = vpop.eup %4026 }
 0xbdc   : > { %v3103_v51 = vmul.f32 %v4027_v56, %v3101_v55  ;;  %vm3109_vm4 = vweird.f32 %v4027_v56 }
 0xbdd   : > { %vm3110_vm6 = vmor %vm3108_vm5, %vm3109_vm4 }
 0xbde   : > { %v3104_v58 = vmul.f32 %v4027_v56, %v3103_v51 }
 0xbe0   : > { %v3105_v41 = vmul.f32 0.5, %v3104_v58 }
 0xbe2   : > { %v3106_v33 = vsub.f32 1.5, %v3105_v41 }
 0xbe4   : > { %v3107_v61 = vmul.f32 %v4027_v56, %v3106_v33 }
 0xbe6   : > { %v3111_v0 = vsel %vm3110_vm6, %v4027_v56, %v3107_v61 }
 0xbe7   : > { %v3112_v36 = vmul.f32 %v3111_v0, %v3095_v31 }
 0xbe9   : > { %v3116_v2 = vmul.f32 %v4020_v62, %v3112_v36 }
 0xbeb   : > { %v3120_v26 = vadd.f32 %v4021_v1, %v3116_v2 }
 0xbed   : > { %v3121_v3 = vmax.f32 %v3120_v26, 0.0 }
 0xbef   : > { %v3122_v5 = vpack.c.bf16 %v3121_v3, %v3121_v3 }
 0xbf1   : > { %3671 = vmatmul.msk.bf16.vlgmr.msra.gmra.mxu3 %vm1293_vm14, %v3122_v5 }
 0xbf8   : > { %v2992_v8 = vpop.f32.mrf.mxu1 }
 0xbf9   : > { %v2993_v9 = vadd.f32 %v4022_v48, %v2992_v8 }
 0xbfb   : > { %2996 = vst [vmem:[%s4976_s2] sm:$0xf] %v2993_v9 }
 0xc00   : > { %v2994_v13 = vpop.f32.mrf.mxu1 }
 0xc74   : > { %v3162_v60 = vpop.f32.mrf.mxu3 }
 0xc75   : > { %v3163_v14 = vadd.f32 %v4023_v39, %v3162_v60 }
 0xc77   : > { %3166 = vst [vmem:[#allocation7] sm:$0x3] %v3163_v14 }
 0xc7c   : > { %v3164_v15 = vpop.f32.mrf.mxu3 }
 0xc7d PF: > { %s4978_s15 = sld [smem:[#allocation27_spill]]  ;;  %p3746_p2 = scmp.eq.s32.totalorder %s4351_s7, 1 }
 0xc7e   : > { %s4170_s23 = smov [#allocation5]  }
 0xc7f   : > { %s3172_s17 = sshll.u32 %s4170_s23, 4  ;;  %s3173_s17 = int_to_ptr.vmem [resolvable:$true] %s3172_s17 }
 0xc83   : > { %s3174_s18 = sshll.u32 %s4978_s15, 4  ;;  %s4072_s26 = scalar_lea.hbm %s4978_s15, 32  ;;  %s3175_s18 = int_to_ptr.hbm [resolvable:$true] %s3174_s18 }
 0xc84   : > { %s4066_s5 = sshra.s32 %s3175_s18, 4  ;;  %s4067_s5 = int_to_ptr.hbm [resolvable:$true] %s4066_s5 }
 0xc85   : > { %s4068_s22 = scalar_lea.hbm %s4067_s5, 32  ;;  %p4073_p6 = scmp.lt.s32.totalorder %s4067_s5, %s4978_s15 }
 0xc86   : > { %p4069_p3 = scmp.ne.s32.totalorder %s4067_s5, %s4068_s22  ;;  %p4074_p7 = scmp.lt.s32.totalorder %s4072_s26, %s4068_s22 }
 0xc88   : > { %p4070_p4 = pnand %p4069_p3, %p3746_p2  ;;  %p4075_p8 = por %p4074_p7, %p4073_p6 }
 0xc8a   : > { %p4071_p5 = pneg %p4070_p4 }
 0xc8c   : > { %p4076_p9 = pnand %p4075_p8, %p4071_p5 }
 0xc8e   : > { %4079 = shalt.err (!%p4076_p9)
}
 0xc8f   : > { %s4171_s13 = smov 128   ;;  %s4979_s21 = sld [smem:[#allocation29_spill]] }
 0xc90   : > { %s4172_s0 = smov 8   ;;  %s4173_s2 = smov [#allocation7]  }
 0xc91   : > { %3739 = dma.vmem_to_hbm [thread:$0]  (%p3746_p2), %s3173_s17, 512, %s3175_s18, [#allocation6], %s4171_s13, %s4171_s13, %s4172_s0  }
 0xc92   : > { %s3190_s11 = sshll.u32 %s4173_s2, 4  ;;  %s3191_s11 = int_to_ptr.vmem [resolvable:$true] %s3190_s11 }
 0xc95   : > { %s3192_s1 = sshll.u32 %s4979_s21, 4  ;;  %s4100_s22 = scalar_lea.hbm %s4979_s21, 2  ;;  %s3193_s1 = int_to_ptr.hbm [resolvable:$true] %s3192_s1 }
 0xc96   : > { %s4094_s23 = sshra.s32 %s3193_s1, 4  ;;  %s4095_s23 = int_to_ptr.hbm [resolvable:$true] %s4094_s23 }
 0xc97   : > { %s4096_s5 = scalar_lea.hbm %s4095_s23, 2  ;;  %p4101_p13 = scmp.lt.s32.totalorder %s4095_s23, %s4979_s21 }
 0xc98   : > { %p4097_p10 = scmp.ne.s32.totalorder %s4095_s23, %s4096_s5  ;;  %p4102_p0 = scmp.lt.s32.totalorder %s4100_s22, %s4096_s5 }
 0xc9a   : > { %p4098_p11 = pnand %p4097_p10, %p3746_p2  ;;  %p4103_p1 = por %p4102_p0, %p4101_p13 }
 0xc9c   : > { %p4099_p12 = pneg %p4098_p11 }
 0xc9e   : > { %p4104_p3 = pnand %p4103_p1, %p4099_p12 }
 0xca0   : > { %4107 = shalt.err (!%p4104_p3)
}
 0xca1   : > { %3741 = dma.vmem_to_hbm [thread:$0]  (%p3746_p2), %s3191_s11, 32, %s3193_s1, [#allocation8]  }
 0xca2   : > { %4115 = dma.done.wait (%p3746_p2), [#allocation6], 512  }
 0xca3   : > { %4117 = vsyncadd (%p3746_p2), [#allocation6], 4294966784 }
 0xca4   : > { %4119 = dma.done.wait (%p3746_p2), [#allocation8], 32  }
 0xca5   : > { %4121 = vsyncadd (%p3746_p2), [#allocation8], 4294967264 }
 0xca6 PF: > { %s4980_s17 = sld [smem:[#allocation30_spill]] }
 0xcac   : > { %s91_s0 = sadd.s32 1, %s4980_s17  }
 0xcad   : > { %p88_p4 = scmp.ge.s32.totalorder %s91_s0, 4  }
 0xcaf   :  { %90 = sbr.rel (!%p88_p4) target bundleno = 80 (0x50), region = 252 }
 0xcb4   :  { %3214 = vsyncpa [#allocation6], 1 }
 0xcb5   :  { %3216 = vsyncpa [#allocation6 + $0x1], 1 }
 0xcb6   :  { %3217 = vsyncpa [#allocation8], 1 }

</bundles_post_ra>
